<compile_context>
chip_gen: v5e
topology: v5e:2x2
jax: 0.10.0
libtpu: 0.0.40
codegen_flags: <defaults>
</compile_context>

<pallas_src>
import functools

import jax
import jax.numpy as jnp
from jax.experimental import pallas as pl
from jax.experimental.pallas import tpu as pltpu

LANE = 128


def _round_up(x, m):
    return ((x + m - 1) // m) * m


# ---------------------------------------------------------------------------
# Fused Bottleneck kernel: one image per grid step.
# ---------------------------------------------------------------------------
def _bottleneck_kernel(x_ref, w1_ref, b1_ref, w2_ref, b2_ref, w3_ref, b3_ref,
                       *rest, stride, has_shortcut, H, W, Ho, Wo):
    if has_shortcut:
        ws_ref, o_ref, pad_ref = rest
    else:
        o_ref, pad_ref = rest
        ws_ref = None

    Cin = x_ref.shape[-1]
    C = w1_ref.shape[-1]
    Cout = w3_ref.shape[-1]

    # ---- conv1 (1x1) + folded BN + ReLU: bf16 MXU, f32 accumulate ---------
    x = x_ref[0]                                   # (H, W, Cin) bf16
    xm = x.reshape(H * W, Cin)
    y1 = jnp.dot(xm, w1_ref[...], preferred_element_type=jnp.float32)
    y1 = jnp.maximum(y1 + b1_ref[...], 0.0)        # f32 epilogue

    # ---- zero-pad conv1 output spatially in VMEM (no HBM pad / im2col) ----
    pad_ref[...] = jnp.zeros_like(pad_ref)
    pad_ref[1:H + 1, 1:W + 1, :] = y1.reshape(H, W, C)

    # ---- conv2 (3x3, stride, pad=1) as 9 accumulated tap GEMMs ------------
    acc = jnp.zeros((Ho * Wo, C), jnp.float32)
    for ky in range(3):
        for kx in range(3):
            if stride == 1:
                slab = pad_ref[ky:ky + Ho, kx:kx + Wo, :]
            else:
                slab = pad_ref[pl.ds(ky, Ho, stride=stride),
                               pl.ds(kx, Wo, stride=stride), :]
            acc += jnp.dot(slab.reshape(Ho * Wo, C).astype(jnp.bfloat16),
                           w2_ref[ky * 3 + kx],
                           preferred_element_type=jnp.float32)
    y2 = jnp.maximum(acc + b2_ref[...], 0.0).astype(jnp.bfloat16)

    # ---- conv3 (1x1) + folded BN + shortcut + residual add + ReLU ---------
    acc3 = jnp.dot(y2, w3_ref[...], preferred_element_type=jnp.float32)
    acc3 = acc3 + b3_ref[...]          # b3 already includes the shortcut-BN bias
    if has_shortcut:
        if stride == 1:
            xs = xm
        else:
            xs = x_ref[0, pl.ds(0, Ho, stride=stride),
                       pl.ds(0, Wo, stride=stride), :].reshape(Ho * Wo, Cin)
        acc3 = acc3 + jnp.dot(xs, ws_ref[...],
                              preferred_element_type=jnp.float32)
    else:
        acc3 = acc3 + xm.astype(jnp.float32)       # identity shortcut
    out = jnp.maximum(acc3, 0.0)
    o_ref[...] = out.reshape(1, Ho, Wo, Cout).astype(o_ref.dtype)


# ---------------------------------------------------------------------------
# Parameter prep: fold eval-mode BN into weights/biases, pad to lane width.
# ---------------------------------------------------------------------------
def _fold_bn(gamma, beta, mean, var, eps=1e-5):
    scale = gamma / jnp.sqrt(var + eps)
    shift = beta - mean * scale
    return scale, shift


def _fold_conv_bn(w_torch, scale, shift, cin_p, cout_p):
    """(co, ci, kh, kw) torch weight + folded BN -> (kh*kw, cin_p, cout_p) bf16
    weight (BN scale folded into output channels) and (1, cout_p) f32 bias."""
    co, ci, kh, kw = w_torch.shape
    w = jnp.transpose(w_torch, (2, 3, 1, 0)) * scale[None, None, None, :]
    w = jnp.pad(w, ((0, 0), (0, 0), (0, cin_p - ci), (0, cout_p - co)))
    w = w.reshape(kh * kw, cin_p, cout_p).astype(jnp.bfloat16)
    b = jnp.pad(shift, (0, cout_p - co)).reshape(1, cout_p).astype(jnp.float32)
    return w, b


# ---------------------------------------------------------------------------
# Bottleneck forward (NCHW in / NCHW out, matching the PyTorch module).
# ---------------------------------------------------------------------------
def bottleneck_forward(x_nchw, params, stride):
    N, Cin, H, W = x_nchw.shape
    C = params["w1"].shape[0]
    Cout = params["w3"].shape[0]
    Ho = (H + 2 - 3) // stride + 1
    Wo = (W + 2 - 3) // stride + 1
    has_shortcut = "ws" in params

    Cin_p, C_p, Cout_p = (_round_up(c, LANE) for c in (Cin, C, Cout))

    # NCHW -> NHWC, zero-pad channels to lane width, cast to bf16 (one pass).
    x = jnp.transpose(x_nchw, (0, 2, 3, 1))
    x = jnp.pad(x, ((0, 0), (0, 0), (0, 0), (0, Cin_p - Cin)))
    x = x.astype(jnp.bfloat16)

    w1, b1 = _fold_conv_bn(params["w1"], *params["bn1"], Cin_p, C_p)
    w2, b2 = _fold_conv_bn(params["w2"], *params["bn2"], C_p, C_p)
    w3, b3 = _fold_conv_bn(params["w3"], *params["bn3"], C_p, Cout_p)
    w1 = w1.reshape(Cin_p, C_p)
    w3 = w3.reshape(C_p, Cout_p)

    res = lambda n: (0, 0)                         # resident (constant) blocks
    extra_args, extra_specs = [], []
    if has_shortcut:
        ws, bs = _fold_conv_bn(params["ws"], *params["bns"], Cin_p, Cout_p)
        b3 = b3 + bs                               # fold shortcut-BN bias in
        extra_args = [ws.reshape(Cin_p, Cout_p)]
        extra_specs = [pl.BlockSpec((Cin_p, Cout_p), res)]

    args = [x, w1, b1, w2, b2, w3, b3] + extra_args
    in_specs = [
        pl.BlockSpec((1, H, W, Cin_p), lambda n: (n, 0, 0, 0)),
        pl.BlockSpec((Cin_p, C_p), res),
        pl.BlockSpec((1, C_p), res),
        pl.BlockSpec((9, C_p, C_p), lambda n: (0, 0, 0)),
        pl.BlockSpec((1, C_p), res),
        pl.BlockSpec((C_p, Cout_p), res),
        pl.BlockSpec((1, Cout_p), res),
    ] + extra_specs

    kernel = functools.partial(
        _bottleneck_kernel, stride=stride, has_shortcut=has_shortcut,
        H=H, W=W, Ho=Ho, Wo=Wo)

    out = pl.pallas_call(
        kernel,
        out_shape=jax.ShapeDtypeStruct((N, Ho, Wo, Cout_p), jnp.float32),
        grid=(N,),
        in_specs=in_specs,
        out_specs=pl.BlockSpec((1, Ho, Wo, Cout_p), lambda n: (n, 0, 0, 0)),
        scratch_shapes=[pltpu.VMEM((H + 2, W + 2, C_p), jnp.float32)],
        compiler_params=pltpu.CompilerParams(
            dimension_semantics=("parallel",),
            vmem_limit_bytes=48 * 1024 * 1024),
    )(*args)

    out = out[:, :, :, :Cout]                      # drop lane padding
    return jnp.transpose(out, (0, 3, 1, 2))        # back to NCHW


# ---------------------------------------------------------------------------
# Deterministic parameter construction (mimics nn.Module __init__ shapes).
# ---------------------------------------------------------------------------
def make_bottleneck_params(key, channels_in, channels, stride):
    cout = channels * 4
    keys = jax.random.split(key, 8)

    def conv_w(k, cin, co, kh, kw):
        return 0.1 * jax.random.normal(k, (co, cin, kh, kw), jnp.float32)

    def bn(k, c):
        k1, k2, k3, k4 = jax.random.split(k, 4)
        gamma = 1.0 + 0.1 * jax.random.normal(k1, (c,), jnp.float32)
        beta = 0.1 * jax.random.normal(k2, (c,), jnp.float32)
        mean = 0.1 * jax.random.normal(k3, (c,), jnp.float32)
        var = 0.5 + jnp.abs(jax.random.normal(k4, (c,), jnp.float32))
        return _fold_bn(gamma, beta, mean, var)

    p = {
        "w1": conv_w(keys[0], channels_in, channels, 1, 1),
        "bn1": bn(keys[1], channels),
        "w2": conv_w(keys[2], channels, channels, 3, 3),
        "bn2": bn(keys[3], channels),
        "w3": conv_w(keys[4], channels, cout, 1, 1),
        "bn3": bn(keys[5], cout),
    }
    if stride != 1 or channels_in != cout:
        p["ws"] = conv_w(keys[6], channels_in, cout, 1, 1)
        p["bns"] = bn(keys[7], cout)
    return p


# Pure-JAX reference (f32, XLA convs) for a sanity check of the fused kernel.
def reference_forward(x, params, stride):
    def conv(v, w, s=1, pad="VALID"):
        return jax.lax.conv_general_dilated(
            v, w, (s, s), pad, dimension_numbers=("NCHW", "OIHW", "NCHW"))

    def bn(v, sb):
        s, b = sb
        return v * s.reshape(1, -1, 1, 1) + b.reshape(1, -1, 1, 1)

    out = jax.nn.relu(bn(conv(x, params["w1"]), params["bn1"]))
    out = jax.nn.relu(bn(conv(out, params["w2"], stride, [(1, 1), (1, 1)]),
                         params["bn2"]))
    out = bn(conv(out, params["w3"]), params["bn3"])
    short = x
    if "ws" in params:
        short = bn(conv(x, params["ws"], stride), params["bns"])
    return jax.nn.relu(out + short)


def _run_case(key, batch, channels_in, channels, spatial, stride):
    kx, kp = jax.random.split(key)
    x = jax.random.normal(kx, (batch, channels_in, spatial, spatial),
                          jnp.float32)
    params = make_bottleneck_params(kp, channels_in, channels, stride)

    y = bottleneck_forward(x, params, stride)
    jax.block_until_ready(y)

    expected_shape = (batch, channels * 4,
                      spatial // stride, spatial // stride)
    assert y.shape == expected_shape, (y.shape, expected_shape)
    assert bool(jnp.all(y >= 0.0))                 # final ReLU

    y_ref = reference_forward(x, params, stride)
    assert bool(jnp.allclose(y, y_ref, rtol=5e-2, atol=5e-2)), (
        float(jnp.max(jnp.abs(y - y_ref))))


if __name__ == "__main__":
    key = jax.random.PRNGKey(0)
    k1, k2 = jax.random.split(key)

    # Case 1: projection (1x1 conv) shortcut branch.
    _run_case(k1, batch=2, channels_in=4, channels=4, spatial=16, stride=1)
    # Case 2: identity shortcut branch (channels_in == 4 * channels).
    _run_case(k2, batch=2, channels_in=16, channels=4, spatial=16, stride=1)

    print("KERNEL_OK")
</pallas_src>

<mosaic_0001>
module attributes {stable_mosaic.version = 11 : i64} {
  func.func @_bottleneck_kernel(%arg0: i32, %arg1: memref<1x16x16x128xbf16, #tpu.memory_space<vmem>>, %arg2: memref<128x128xbf16, #tpu.memory_space<vmem>>, %arg3: memref<1x128xf32, #tpu.memory_space<vmem>>, %arg4: memref<9x128x128xbf16, #tpu.memory_space<vmem>>, %arg5: memref<1x128xf32, #tpu.memory_space<vmem>>, %arg6: memref<128x128xbf16, #tpu.memory_space<vmem>>, %arg7: memref<1x128xf32, #tpu.memory_space<vmem>>, %arg8: memref<128x128xbf16, #tpu.memory_space<vmem>>, %arg9: memref<1x16x16x128xf32, #tpu.memory_space<vmem>>, %arg10: memref<18x18x128xf32, #tpu.memory_space<vmem>>) attributes {dimension_semantics = [#tpu.dimension_semantics<parallel>], iteration_bounds = array<i64: 2>, scalar_prefetch = 0 : i64, scratch_operands = 1 : i64, tpu.core_type = #tpu.core_type<tc>, window_params = [{transform_indices = @transform_0, window_bounds = array<i64: 1, 16, 16, 128>}, {pipeline_mode = #tpu.pipeline_mode<synchronous>, transform_indices = @transform_1, window_bounds = array<i64: 128, 128>}, {pipeline_mode = #tpu.pipeline_mode<synchronous>, transform_indices = @transform_2, window_bounds = array<i64: 1, 128>}, {pipeline_mode = #tpu.pipeline_mode<synchronous>, transform_indices = @transform_3, window_bounds = array<i64: 9, 128, 128>}, {pipeline_mode = #tpu.pipeline_mode<synchronous>, transform_indices = @transform_4, window_bounds = array<i64: 1, 128>}, {pipeline_mode = #tpu.pipeline_mode<synchronous>, transform_indices = @transform_5, window_bounds = array<i64: 128, 128>}, {pipeline_mode = #tpu.pipeline_mode<synchronous>, transform_indices = @transform_6, window_bounds = array<i64: 1, 128>}, {pipeline_mode = #tpu.pipeline_mode<synchronous>, transform_indices = @transform_7, window_bounds = array<i64: 128, 128>}, {transform_indices = @transform_8, window_bounds = array<i64: 1, 16, 16, 128>}]} {
    %c0 = arith.constant 0 : index
    %c0_0 = arith.constant 0 : index
    %c0_1 = arith.constant 0 : index
    %c0_2 = arith.constant 0 : index
    %0 = vector.load %arg1[%c0, %c0_0, %c0_1, %c0_2] : memref<1x16x16x128xbf16, #tpu.memory_space<vmem>>, vector<1x16x16x128xbf16>
    %1 = vector.shape_cast %0 : vector<1x16x16x128xbf16> to vector<16x16x128xbf16>
    %2 = vector.shape_cast %1 : vector<16x16x128xbf16> to vector<256x128xbf16>
    %c0_3 = arith.constant 0 : index
    %c0_4 = arith.constant 0 : index
    %3 = vector.load %arg2[%c0_3, %c0_4] : memref<128x128xbf16, #tpu.memory_space<vmem>>, vector<128x128xbf16>
    %cst = arith.constant dense<0.000000e+00> : vector<256x128xf32>
    %4 = tpu.matmul %2, %3, %cst {dimension_numbers = #tpu.dot_dimension_numbers<[1], [0], [0], [1], [0, 0, 1, 1], [], []>} : vector<256x128xbf16>, vector<128x128xbf16>, vector<256x128xf32> -> vector<256x128xf32>
    %c0_5 = arith.constant 0 : index
    %c0_6 = arith.constant 0 : index
    %5 = vector.load %arg3[%c0_5, %c0_6] : memref<1x128xf32, #tpu.memory_space<vmem>>, vector<1x128xf32>
    %6 = vector.broadcast %5 : vector<1x128xf32> to vector<256x128xf32>
    %7 = arith.addf %4, %6 : vector<256x128xf32>
    %cst_7 = arith.constant 0.000000e+00 : f32
    %8 = vector.broadcast %cst_7 : f32 to vector<256x128xf32>
    %9 = arith.maximumf %7, %8 : vector<256x128xf32>
    %cst_8 = arith.constant 0.000000e+00 : f32
    %10 = vector.broadcast %cst_8 : f32 to vector<18x18x128xf32>
    %c0_9 = arith.constant 0 : index
    %c0_10 = arith.constant 0 : index
    %c0_11 = arith.constant 0 : index
    %11 = vector.load %arg10[%c0_9, %c0_10, %c0_11] : memref<18x18x128xf32, #tpu.memory_space<vmem>>, vector<18x18x128xf32>
    tpu.vector_store %arg10[%c0_9, %c0_10, %c0_11], %10 {strides = array<i32>} : memref<18x18x128xf32, #tpu.memory_space<vmem>>, vector<18x18x128xf32>,
    %12 = vector.shape_cast %9 : vector<256x128xf32> to vector<16x16x128xf32>
    %c1 = arith.constant 1 : index
    %c1_12 = arith.constant 1 : index
    %c0_13 = arith.constant 0 : index
    %13 = vector.load %arg10[%c1, %c1_12, %c0_13] : memref<18x18x128xf32, #tpu.memory_space<vmem>>, vector<16x16x128xf32>
    tpu.vector_store %arg10[%c1, %c1_12, %c0_13], %12 {strides = array<i32>} : memref<18x18x128xf32, #tpu.memory_space<vmem>>, vector<16x16x128xf32>,
    %cst_14 = arith.constant 0.000000e+00 : f32
    %14 = vector.broadcast %cst_14 : f32 to vector<256x128xf32>
    %c0_15 = arith.constant 0 : index
    %c0_16 = arith.constant 0 : index
    %c0_17 = arith.constant 0 : index
    %15 = vector.load %arg10[%c0_15, %c0_16, %c0_17] : memref<18x18x128xf32, #tpu.memory_space<vmem>>, vector<16x16x128xf32>
    %16 = vector.shape_cast %15 : vector<16x16x128xf32> to vector<256x128xf32>
    %17 = arith.truncf %16 : vector<256x128xf32> to vector<256x128xbf16>
    %c0_18 = arith.constant 0 : index
    %c0_19 = arith.constant 0 : index
    %c0_20 = arith.constant 0 : index
    %18 = vector.load %arg4[%c0_18, %c0_19, %c0_20] : memref<9x128x128xbf16, #tpu.memory_space<vmem>>, vector<1x128x128xbf16>
    %19 = vector.shape_cast %18 : vector<1x128x128xbf16> to vector<128x128xbf16>
    %cst_21 = arith.constant dense<0.000000e+00> : vector<256x128xf32>
    %20 = tpu.matmul %17, %19, %cst_21 {dimension_numbers = #tpu.dot_dimension_numbers<[1], [0], [0], [1], [0, 0, 1, 1], [], []>} : vector<256x128xbf16>, vector<128x128xbf16>, vector<256x128xf32> -> vector<256x128xf32>
    %21 = arith.addf %14, %20 : vector<256x128xf32>
    %c0_22 = arith.constant 0 : index
    %c1_23 = arith.constant 1 : index
    %c0_24 = arith.constant 0 : index
    %22 = vector.load %arg10[%c0_22, %c1_23, %c0_24] : memref<18x18x128xf32, #tpu.memory_space<vmem>>, vector<16x16x128xf32>
    %23 = vector.shape_cast %22 : vector<16x16x128xf32> to vector<256x128xf32>
    %24 = arith.truncf %23 : vector<256x128xf32> to vector<256x128xbf16>
    %c1_25 = arith.constant 1 : index
    %c0_26 = arith.constant 0 : index
    %c0_27 = arith.constant 0 : index
    %25 = vector.load %arg4[%c1_25, %c0_26, %c0_27] : memref<9x128x128xbf16, #tpu.memory_space<vmem>>, vector<1x128x128xbf16>
    %26 = vector.shape_cast %25 : vector<1x128x128xbf16> to vector<128x128xbf16>
    %cst_28 = arith.constant dense<0.000000e+00> : vector<256x128xf32>
    %27 = tpu.matmul %24, %26, %cst_28 {dimension_numbers = #tpu.dot_dimension_numbers<[1], [0], [0], [1], [0, 0, 1, 1], [], []>} : vector<256x128xbf16>, vector<128x128xbf16>, vector<256x128xf32> -> vector<256x128xf32>
    %28 = arith.addf %21, %27 : vector<256x128xf32>
    %c0_29 = arith.constant 0 : index
    %c2 = arith.constant 2 : index
    %c0_30 = arith.constant 0 : index
    %29 = vector.load %arg10[%c0_29, %c2, %c0_30] : memref<18x18x128xf32, #tpu.memory_space<vmem>>, vector<16x16x128xf32>
    %30 = vector.shape_cast %29 : vector<16x16x128xf32> to vector<256x128xf32>
    %31 = arith.truncf %30 : vector<256x128xf32> to vector<256x128xbf16>
    %c2_31 = arith.constant 2 : index
    %c0_32 = arith.constant 0 : index
    %c0_33 = arith.constant 0 : index
    %32 = vector.load %arg4[%c2_31, %c0_32, %c0_33] : memref<9x128x128xbf16, #tpu.memory_space<vmem>>, vector<1x128x128xbf16>
    %33 = vector.shape_cast %32 : vector<1x128x128xbf16> to vector<128x128xbf16>
    %cst_34 = arith.constant dense<0.000000e+00> : vector<256x128xf32>
    %34 = tpu.matmul %31, %33, %cst_34 {dimension_numbers = #tpu.dot_dimension_numbers<[1], [0], [0], [1], [0, 0, 1, 1], [], []>} : vector<256x128xbf16>, vector<128x128xbf16>, vector<256x128xf32> -> vector<256x128xf32>
    %35 = arith.addf %28, %34 : vector<256x128xf32>
    %c1_35 = arith.constant 1 : index
    %c0_36 = arith.constant 0 : index
    %c0_37 = arith.constant 0 : index
    %36 = vector.load %arg10[%c1_35, %c0_36, %c0_37] : memref<18x18x128xf32, #tpu.memory_space<vmem>>, vector<16x16x128xf32>
    %37 = vector.shape_cast %36 : vector<16x16x128xf32> to vector<256x128xf32>
    %38 = arith.truncf %37 : vector<256x128xf32> to vector<256x128xbf16>
    %c3 = arith.constant 3 : index
    %c0_38 = arith.constant 0 : index
    %c0_39 = arith.constant 0 : index
    %39 = vector.load %arg4[%c3, %c0_38, %c0_39] : memref<9x128x128xbf16, #tpu.memory_space<vmem>>, vector<1x128x128xbf16>
    %40 = vector.shape_cast %39 : vector<1x128x128xbf16> to vector<128x128xbf16>
    %cst_40 = arith.constant dense<0.000000e+00> : vector<256x128xf32>
    %41 = tpu.matmul %38, %40, %cst_40 {dimension_numbers = #tpu.dot_dimension_numbers<[1], [0], [0], [1], [0, 0, 1, 1], [], []>} : vector<256x128xbf16>, vector<128x128xbf16>, vector<256x128xf32> -> vector<256x128xf32>
    %42 = arith.addf %35, %41 : vector<256x128xf32>
    %c1_41 = arith.constant 1 : index
    %c1_42 = arith.constant 1 : index
    %c0_43 = arith.constant 0 : index
    %43 = vector.load %arg10[%c1_41, %c1_42, %c0_43] : memref<18x18x128xf32, #tpu.memory_space<vmem>>, vector<16x16x128xf32>
    %44 = vector.shape_cast %43 : vector<16x16x128xf32> to vector<256x128xf32>
    %45 = arith.truncf %44 : vector<256x128xf32> to vector<256x128xbf16>
    %c4 = arith.constant 4 : index
    %c0_44 = arith.constant 0 : index
    %c0_45 = arith.constant 0 : index
    %46 = vector.load %arg4[%c4, %c0_44, %c0_45] : memref<9x128x128xbf16, #tpu.memory_space<vmem>>, vector<1x128x128xbf16>
    %47 = vector.shape_cast %46 : vector<1x128x128xbf16> to vector<128x128xbf16>
    %cst_46 = arith.constant dense<0.000000e+00> : vector<256x128xf32>
    %48 = tpu.matmul %45, %47, %cst_46 {dimension_numbers = #tpu.dot_dimension_numbers<[1], [0], [0], [1], [0, 0, 1, 1], [], []>} : vector<256x128xbf16>, vector<128x128xbf16>, vector<256x128xf32> -> vector<256x128xf32>
    %49 = arith.addf %42, %48 : vector<256x128xf32>
    %c1_47 = arith.constant 1 : index
    %c2_48 = arith.constant 2 : index
    %c0_49 = arith.constant 0 : index
    %50 = vector.load %arg10[%c1_47, %c2_48, %c0_49] : memref<18x18x128xf32, #tpu.memory_space<vmem>>, vector<16x16x128xf32>
    %51 = vector.shape_cast %50 : vector<16x16x128xf32> to vector<256x128xf32>
    %52 = arith.truncf %51 : vector<256x128xf32> to vector<256x128xbf16>
    %c5 = arith.constant 5 : index
    %c0_50 = arith.constant 0 : index
    %c0_51 = arith.constant 0 : index
    %53 = vector.load %arg4[%c5, %c0_50, %c0_51] : memref<9x128x128xbf16, #tpu.memory_space<vmem>>, vector<1x128x128xbf16>
    %54 = vector.shape_cast %53 : vector<1x128x128xbf16> to vector<128x128xbf16>
    %cst_52 = arith.constant dense<0.000000e+00> : vector<256x128xf32>
    %55 = tpu.matmul %52, %54, %cst_52 {dimension_numbers = #tpu.dot_dimension_numbers<[1], [0], [0], [1], [0, 0, 1, 1], [], []>} : vector<256x128xbf16>, vector<128x128xbf16>, vector<256x128xf32> -> vector<256x128xf32>
    %56 = arith.addf %49, %55 : vector<256x128xf32>
    %c2_53 = arith.constant 2 : index
    %c0_54 = arith.constant 0 : index
    %c0_55 = arith.constant 0 : index
    %57 = vector.load %arg10[%c2_53, %c0_54, %c0_55] : memref<18x18x128xf32, #tpu.memory_space<vmem>>, vector<16x16x128xf32>
    %58 = vector.shape_cast %57 : vector<16x16x128xf32> to vector<256x128xf32>
    %59 = arith.truncf %58 : vector<256x128xf32> to vector<256x128xbf16>
    %c6 = arith.constant 6 : index
    %c0_56 = arith.constant 0 : index
    %c0_57 = arith.constant 0 : index
    %60 = vector.load %arg4[%c6, %c0_56, %c0_57] : memref<9x128x128xbf16, #tpu.memory_space<vmem>>, vector<1x128x128xbf16>
    %61 = vector.shape_cast %60 : vector<1x128x128xbf16> to vector<128x128xbf16>
    %cst_58 = arith.constant dense<0.000000e+00> : vector<256x128xf32>
    %62 = tpu.matmul %59, %61, %cst_58 {dimension_numbers = #tpu.dot_dimension_numbers<[1], [0], [0], [1], [0, 0, 1, 1], [], []>} : vector<256x128xbf16>, vector<128x128xbf16>, vector<256x128xf32> -> vector<256x128xf32>
    %63 = arith.addf %56, %62 : vector<256x128xf32>
    %c2_59 = arith.constant 2 : index
    %c1_60 = arith.constant 1 : index
    %c0_61 = arith.constant 0 : index
    %64 = vector.load %arg10[%c2_59, %c1_60, %c0_61] : memref<18x18x128xf32, #tpu.memory_space<vmem>>, vector<16x16x128xf32>
    %65 = vector.shape_cast %64 : vector<16x16x128xf32> to vector<256x128xf32>
    %66 = arith.truncf %65 : vector<256x128xf32> to vector<256x128xbf16>
    %c7 = arith.constant 7 : index
    %c0_62 = arith.constant 0 : index
    %c0_63 = arith.constant 0 : index
    %67 = vector.load %arg4[%c7, %c0_62, %c0_63] : memref<9x128x128xbf16, #tpu.memory_space<vmem>>, vector<1x128x128xbf16>
    %68 = vector.shape_cast %67 : vector<1x128x128xbf16> to vector<128x128xbf16>
    %cst_64 = arith.constant dense<0.000000e+00> : vector<256x128xf32>
    %69 = tpu.matmul %66, %68, %cst_64 {dimension_numbers = #tpu.dot_dimension_numbers<[1], [0], [0], [1], [0, 0, 1, 1], [], []>} : vector<256x128xbf16>, vector<128x128xbf16>, vector<256x128xf32> -> vector<256x128xf32>
    %70 = arith.addf %63, %69 : vector<256x128xf32>
    %c2_65 = arith.constant 2 : index
    %c2_66 = arith.constant 2 : index
    %c0_67 = arith.constant 0 : index
    %71 = vector.load %arg10[%c2_65, %c2_66, %c0_67] : memref<18x18x128xf32, #tpu.memory_space<vmem>>, vector<16x16x128xf32>
    %72 = vector.shape_cast %71 : vector<16x16x128xf32> to vector<256x128xf32>
    %73 = arith.truncf %72 : vector<256x128xf32> to vector<256x128xbf16>
    %c8 = arith.constant 8 : index
    %c0_68 = arith.constant 0 : index
    %c0_69 = arith.constant 0 : index
    %74 = vector.load %arg4[%c8, %c0_68, %c0_69] : memref<9x128x128xbf16, #tpu.memory_space<vmem>>, vector<1x128x128xbf16>
    %75 = vector.shape_cast %74 : vector<1x128x128xbf16> to vector<128x128xbf16>
    %cst_70 = arith.constant dense<0.000000e+00> : vector<256x128xf32>
    %76 = tpu.matmul %73, %75, %cst_70 {dimension_numbers = #tpu.dot_dimension_numbers<[1], [0], [0], [1], [0, 0, 1, 1], [], []>} : vector<256x128xbf16>, vector<128x128xbf16>, vector<256x128xf32> -> vector<256x128xf32>
    %77 = arith.addf %70, %76 : vector<256x128xf32>
    %c0_71 = arith.constant 0 : index
    %c0_72 = arith.constant 0 : index
    %78 = vector.load %arg5[%c0_71, %c0_72] : memref<1x128xf32, #tpu.memory_space<vmem>>, vector<1x128xf32>
    %79 = vector.broadcast %78 : vector<1x128xf32> to vector<256x128xf32>
    %80 = arith.addf %77, %79 : vector<256x128xf32>
    %cst_73 = arith.constant 0.000000e+00 : f32
    %81 = vector.broadcast %cst_73 : f32 to vector<256x128xf32>
    %82 = arith.maximumf %80, %81 : vector<256x128xf32>
    %83 = arith.truncf %82 : vector<256x128xf32> to vector<256x128xbf16>
    %c0_74 = arith.constant 0 : index
    %c0_75 = arith.constant 0 : index
    %84 = vector.load %arg6[%c0_74, %c0_75] : memref<128x128xbf16, #tpu.memory_space<vmem>>, vector<128x128xbf16>
    %cst_76 = arith.constant dense<0.000000e+00> : vector<256x128xf32>
    %85 = tpu.matmul %83, %84, %cst_76 {dimension_numbers = #tpu.dot_dimension_numbers<[1], [0], [0], [1], [0, 0, 1, 1], [], []>} : vector<256x128xbf16>, vector<128x128xbf16>, vector<256x128xf32> -> vector<256x128xf32>
    %c0_77 = arith.constant 0 : index
    %c0_78 = arith.constant 0 : index
    %86 = vector.load %arg7[%c0_77, %c0_78] : memref<1x128xf32, #tpu.memory_space<vmem>>, vector<1x128xf32>
    %87 = vector.broadcast %86 : vector<1x128xf32> to vector<256x128xf32>
    %88 = arith.addf %85, %87 : vector<256x128xf32>
    %c0_79 = arith.constant 0 : index
    %c0_80 = arith.constant 0 : index
    %89 = vector.load %arg8[%c0_79, %c0_80] : memref<128x128xbf16, #tpu.memory_space<vmem>>, vector<128x128xbf16>
    %cst_81 = arith.constant dense<0.000000e+00> : vector<256x128xf32>
    %90 = tpu.matmul %2, %89, %cst_81 {dimension_numbers = #tpu.dot_dimension_numbers<[1], [0], [0], [1], [0, 0, 1, 1], [], []>} : vector<256x128xbf16>, vector<128x128xbf16>, vector<256x128xf32> -> vector<256x128xf32>
    %91 = arith.addf %88, %90 : vector<256x128xf32>
    %cst_82 = arith.constant 0.000000e+00 : f32
    %92 = vector.broadcast %cst_82 : f32 to vector<256x128xf32>
    %93 = arith.maximumf %91, %92 : vector<256x128xf32>
    %94 = vector.shape_cast %93 : vector<256x128xf32> to vector<1x16x16x128xf32>
    %c0_83 = arith.constant 0 : index
    %c0_84 = arith.constant 0 : index
    %c0_85 = arith.constant 0 : index
    %c0_86 = arith.constant 0 : index
    %95 = vector.load %arg9[%c0_83, %c0_84, %c0_85, %c0_86] : memref<1x16x16x128xf32, #tpu.memory_space<vmem>>, vector<1x16x16x128xf32>
    tpu.vector_store %arg9[%c0_83, %c0_84, %c0_85, %c0_86], %94 {strides = array<i32>} : memref<1x16x16x128xf32, #tpu.memory_space<vmem>>, vector<1x16x16x128xf32>,
    return
  }
  func.func @transform_0(%arg0: i32) -> (i32, i32, i32, i32) {
    %c0_i32 = arith.constant 0 : i32
    %c0_i32_0 = arith.constant 0 : i32
    %c0_i32_1 = arith.constant 0 : i32
    %c0_i32_2 = arith.constant 0 : i32
    return %arg0, %c0_i32, %c0_i32_0, %c0_i32_1 : i32, i32, i32, i32
  }
  func.func @transform_1(%arg0: i32) -> (i32, i32) {
    %c0_i32 = arith.constant 0 : i32
    %c0_i32_0 = arith.constant 0 : i32
    %c0_i32_1 = arith.constant 0 : i32
    return %c0_i32, %c0_i32_0 : i32, i32
  }
  func.func @transform_2(%arg0: i32) -> (i32, i32) {
    %c0_i32 = arith.constant 0 : i32
    %c0_i32_0 = arith.constant 0 : i32
    %c0_i32_1 = arith.constant 0 : i32
    return %c0_i32, %c0_i32_0 : i32, i32
  }
  func.func @transform_3(%arg0: i32) -> (i32, i32, i32) {
    %c0_i32 = arith.constant 0 : i32
    %c0_i32_0 = arith.constant 0 : i32
    %c0_i32_1 = arith.constant 0 : i32
    %c0_i32_2 = arith.constant 0 : i32
    return %c0_i32, %c0_i32_0, %c0_i32_1 : i32, i32, i32
  }
  func.func @transform_4(%arg0: i32) -> (i32, i32) {
    %c0_i32 = arith.constant 0 : i32
    %c0_i32_0 = arith.constant 0 : i32
    %c0_i32_1 = arith.constant 0 : i32
    return %c0_i32, %c0_i32_0 : i32, i32
  }
  func.func @transform_5(%arg0: i32) -> (i32, i32) {
    %c0_i32 = arith.constant 0 : i32
    %c0_i32_0 = arith.constant 0 : i32
    %c0_i32_1 = arith.constant 0 : i32
    return %c0_i32, %c0_i32_0 : i32, i32
  }
  func.func @transform_6(%arg0: i32) -> (i32, i32) {
    %c0_i32 = arith.constant 0 : i32
    %c0_i32_0 = arith.constant 0 : i32
    %c0_i32_1 = arith.constant 0 : i32
    return %c0_i32, %c0_i32_0 : i32, i32
  }
  func.func @transform_7(%arg0: i32) -> (i32, i32) {
    %c0_i32 = arith.constant 0 : i32
    %c0_i32_0 = arith.constant 0 : i32
    %c0_i32_1 = arith.constant 0 : i32
    return %c0_i32, %c0_i32_0 : i32, i32
  }
  func.func @transform_8(%arg0: i32) -> (i32, i32, i32, i32) {
    %c0_i32 = arith.constant 0 : i32
    %c0_i32_0 = arith.constant 0 : i32
    %c0_i32_1 = arith.constant 0 : i32
    %c0_i32_2 = arith.constant 0 : i32
    return %arg0, %c0_i32, %c0_i32_0, %c0_i32_1 : i32, i32, i32, i32
  }
}

</mosaic_0001>

<bundles_post_ra>
// kernel: tpu_custom_call.1
= control target key start
LH: loop header
LB: loop body
LE: loop exit
PB: predicated region body
PF: predicated region fallthrough
CT: control target
= control target key end

     0   :  { %s5422_s0 = inlined_call_operand.hbm [shape: bf16[2,16,16,128], index: 0, kind: input, shape index: {}]   ;;  %s5423_s1 = inlined_call_operand.hbm [shape: bf16[128,128], index: 1, kind: input, shape index: {}]   ;;  %s5424_s2 = inlined_call_operand.vmem [shape: f32[1,128], index: 2, kind: input, shape index: {}]   ;;  %s5425_s3 = inlined_call_operand.hbm [shape: bf16[9,128,128], index: 3, kind: input, shape index: {}]   ;;  %s5426_s4 = inlined_call_operand.vmem [shape: f32[1,128], index: 4, kind: input, shape index: {}]   ;;  %s5427_s5 = inlined_call_operand.hbm [shape: bf16[128,128], index: 5, kind: input, shape index: {}]   ;;  %s5428_s6 = inlined_call_operand.vmem [shape: f32[1,128], index: 6, kind: input, shape index: {}]   ;;  %s5429_s7 = inlined_call_operand.hbm [shape: bf16[128,128], index: 7, kind: input, shape index: {}]   ;;  %s5430_s8 = inlined_call_operand.hbm [shape: f32[2,16,16,128], index: 8, kind: output, shape index: {}]  }
   0x1   :  { %5433 = sst [smem:[#allocation31_spill]] %s5423_s1 }
   0x2   :  { %5434 = sst [smem:[#allocation32_spill]] %s5425_s3 }
   0x3   :  { %13 = vsyncpa [#allocation4], 0 }
   0x4   :  { %15 = vsyncpa [#allocation4 + $0x1], 0 }
   0x5   :  { %16 = vsyncpa [#allocation7], 0 }
   0x6   :  { %17 = vsyncpa [#allocation10], 0 }
   0x7   :  { %18 = vsyncpa [#allocation5], 0 }
   0x8   :  { %20 = vsyncpa [#allocation5 + $0x1], 0  ;;  %s4432_s27 = smov 0   ;;  %s4434_s28 = smov 0  }
   0x9   :  { %s4436_s29 = smov 0   ;;  %s4438_s30 = smov 0  }
   0xa LB: > { %s4453_s9 = sadd.s32 4294967295, %s4375_s30   ;;  %s3455_s10 = sadd.s32 4294967294, %s4375_s30   ;;  %s4375_s30 = sphi %s4438_s30, %s5477_s30   ;;  %s4371_s29 = sphi %s4436_s29, %s5476_s29   ;;  %s4367_s28 = sphi %s4434_s28, %s5475_s28   ;;  %s4363_s27 = sphi %s4432_s27, %s5474_s27  }
   0xb   : > { %p46_p0 = scmp.ne.s32.totalorder %s4367_s28, %s4363_s27  ;;  %p47_p1 = scmp.eq.s32.totalorder %s4453_s9, 0 }
   0xc   : > { %p217_p2 = scmp.eq.s32.totalorder %s4453_s9, 1  ;;  %p223_p3 = scmp.eq.s32.totalorder %s3455_s10, 1 }
   0xd   : > { %p4462_p4 = por %p47_p1, %p46_p0  ;;  %p3456_p5 = scmp.ge.s32.totalorder %s4375_s30, 1 }
   0xe   : > { %p4467_p6 = por %p223_p3, %p46_p0  ;;  %p230_p7 = scmp.lt.s32.totalorder %s4375_s30, 3 }
   0xf   : > { %s5437_s1 = sld [smem:[#allocation31_spill]]  ;;  %s4377_s17 = smov [#allocation6]  }
  0x10   : > { %p4475_p8 = pnand %p3456_p5, %p230_p7  ;;  %s243_s18 = sshll.u32 %s4377_s17, 4  ;;  %s244_s18 = int_to_ptr.vmem [resolvable:$true] %s243_s18 }
  0x11   : > { %s275_s22 = sshll.u32 %s5427_s5, 4  ;;  %s5431_s23 = smov 64   ;;  %s276_s22 = int_to_ptr.hbm [resolvable:$true] %s275_s22 }
  0x12   : > { %p4059_p9 = pneg %p4475_p8  ;;  %s5432_s24 = smov 4  }
  0x13   : > { %s4380_s25 = smov [#allocation9]   ;;  %s5440_s3 = sld [smem:[#allocation32_spill]] }
  0x14   : > { %p4483_p10 = pnand %p4059_p9, %p47_p1  ;;  %s277_s26 = sshll.u32 %s4380_s25, 4  ;;  %s278_s26 = int_to_ptr.vmem [resolvable:$true] %s277_s26 }
  0x15   : > { %s241_s15 = sshll.u32 %s5437_s1, 4  ;;  %s4381_s20 = smov [#allocation8]   ;;  %s242_s15 = int_to_ptr.hbm [resolvable:$true] %s241_s15 }
  0x16   : > { %4062 = dma.hbm_to_vmem [thread:$0]  (!%p4483_p10), %s242_s15, 1024, %s244_s18, [#allocation7], %s5431_s23, %s5431_s23, %s5432_s24  }
  0x17   : > { %4068 = dma.hbm_to_vmem [thread:$0]  (!%p4483_p10), %s276_s22, 1024, %s278_s26, [#allocation10], %s5431_s23, %s5431_s23, %s5432_s24  }
  0x18   : > { %s292_s18 = sshll.u32 %s5429_s7, 4  ;;  %s260_s21 = sshll.u32 %s4381_s20, 4  ;;  %s293_s18 = int_to_ptr.hbm [resolvable:$true] %s292_s18  ;;  %s261_s21 = int_to_ptr.vmem [resolvable:$true] %s260_s21 }
  0x19   : > { %s258_s14 = sshll.u32 %s5440_s3, 4  ;;  %s4382_s25 = smov [#allocation11]   ;;  %s259_s14 = int_to_ptr.hbm [resolvable:$true] %s258_s14 }
  0x1a   : > { %4065 = dma.hbm_to_vmem [thread:$0]  (!%p4483_p10), %s259_s14, 9216, %s261_s21, [#allocation7], %s5431_s23, %s5431_s23, %s5432_s24  }
  0x1b   : > { %s294_s22 = sshll.u32 %s4382_s25, 4  ;;  %s4518_s26 = sadd.s32 1, %s4375_s30   ;;  %s295_s22 = int_to_ptr.vmem [resolvable:$true] %s294_s22 }
  0x1c   : > { %4071 = dma.hbm_to_vmem [thread:$0]  (!%p4483_p10), %s293_s18, 1024, %s295_s22, [#allocation10], %s5431_s23, %s5431_s23, %s5432_s24  }
  0x1d   : > { %s33_s10 = sadd.s32 1, %s4371_s29  ;;  %s30_s13 = ssub.s32 %s4375_s30, %s4518_s26 }
  0x1e   : > { %p40_p12 = scmp.ne.s32.totalorder %s4371_s29, %s4367_s28  ;;  %p31_p13 = scmp.eq.s32.totalorder %s30_s13, 0 }
  0x1f   : > { %p41_p0 = scmp.eq.s32.totalorder %s4375_s30, 0  ;;  %p4084_p5 = scmp.lt.s32.totalorder %s4375_s30, 2 }
  0x20   : > { %p4528_p3 = por %p217_p2, %p40_p12  ;;  %s308_s19 = sand.u32 1, %s4371_s29  }
  0x21   : > { %s4534_s15 = scalar_select %p31_p13, %s4371_s29, %s33_s10  }
  0x22   : > { %p42_p7 = por %p41_p0, %p40_p12  ;;  %s3462_s17 = sshll.u32 %s308_s19, 7 }
  0x23   : > { %s3925_s18 = sshll.u32 %s4375_s30, 7  ;;  %s312_s22 = scalar_lea.vmem [#allocation3], %s3462_s17 }
  0x24   : > { %s317_s25 = scalar_lea.hbm %s5422_s0, %s3925_s18  ;;  %s320_s23 = sshll.u32 %s312_s22, 4  ;;  %s321_s23 = int_to_ptr.vmem [resolvable:$true] %s320_s23 }
  0x25   : > { %s318_s13 = sshll.u32 %s317_s25, 4  ;;  %p4541_p2 = pnand %p4084_p5, %p42_p7  ;;  %s319_s13 = int_to_ptr.hbm [resolvable:$true] %s318_s13 }
  0x26   : > { %s309_s10 = scalar_lea.sflag [#allocation4], %s308_s19  ;;  %s4271_s1 = sshra.s32 %s319_s13, 4  ;;  %s4272_s1 = int_to_ptr.hbm [resolvable:$true] %s4271_s1 }
  0x27   : > { %s4273_s3 = scalar_lea.hbm %s4272_s1, 128  ;;  %p4275_p10 = pneg %p4541_p2 }
  0x28   : > { %p4274_p9 = scmp.ne.s32.totalorder %s4272_s1, %s4273_s3  ;;  %s4278_s20 = scalar_lea.hbm %s5422_s0, 256 }
  0x29   : > { %p4279_p0 = scmp.lt.s32.totalorder %s4272_s1, %s5422_s0  ;;  %p4280_p5 = scmp.lt.s32.totalorder %s4278_s20, %s4273_s3 }
  0x2a   : > { %p4276_p12 = pnand %p4275_p10, %p4274_p9 }
  0x2b   : > { %p4281_p7 = por %p4280_p5, %p4279_p0 }
  0x2c   : > { %p4277_p13 = pneg %p4276_p12 }
  0x2e   : > { %p4282_p11 = pnand %p4281_p7, %p4277_p13 }
  0x30   : > { %4285 = shalt.err (!%p4282_p11)
}
  0x31   : > { %s5443_s19 = smov 4   ;;  %s5444_s22 = smov 64  }
  0x32   : > { %4075 = dma.hbm_to_vmem [thread:$0]  (!%p4541_p2), %s319_s13, 2048, %s321_s23, %s309_s10, %s5444_s22, %s5444_s22, %s5443_s19  }
  0x33   : > { %332 = sbr.rel (%p4475_p8) target bundleno = 1264 (0x4f0), region = 52 }
  0x38   : > { %s4561_s18 = sand.u32 1, %s4367_s28  }
  0x39   : > { %s3466_s1 = sshll.u32 %s4561_s18, 7  ;;  %s335_s3 = scalar_lea.sflag [#allocation4], %s4561_s18 }
  0x3a   : > { %s4565_s17 = scalar_lea.vmem [#allocation3], %s3466_s1 }
  0x3b   : > { %4346 = dma.done.wait (%p4462_p4), %s335_s3, 2048  }
  0x3c   : > { %4348 = vsyncadd (%p4462_p4), %s335_s3, 4294965248 }
  0x3d   : > { %4350 = dma.done.wait (%p47_p1), [#allocation7], 10240  }
  0x3e   : > { %4352 = vsyncadd (%p47_p1), [#allocation7], 4294957056 }
  0x3f   : > { %4354 = dma.done.wait (%p47_p1), [#allocation10], 2048  }
  0x40   : > { %4356 = vsyncadd (%p47_p1), [#allocation10], 4294965248  ;;  %v3949_v0 = vld [vmem:[#allocation6 + $0x38] sm:$0xff]  ;;  %v3948_v1 = vld [vmem:[#allocation6 + $0x30] sm:$0xff]  ;;  %v4383_v31 = vmov 0.0   ;;  %v4384_v38 = vmov 0.0|0.0  }
  0x41   : > { %588 = vmatpush.bf16.msra.mxu0 %v3949_v0  ;;  %v3947_v2 = vld [vmem:[#allocation6 + $0x28] sm:$0xff]  ;;  %v3946_v3 = vld [vmem:[#allocation6 + $0x20] sm:$0xff]  ;;  %v3945_v4 = vld [vmem:[#allocation6 + $0x18] sm:$0xff]  ;;  %709 = vst [vmem:[#allocation2] sm:$0xff] %v4383_v31  ;;  %s3471_s20 = sshll.u32 %s4561_s18, 8  ;;  %s4038_s25 = sshll.u32 %s4453_s9, 8 }
  0x42   : > { %v3944_v5 = vld [vmem:[#allocation6 + $0x10] sm:$0xff]  ;;  %v3943_v6 = vld [vmem:[#allocation6 + $0x8] sm:$0xff]  ;;  %v3942_v7 = vld [vmem:[#allocation6] sm:$0xff]  ;;  %710 = vst [vmem:[#allocation2 + $0x8] sm:$0xff] %v4383_v31  ;;  %s5258_s21 = scalar_lea.vmem [#allocation12], %s3471_s20  ;;  %s3340_s1 = scalar_lea.hbm %s5430_s8, %s4038_s25 }
  0x43   : > { %v3926_v8 = vld [vmem:[%s4565_s17] sm:$0xff]  ;;  %v3927_v9 = vld [vmem:[%s4565_s17 + $0x8] sm:$0xff]  ;;  %v3928_v10 = vld [vmem:[%s4565_s17 + $0x10] sm:$0xff]  ;;  %711 = vst [vmem:[#allocation2 + $0x10] sm:$0x3] %v4383_v31  ;;  %s3341_s3 = sshll.u32 %s5258_s21, 4  ;;  %s3342_s3 = int_to_ptr.vmem [resolvable:$true] %s3341_s3 }
  0x44   : > { %v3929_v11 = vld [vmem:[%s4565_s17 + $0x18] sm:$0xff]  ;;  %v3956_v14 = vld [vmem:[#allocation8 + $0x30] sm:$0xff]  ;;  %v3955_v17 = vld [vmem:[#allocation8 + $0x28] sm:$0xff]  ;;  %712 = vst [vmem:[#allocation2 + $0x18] sm:$0xff] %v4383_v31  ;;  %s3329_s11 = scalar_lea.sflag [#allocation5], %s4561_s18  ;;  %s4321_s13 = scalar_lea.hbm %s5430_s8, 512 }
  0x45   : > { %589 = vmatpush.bf16.msra.mxu0 %v3948_v1  ;;  %v3957_v12 = vld [vmem:[#allocation8 + $0x38] sm:$0xff]  ;;  %v3972_v16 = vld [vmem:[#allocation8 + $0xb0] sm:$0xff]  ;;  %v3971_v19 = vld [vmem:[#allocation8 + $0xa8] sm:$0xff]  ;;  %713 = vst [vmem:[#allocation2 + $0x20] sm:$0xff] %v4383_v31 }
  0x46   : > { %1110 = vmatpush.bf16.msra.mxu2 %v3957_v12  ;;  %v3973_v13 = vld [vmem:[#allocation8 + $0xb8] sm:$0xff]  ;;  %v3964_v18 = vld [vmem:[#allocation8 + $0x70] sm:$0xff]  ;;  %v3954_v20 = vld [vmem:[#allocation8 + $0x20] sm:$0xff]  ;;  %714 = vst [vmem:[#allocation2 + $0x28] sm:$0x3] %v4383_v31 }
  0x47   : > { %v3965_v15 = vld [vmem:[#allocation8 + $0x78] sm:$0xff]  ;;  %1312 = vmatpush.bf16.msra.mxu3 %v3973_v13  ;;  %v3963_v21 = vld [vmem:[#allocation8 + $0x68] sm:$0xff]  ;;  %v3970_v22 = vld [vmem:[#allocation8 + $0xa0] sm:$0xff]  ;;  %715 = vst [vmem:[#allocation2 + $0x30] sm:$0xff] %v4383_v31 }
  0x48   : > { %973 = vmatpush.bf16.msra.mxu1 %v3965_v15  ;;  %v3930_v23 = vld [vmem:[%s4565_s17 + $0x20] sm:$0xff]  ;;  %v3953_v24 = vld [vmem:[#allocation8 + $0x18] sm:$0xff]  ;;  %v3952_v27 = vld [vmem:[#allocation8 + $0x10] sm:$0xff]  ;;  %716 = vst [vmem:[#allocation2 + $0x38] sm:$0xff] %v4383_v31 }
  0x49   : > { %590 = vmatpush.bf16.msra.mxu0 %v3947_v2  ;;  %v3962_v25 = vld [vmem:[#allocation8 + $0x60] sm:$0xff]  ;;  %v3969_v26 = vld [vmem:[#allocation8 + $0x98] sm:$0xff]  ;;  %v3968_v29 = vld [vmem:[#allocation8 + $0x90] sm:$0xff]  ;;  %717 = vst [vmem:[#allocation2 + $0x40] sm:$0x3] %v4383_v31 }
  0x4a   : > { %1111 = vmatpush.bf16.msra.mxu2 %v3956_v14  ;;  %v3961_v28 = vld [vmem:[#allocation8 + $0x58] sm:$0xff]  ;;  %v3951_v30 = vld [vmem:[#allocation8 + $0x8] sm:$0xff]  ;;  %v3960_v32 = vld [vmem:[#allocation8 + $0x50] sm:$0xff]  ;;  %718 = vst [vmem:[#allocation2 + $0x48] sm:$0xff] %v4383_v31 }
  0x4b   : > { %1313 = vmatpush.bf16.msra.mxu3 %v3972_v16  ;;  %v3967_v33 = vld [vmem:[#allocation8 + $0x88] sm:$0xff]  ;;  %v3950_v34 = vld [vmem:[#allocation8] sm:$0xff]  ;;  %v1199_v39 = vld [vmem:[#allocation2 + $0x2] sm:$0xff]  ;;  %719 = vst [vmem:[#allocation2 + $0x50] sm:$0xff] %v4383_v31 }
  0x4c   : > { %974 = vmatpush.bf16.msra.mxu1 %v3964_v18  ;;  %v3959_v35 = vld [vmem:[#allocation8 + $0x48] sm:$0xff]  ;;  %v3966_v36 = vld [vmem:[#allocation8 + $0x80] sm:$0xff]  ;;  %720 = vst [vmem:[#allocation2 + $0x58] sm:$0x3] %v4383_v31  ;;  %v860_v43 = vld [vmem:[#allocation2 + $0x1] sm:$0xff] }
  0x4d   : > { %591 = vmatpush.bf16.msra.mxu0 %v3946_v3  ;;  %v3931_v37 = vld [vmem:[%s4565_s17 + $0x28] sm:$0xff]  ;;  %v1200_v40 = vld [vmem:[#allocation2 + $0xa] sm:$0xff]  ;;  %721 = vst [vmem:[#allocation2 + $0x60] sm:$0xff] %v4383_v31  ;;  %v3932_v46 = vld [vmem:[%s4565_s17 + $0x30] sm:$0xff] }
  0x4e   : > { %1112 = vmatpush.bf16.msra.mxu2 %v3955_v17  ;;  %v3958_v41 = vld [vmem:[#allocation8 + $0x40] sm:$0xff]  ;;  %v1231_v42 = vpack.c.bf16 %v1200_v40, %v1199_v39  ;;  %722 = vst [vmem:[#allocation2 + $0x68] sm:$0xff] %v4383_v31  ;;  %v3981_v47 = vld [vmem:[#allocation8 + $0xf8] sm:$0xff]  ;;  %v4643_v50 = vld [vmem:[%s5424_s2] ss:$0 sm:$0xff] }
  0x4f   : > { %1314 = vmatpush.bf16.msra.mxu3 %v3971_v19  ;;  %v861_v44 = vld [vmem:[#allocation2 + $0x9] sm:$0xff]  ;;  %723 = vst [vmem:[#allocation2 + $0x70] sm:$0x3] %v4383_v31  ;;  %v3980_v55 = vld [vmem:[#allocation8 + $0xf0] sm:$0xff]  ;;  %v3935_v61 = vld [vmem:[%s4565_s17 + $0x48] sm:$0xff] }
  0x50   : > { %975 = vmatpush.bf16.msra.mxu1 %v3963_v21  ;;  %v892_v45 = vpack.c.bf16 %v861_v44, %v860_v43  ;;  %724 = vst [vmem:[#allocation2 + $0x78] sm:$0xff] %v4383_v31  ;;  %v3989_v48 = vld [vmem:[#allocation8 + $0x138] sm:$0xff]  ;;  %v3934_v51 = vld [vmem:[%s4565_s17 + $0x40] sm:$0xff]  ;;  %v3988_v56 = vld [vmem:[#allocation8 + $0x130] sm:$0xff] }
  0x51   : > { %592 = vmatpush.bf16.msra.mxu0 %v3945_v4  ;;  %725 = vst [vmem:[#allocation2 + $0x80] sm:$0xff] %v4383_v31  ;;  %v3933_v49 = vld [vmem:[%s4565_s17 + $0x38] sm:$0xff]  ;;  %v3979_v21 = vld [vmem:[#allocation8 + $0xe8] sm:$0xff] }
  0x52   : > { %1113 = vmatpush.bf16.msra.mxu2 %v3954_v20  ;;  %726 = vst [vmem:[#allocation2 + $0x88] sm:$0x3] %v4383_v31 }
  0x53   : > { %1315 = vmatpush.bf16.msra.mxu3 %v3970_v22  ;;  %727 = vst [vmem:[#allocation2 + $0x90] sm:$0xff] %v4383_v31  ;;  %v3987_v22 = vld [vmem:[#allocation8 + $0x128] sm:$0xff] }
  0x54   : > { %976 = vmatpush.bf16.msra.mxu1 %v3962_v25  ;;  %728 = vst [vmem:[#allocation2 + $0x98] sm:$0xff] %v4383_v31 }
  0x55   : > { %593 = vmatpush.bf16.msra.mxu0 %v3944_v5  ;;  %729 = vst [vmem:[#allocation2 + $0xa0] sm:$0x3] %v4383_v31 }
  0x56   : > { %1114 = vmatpush.bf16.msra.mxu2 %v3953_v24  ;;  %730 = vst [vmem:[#allocation2 + $0xa8] sm:$0xff] %v4383_v31 }
  0x57   : > { %1316 = vmatpush.bf16.msra.mxu3 %v3969_v26  ;;  %731 = vst [vmem:[#allocation2 + $0xb0] sm:$0xff] %v4383_v31 }
  0x58   : > { %977 = vmatpush.bf16.msra.mxu1 %v3961_v28  ;;  %732 = vst [vmem:[#allocation2 + $0xb8] sm:$0x3] %v4383_v31 }
  0x59   : > { %594 = vmatpush.bf16.msra.mxu0 %v3943_v6  ;;  %733 = vst [vmem:[#allocation2 + $0xc0] sm:$0xff] %v4383_v31 }
  0x5a   : > { %1115 = vmatpush.bf16.msra.mxu2 %v3952_v27  ;;  %734 = vst [vmem:[#allocation2 + $0xc8] sm:$0xff] %v4383_v31  ;;  %v3937_v27 = vld [vmem:[%s4565_s17 + $0x58] sm:$0xff] }
  0x5b   : > { %1317 = vmatpush.bf16.msra.mxu3 %v3968_v29  ;;  %735 = vst [vmem:[#allocation2 + $0xd0] sm:$0x3] %v4383_v31 }
  0x5c   : > { %978 = vmatpush.bf16.msra.mxu1 %v3960_v32  ;;  %736 = vst [vmem:[#allocation2 + $0xd8] sm:$0xff] %v4383_v31 }
  0x5d   : > { %595 = vmatpush.bf16.msra.mxu0 %v3942_v7  ;;  %737 = vst [vmem:[#allocation2 + $0xe0] sm:$0xff] %v4383_v31 }
  0x5e   : > { %1116 = vmatpush.bf16.msra.mxu2 %v3951_v30  ;;  %738 = vst [vmem:[#allocation2 + $0xe8] sm:$0x3] %v4383_v31 }
  0x5f   : > { %1318 = vmatpush.bf16.msra.mxu3 %v3967_v33  ;;  %739 = vst [vmem:[#allocation2 + $0xf0] sm:$0xff] %v4383_v31 }
  0x60   : > { %596 = vmatmul.bf16.vlgmr.msra.gmra.mxu0 %v3926_v8  ;;  %979 = vmatpush.bf16.msra.mxu1 %v3959_v35  ;;  %740 = vst [vmem:[#allocation2 + $0xf8] sm:$0xff] %v4383_v31 }
  0x61   : > { %1546 = vmatpush.bf16.msrb.mxu0 %v3981_v47  ;;  %741 = vst [vmem:[#allocation2 + $0x100] sm:$0x3] %v4383_v31 }
  0x62   : > { %1117 = vmatpush.bf16.msra.mxu2 %v3950_v34  ;;  %742 = vst [vmem:[#allocation2 + $0x108] sm:$0xff] %v4383_v31 }
  0x63   : > { %1319 = vmatpush.bf16.msra.mxu3 %v3966_v36  ;;  %743 = vst [vmem:[#allocation2 + $0x110] sm:$0xff] %v4383_v31 }
  0x64   : > { %980 = vmatpush.bf16.msra.mxu1 %v3958_v41  ;;  %744 = vst [vmem:[#allocation2 + $0x118] sm:$0x3] %v4383_v31  ;;  %v3938_v41 = vld [vmem:[%s4565_s17 + $0x60] sm:$0xff] }
  0x65   : > { %1118 = vmatmul.bf16.vlgmr.msra.gmra.mxu2 %v4384_v38  ;;  %745 = vst [vmem:[#allocation2 + $0x120] sm:$0xff] %v4383_v31  ;;  %1547 = vmatpush.bf16.msrb.mxu0 %v3980_v55 }
  0x66   : > { %1320 = vmatmul.bf16.vlgmr.msra.gmra.mxu3 %v1231_v42  ;;  %746 = vst [vmem:[#allocation2 + $0x128] sm:$0xff] %v4383_v31 }
  0x67   : > { %981 = vmatmul.bf16.vlgmr.msra.gmra.mxu1 %v892_v45  ;;  %747 = vst [vmem:[#allocation2 + $0x130] sm:$0x3] %v4383_v31 }
  0x68   : > { %1780 = vmatpush.bf16.msrb.mxu1 %v3989_v48  ;;  %748 = vst [vmem:[#allocation2 + $0x138] sm:$0xff] %v4383_v31 }
  0x69   : > { %749 = vst [vmem:[#allocation2 + $0x140] sm:$0xff] %v4383_v31  ;;  %1548 = vmatpush.bf16.msrb.mxu0 %v3979_v21 }
  0x6a   : > { %750 = vst [vmem:[#allocation2 + $0x148] sm:$0x3] %v4383_v31 }
  0x6b   : > { %751 = vst [vmem:[#allocation2 + $0x150] sm:$0xff] %v4383_v31 }
  0x6c   : > { %752 = vst [vmem:[#allocation2 + $0x158] sm:$0xff] %v4383_v31  ;;  %1781 = vmatpush.bf16.msrb.mxu1 %v3988_v56 }
  0x6d   : > { %753 = vst [vmem:[#allocation2 + $0x160] sm:$0x3] %v4383_v31 }
  0x6e   : > { %754 = vst [vmem:[#allocation2 + $0x168] sm:$0xff] %v4383_v31 }
  0x6f   : > { %755 = vst [vmem:[#allocation2 + $0x170] sm:$0xff] %v4383_v31 }
  0x70   : > { %601 = vmatmul.bf16.gmra.mxu0 %v3927_v9  ;;  %756 = vst [vmem:[#allocation2 + $0x178] sm:$0x3] %v4383_v31  ;;  %1782 = vmatpush.bf16.msrb.mxu1 %v3987_v22 }
  0x71   : > { %757 = vst [vmem:[#allocation2 + $0x180] sm:$0xff] %v4383_v31 }
  0x72   : > { %758 = vst [vmem:[#allocation2 + $0x188] sm:$0xff] %v4383_v31 }
  0x73   : > { %759 = vst [vmem:[#allocation2 + $0x190] sm:$0x3] %v4383_v31 }
  0x74   : > { %760 = vst [vmem:[#allocation2 + $0x198] sm:$0xff] %v4383_v31 }
  0x75   : > { %761 = vst [vmem:[#allocation2 + $0x1a0] sm:$0xff] %v4383_v31 }
  0x76   : > { %762 = vst [vmem:[#allocation2 + $0x1a8] sm:$0x3] %v4383_v31 }
  0x80   : > { %606 = vmatmul.bf16.gmra.mxu0 %v3928_v10 }
  0x90   : > { %611 = vmatmul.bf16.gmra.mxu0 %v3929_v11  ;;  %v3936_v11 = vld [vmem:[%s4565_s17 + $0x50] sm:$0xff] }
  0xa0   : > { %616 = vmatmul.bf16.gmra.mxu0 %v3930_v23 }
  0xb0   : > { %621 = vmatmul.bf16.gmra.mxu0 %v3931_v37 }
  0xc0   : > { %626 = vmatmul.bf16.gmra.mxu0 %v3932_v46 }
  0xd0   : > { %631 = vmatmul.bf16.gmra.mxu0 %v3933_v49 }
  0xdd   : > { %v597_v52 = vpop.f32.mrf.mxu0 }
  0xde   : > { %v598_v53 = vadd.f32 %v4643_v50, %v597_v52  ;;  %v3978_v52 = vld [vmem:[#allocation8 + $0xe0] sm:$0xff] }
  0xdf   : > { %1549 = vmatpush.bf16.msrb.mxu0 %v3978_v52 }
  0xe0   : > { %v677_v54 = vmax.f32 %v598_v53, 0.0  ;;  %636 = vmatmul.bf16.gmra.mxu0 %v3934_v51  ;;  %v3986_v53 = vld [vmem:[#allocation8 + $0x120] sm:$0xff] }
  0xe1   : > { %1783 = vmatpush.bf16.msrb.mxu1 %v3986_v53 }
  0xe2   : > { %764 = vst [vmem:[#allocation2 + $0x19] sm:$0xff] %v677_v54 }
  0xe5   : > { %v599_v57 = vpop.f32.mrf.mxu0 }
  0xe6   : > { %v600_v58 = vadd.f32 %v4643_v50, %v599_v57 }
  0xe8   : > { %v678_v59 = vmax.f32 %v600_v58, 0.0  ;;  %v3939_v58 = vld [vmem:[%s4565_s17 + $0x68] sm:$0xff] }
  0xe9   : > { %v798_v1 = vld [vmem:[#allocation2 + $0x18] sm:$0xff] }
  0xea   : > { %765 = vst [vmem:[#allocation2 + $0x21] sm:$0xff] %v678_v59  ;;  %v893_v60 = vpack.c.bf16 %v678_v59, %v677_v54 }
  0xec   : > { %986 = vmatmul.bf16.gmra.mxu1 %v893_v60 }
  0xed   : > { %v602_v62 = vpop.f32.mrf.mxu0 }
  0xee   : > { %v603_v63 = vadd.f32 %v4643_v50, %v602_v62 }
  0xf0   : > { %v679_v0 = vmax.f32 %v603_v63, 0.0  ;;  %641 = vmatmul.bf16.gmra.mxu0 %v3935_v61  ;;  %v3977_v61 = vld [vmem:[#allocation8 + $0xd8] sm:$0xff] }
  0xf1   : > { %v799_v2 = vld [vmem:[#allocation2 + $0x20] sm:$0xff]  ;;  %1550 = vmatpush.bf16.msrb.mxu0 %v3977_v61 }
  0xf2   : > { %v1201_v3 = vld [vmem:[#allocation2 + $0x1a] sm:$0xff]  ;;  %v1202_v4 = vld [vmem:[#allocation2 + $0x22] sm:$0xff]  ;;  %766 = vst [vmem:[#allocation2 + $0x31] sm:$0xff] %v679_v0  ;;  %v4651_v5 = vpack.c.bf16 %v799_v2, %v798_v1 }
  0xf3   : > { %v1232_v6 = vpack.c.bf16 %v1202_v4, %v1201_v3 }
  0xf4   : > { %1123 = vmatmul.bf16.gmra.mxu2 %v4651_v5 }
  0xf5   : > { %1325 = vmatmul.bf16.gmra.mxu3 %v1232_v6  ;;  %v604_v7 = vpop.f32.mrf.mxu0  ;;  %v3976_v6 = vld [vmem:[#allocation8 + $0xd0] sm:$0xff] }
  0xf6   : > { %v605_v8 = vadd.f32 %v4643_v50, %v604_v7  ;;  %1551 = vmatpush.bf16.msrb.mxu0 %v3976_v6 }
  0xf8   : > { %v680_v9 = vmax.f32 %v605_v8, 0.0 }
  0xf9   : > { %v800_v15 = vld [vmem:[#allocation2 + $0x30] sm:$0xff] }
  0xfa   : > { %767 = vst [vmem:[#allocation2 + $0x39] sm:$0xff] %v680_v9  ;;  %v894_v10 = vpack.c.bf16 %v680_v9, %v679_v0  ;;  %v3975_v9 = vld [vmem:[#allocation8 + $0xc8] sm:$0xff] }
  0xfb   : > { %1552 = vmatpush.bf16.msrb.mxu0 %v3975_v9 }
  0xfc   : > { %991 = vmatmul.bf16.gmra.mxu1 %v894_v10 }
  0xfd   : > { %v607_v12 = vpop.f32.mrf.mxu0 }
  0xfe   : > { %v608_v13 = vadd.f32 %v4643_v50, %v607_v12  ;;  %v1119_v12 = vpop.f32.mrf.mxu2 }
 0x100   : > { %v681_v14 = vmax.f32 %v608_v13, 0.0  ;;  %646 = vmatmul.bf16.gmra.mxu0 %v3936_v11  ;;  %v982_v11 = vpop.f32.mrf.mxu1 }
 0x101   : > { %v801_v16 = vld [vmem:[#allocation2 + $0x38] sm:$0xff] }
 0x102   : > { %v1203_v17 = vld [vmem:[#allocation2 + $0x32] sm:$0xff]  ;;  %v1204_v18 = vld [vmem:[#allocation2 + $0x3a] sm:$0xff]  ;;  %768 = vst [vmem:[#allocation2 + $0x49] sm:$0xff] %v681_v14  ;;  %v4657_v19 = vpack.c.bf16 %v801_v16, %v800_v15  ;;  %v1321_v15 = vpop.f32.mrf.mxu3 }
 0x103   : > { %v1233_v20 = vpack.c.bf16 %v1204_v18, %v1203_v17  ;;  %v3974_v16 = vld [vmem:[#allocation8 + $0xc0] sm:$0xff]  ;;  %v3940_v17 = vld [vmem:[%s4565_s17 + $0x70] sm:$0xff] }
 0x104   : > { %1128 = vmatmul.bf16.gmra.mxu2 %v4657_v19  ;;  %1553 = vmatpush.bf16.msrb.mxu0 %v3974_v16 }
 0x105   : > { %1330 = vmatmul.bf16.gmra.mxu3 %v1233_v20  ;;  %v609_v23 = vpop.f32.mrf.mxu0 }
 0x106   : > { %v610_v24 = vadd.f32 %v4643_v50, %v609_v23 }
 0x108   : > { %v682_v25 = vmax.f32 %v610_v24, 0.0 }
 0x109   : > { %v802_v31 = vld [vmem:[#allocation2 + $0x48] sm:$0xff] }
 0x10a   : > { %769 = vst [vmem:[#allocation2 + $0x51] sm:$0xff] %v682_v25  ;;  %v895_v26 = vpack.c.bf16 %v682_v25, %v681_v14  ;;  %v1120_v14 = vadd.f32 %v1119_v12, %v982_v11  ;;  %v4704_v9 = vpop.f32.mrf.mxu3 }
 0x10c   : > { %996 = vmatmul.bf16.gmra.mxu1 %v895_v26  ;;  %v4680_v18 = vadd.f32 %v1321_v15, %v1120_v14 }
 0x10d   : > { %v612_v28 = vpop.f32.mrf.mxu0 }
 0x10e   : > { %v613_v29 = vadd.f32 %v4643_v50, %v612_v28 }
 0x110   : > { %v683_v30 = vmax.f32 %v613_v29, 0.0  ;;  %651 = vmatmul.bf16.gmra.mxu0 %v3937_v27  ;;  %v3985_v29 = vld [vmem:[#allocation8 + $0x118] sm:$0xff] }
 0x111   : > { %v803_v32 = vld [vmem:[#allocation2 + $0x50] sm:$0xff]  ;;  %1784 = vmatpush.bf16.msrb.mxu1 %v3985_v29 }
 0x112   : > { %v1205_v33 = vld [vmem:[#allocation2 + $0x4a] sm:$0xff]  ;;  %v1206_v34 = vld [vmem:[#allocation2 + $0x52] sm:$0xff]  ;;  %770 = vst [vmem:[#allocation2 + $0x61] sm:$0xff] %v683_v30  ;;  %v4663_v35 = vpack.c.bf16 %v803_v32, %v802_v31 }
 0x113   : > { %v1234_v36 = vpack.c.bf16 %v1206_v34, %v1205_v33  ;;  %v3941_v34 = vld [vmem:[%s4565_s17 + $0x78] sm:$0xff] }
 0x114   : > { %1133 = vmatmul.bf16.gmra.mxu2 %v4663_v35 }
 0x115   : > { %1335 = vmatmul.bf16.gmra.mxu3 %v1234_v36  ;;  %v614_v37 = vpop.f32.mrf.mxu0 }
 0x116   : > { %v615_v38 = vadd.f32 %v4643_v50, %v614_v37 }
 0x118   : > { %v684_v39 = vmax.f32 %v615_v38, 0.0 }
 0x119   : > { %v804_v45 = vld [vmem:[#allocation2 + $0x60] sm:$0xff] }
 0x11a   : > { %771 = vst [vmem:[#allocation2 + $0x69] sm:$0xff] %v684_v39  ;;  %v896_v40 = vpack.c.bf16 %v684_v39, %v683_v30 }
 0x11c   : > { %1001 = vmatmul.bf16.gmra.mxu1 %v896_v40 }
 0x11d   : > { %v617_v42 = vpop.f32.mrf.mxu0 }
 0x11e   : > { %v618_v43 = vadd.f32 %v4643_v50, %v617_v42 }
 0x120   : > { %v685_v44 = vmax.f32 %v618_v43, 0.0  ;;  %656 = vmatmul.bf16.gmra.mxu0 %v3938_v41 }
 0x121   : > { %v805_v46 = vld [vmem:[#allocation2 + $0x68] sm:$0xff] }
 0x122   : > { %v1207_v47 = vld [vmem:[#allocation2 + $0x62] sm:$0xff]  ;;  %v1208_v48 = vld [vmem:[#allocation2 + $0x6a] sm:$0xff]  ;;  %772 = vst [vmem:[#allocation2 + $0x79] sm:$0xff] %v685_v44  ;;  %v4669_v49 = vpack.c.bf16 %v805_v46, %v804_v45 }
 0x123   : > { %v1235_v51 = vpack.c.bf16 %v1208_v48, %v1207_v47  ;;  %v3997_v45 = vld [vmem:[#allocation8 + $0x178] sm:$0xff] }
 0x124   : > { %1138 = vmatmul.bf16.gmra.mxu2 %v4669_v49  ;;  %v4005_v46 = vld [vmem:[#allocation8 + $0x1b8] sm:$0xff] }
 0x125   : > { %1340 = vmatmul.bf16.gmra.mxu3 %v1235_v51  ;;  %v619_v54 = vpop.f32.mrf.mxu0  ;;  %2014 = vmatpush.bf16.msrb.mxu2 %v3997_v45 }
 0x126   : > { %v620_v55 = vadd.f32 %v4643_v50, %v619_v54  ;;  %2249 = vmatpush.bf16.msrb.mxu3 %v4005_v46 }
 0x128   : > { %v686_v56 = vmax.f32 %v620_v55, 0.0 }
 0x129   : > { %v806_v63 = vld [vmem:[#allocation2 + $0x78] sm:$0xff] }
 0x12a   : > { %773 = vst [vmem:[#allocation2 + $0x81] sm:$0xff] %v686_v56  ;;  %v897_v57 = vpack.c.bf16 %v686_v56, %v685_v44 }
 0x12c   : > { %1006 = vmatmul.bf16.gmra.mxu1 %v897_v57  ;;  %v4695_v57 = vpop.f32.mrf.mxu1 }
 0x12d   : > { %v622_v59 = vpop.f32.mrf.mxu0 }
 0x12e   : > { %v623_v60 = vadd.f32 %v4643_v50, %v622_v59 }
 0x130   : > { %v687_v62 = vmax.f32 %v623_v60, 0.0  ;;  %661 = vmatmul.bf16.gmra.mxu0 %v3939_v58 }
 0x131   : > { %v807_v0 = vld [vmem:[#allocation2 + $0x80] sm:$0xff] }
 0x132   : > { %v1209_v1 = vld [vmem:[#allocation2 + $0x7a] sm:$0xff]  ;;  %v1210_v2 = vld [vmem:[#allocation2 + $0x82] sm:$0xff]  ;;  %774 = vst [vmem:[#allocation2 + $0x91] sm:$0xff] %v687_v62  ;;  %v4675_v3 = vpack.c.bf16 %v807_v0, %v806_v63 }
 0x133   : > { %v1236_v4 = vpack.c.bf16 %v1210_v2, %v1209_v1  ;;  %v3984_v63 = vld [vmem:[#allocation8 + $0x110] sm:$0xff] }
 0x134   : > { %1143 = vmatmul.bf16.gmra.mxu2 %v4675_v3  ;;  %1785 = vmatpush.bf16.msrb.mxu1 %v3984_v63 }
 0x135   : > { %1345 = vmatmul.bf16.gmra.mxu3 %v1236_v4  ;;  %v624_v7 = vpop.f32.mrf.mxu0 }
 0x136   : > { %v625_v8 = vadd.f32 %v4643_v50, %v624_v7 }
 0x138   : > { %v688_v10 = vmax.f32 %v625_v8, 0.0  ;;  %v4702_v8 = vpop.f32.mrf.mxu2 }
 0x139   : > { %v808_v23 = vld [vmem:[#allocation2 + $0x90] sm:$0xff] }
 0x13a   : > { %775 = vst [vmem:[#allocation2 + $0x99] sm:$0xff] %v688_v10  ;;  %v898_v13 = vpack.c.bf16 %v688_v10, %v687_v62 }
 0x13c   : > { %1011 = vmatmul.bf16.gmra.mxu1 %v898_v13 }
 0x13d   : > { %v627_v20 = vpop.f32.mrf.mxu0 }
 0x13e   : > { %v628_v21 = vadd.f32 %v4643_v50, %v627_v20  ;;  %v3996_v20 = vld [vmem:[#allocation8 + $0x170] sm:$0xff] }
 0x13f   : > { %2015 = vmatpush.bf16.msrb.mxu2 %v3996_v20 }
 0x140   : > { %v689_v22 = vmax.f32 %v628_v21, 0.0  ;;  %666 = vmatmul.bf16.gmra.mxu0 %v3940_v17  ;;  %v4004_v21 = vld [vmem:[#allocation8 + $0x1b0] sm:$0xff] }
 0x141   : > { %v809_v24 = vld [vmem:[#allocation2 + $0x98] sm:$0xff]  ;;  %2250 = vmatpush.bf16.msrb.mxu3 %v4004_v21 }
 0x142   : > { %v1211_v25 = vld [vmem:[#allocation2 + $0x92] sm:$0xff]  ;;  %v1212_v26 = vld [vmem:[#allocation2 + $0x9a] sm:$0xff]  ;;  %776 = vst [vmem:[#allocation2 + $0xa9] sm:$0xff] %v689_v22  ;;  %v4683_v27 = vpack.c.bf16 %v809_v24, %v808_v23 }
 0x143   : > { %v1237_v28 = vpack.c.bf16 %v1212_v26, %v1211_v25 }
 0x144   : > { %1148 = vmatmul.bf16.gmra.mxu2 %v4683_v27 }
 0x145   : > { %1350 = vmatmul.bf16.gmra.mxu3 %v1237_v28  ;;  %v629_v30 = vpop.f32.mrf.mxu0 }
 0x146   : > { %v630_v31 = vadd.f32 %v4643_v50, %v629_v30 }
 0x148   : > { %v690_v32 = vmax.f32 %v630_v31, 0.0 }
 0x149   : > { %v810_v39 = vld [vmem:[#allocation2 + $0xa8] sm:$0xff] }
 0x14a   : > { %777 = vst [vmem:[#allocation2 + $0xb1] sm:$0xff] %v690_v32  ;;  %v899_v33 = vpack.c.bf16 %v690_v32, %v689_v22 }
 0x14c   : > { %1016 = vmatmul.bf16.gmra.mxu1 %v899_v33 }
 0x14d   : > { %v632_v36 = vpop.f32.mrf.mxu0 }
 0x14e   : > { %v633_v37 = vadd.f32 %v4643_v50, %v632_v36 }
 0x150   : > { %v691_v38 = vmax.f32 %v633_v37, 0.0  ;;  %671 = vmatmul.bf16.gmra.mxu0 %v3941_v34 }
 0x151   : > { %v811_v40 = vld [vmem:[#allocation2 + $0xb0] sm:$0xff] }
 0x152   : > { %v1213_v41 = vld [vmem:[#allocation2 + $0xaa] sm:$0xff]  ;;  %v1214_v42 = vld [vmem:[#allocation2 + $0xb2] sm:$0xff]  ;;  %778 = vst [vmem:[#allocation2 + $0xc1] sm:$0xff] %v691_v38  ;;  %v4689_v43 = vpack.c.bf16 %v811_v40, %v810_v39 }
 0x153   : > { %v1238_v44 = vpack.c.bf16 %v1214_v42, %v1213_v41 }
 0x154   : > { %1153 = vmatmul.bf16.gmra.mxu2 %v4689_v43 }
 0x155   : > { %1355 = vmatmul.bf16.gmra.mxu3 %v1238_v44  ;;  %v634_v47 = vpop.f32.mrf.mxu0 }
 0x156   : > { %v635_v48 = vadd.f32 %v4643_v50, %v634_v47  ;;  %v3983_v47 = vld [vmem:[#allocation8 + $0x108] sm:$0xff] }
 0x157   : > { %1786 = vmatpush.bf16.msrb.mxu1 %v3983_v47 }
 0x158   : > { %v692_v51 = vmax.f32 %v635_v48, 0.0 }
 0x159   : > { %v812_v56 = vld [vmem:[#allocation2 + $0xc0] sm:$0xff] }
 0x15a   : > { %779 = vst [vmem:[#allocation2 + $0xc9] sm:$0xff] %v692_v51  ;;  %v900_v52 = vpack.c.bf16 %v692_v51, %v691_v38 }
 0x15c   : > { %1021 = vmatmul.bf16.gmra.mxu1 %v900_v52 }
 0x15d   : > { %v637_v53 = vpop.f32.mrf.mxu0 }
 0x15e   : > { %v638_v54 = vadd.f32 %v4643_v50, %v637_v53 }
 0x160   : > { %v693_v55 = vmax.f32 %v638_v54, 0.0  ;;  %1554 = vmatmul.bf16.vlgmr.msrb.gmra.mxu0 %v4651_v5 }
 0x161   : > { %v813_v58 = vld [vmem:[#allocation2 + $0xc8] sm:$0xff] }
 0x162   : > { %v1215_v59 = vld [vmem:[#allocation2 + $0xc2] sm:$0xff]  ;;  %v1216_v60 = vld [vmem:[#allocation2 + $0xca] sm:$0xff]  ;;  %780 = vst [vmem:[#allocation2 + $0xd9] sm:$0xff] %v693_v55  ;;  %v4697_v61 = vpack.c.bf16 %v813_v58, %v812_v56 }
 0x163   : > { %v1239_v62 = vpack.c.bf16 %v1216_v60, %v1215_v59 }
 0x164   : > { %1158 = vmatmul.bf16.gmra.mxu2 %v4697_v61 }
 0x165   : > { %1360 = vmatmul.bf16.gmra.mxu3 %v1239_v62  ;;  %v639_v0 = vpop.f32.mrf.mxu0 }
 0x166   : > { %v640_v1 = vadd.f32 %v4643_v50, %v639_v0 }
 0x168   : > { %v694_v2 = vmax.f32 %v640_v1, 0.0 }
 0x169   : > { %v987_v5 = vpop.f32.mrf.mxu1  ;;  %v814_v11 = vld [vmem:[#allocation2 + $0xd8] sm:$0xff] }
 0x16a   : > { %781 = vst [vmem:[#allocation2 + $0xe1] sm:$0xff] %v694_v2  ;;  %v901_v4 = vpack.c.bf16 %v694_v2, %v693_v55 }
 0x16c   : > { %1026 = vmatmul.bf16.gmra.mxu1 %v901_v4 }
 0x16d   : > { %v642_v6 = vpop.f32.mrf.mxu0 }
 0x16e   : > { %v643_v7 = vadd.f32 %v4643_v50, %v642_v6 }
 0x170   : > { %v695_v10 = vmax.f32 %v643_v7, 0.0  ;;  %1559 = vmatmul.bf16.gmra.mxu0 %v4657_v19 }
 0x171   : > { %v815_v12 = vld [vmem:[#allocation2 + $0xe0] sm:$0xff]  ;;  %v989_v15 = vpop.f32.mrf.mxu1 }
 0x172   : > { %v1217_v13 = vld [vmem:[#allocation2 + $0xda] sm:$0xff]  ;;  %v1218_v14 = vld [vmem:[#allocation2 + $0xe2] sm:$0xff]  ;;  %782 = vst [vmem:[#allocation2 + $0xf1] sm:$0xff] %v695_v10  ;;  %v4707_v16 = vpack.c.bf16 %v815_v12, %v814_v11 }
 0x173   : > { %v1240_v17 = vpack.c.bf16 %v1218_v14, %v1217_v13  ;;  %v3995_v13 = vld [vmem:[#allocation8 + $0x168] sm:$0xff] }
 0x174   : > { %1163 = vmatmul.bf16.gmra.mxu2 %v4707_v16  ;;  %v4003_v14 = vld [vmem:[#allocation8 + $0x1a8] sm:$0xff] }
 0x175   : > { %1365 = vmatmul.bf16.gmra.mxu3 %v1240_v17  ;;  %v644_v22 = vpop.f32.mrf.mxu0  ;;  %2016 = vmatpush.bf16.msrb.mxu2 %v3995_v13 }
 0x176   : > { %v645_v23 = vadd.f32 %v4643_v50, %v644_v22  ;;  %2251 = vmatpush.bf16.msrb.mxu3 %v4003_v14 }
 0x177   : > { %v1124_v19 = vpop.f32.mrf.mxu2 }
 0x178   : > { %v1326_v24 = vpop.f32.mrf.mxu3  ;;  %v696_v25 = vmax.f32 %v645_v23, 0.0  ;;  %v1125_v26 = vadd.f32 %v1124_v19, %v987_v5 }
 0x179   : > { %v992_v28 = vpop.f32.mrf.mxu1  ;;  %v816_v38 = vld [vmem:[#allocation2 + $0xf0] sm:$0xff] }
 0x17a   : > { %783 = vst [vmem:[#allocation2 + $0xf9] sm:$0xff] %v696_v25  ;;  %v4711_v29 = vadd.f32 %v1326_v24, %v1125_v26  ;;  %v902_v30 = vpack.c.bf16 %v696_v25, %v695_v10 }
 0x17c   : > { %1031 = vmatmul.bf16.gmra.mxu1 %v902_v30 }
 0x17d   : > { %v647_v31 = vpop.f32.mrf.mxu0 }
 0x17e   : > { %v648_v32 = vadd.f32 %v4643_v50, %v647_v31 }
 0x17f   : > { %v1126_v33 = vpop.f32.mrf.mxu2 }
 0x180   : > { %v1328_v34 = vpop.f32.mrf.mxu3  ;;  %v697_v36 = vmax.f32 %v648_v32, 0.0  ;;  %v1127_v37 = vadd.f32 %v1126_v33, %v989_v15  ;;  %1564 = vmatmul.bf16.gmra.mxu0 %v4663_v35 }
 0x181   : > { %v817_v39 = vld [vmem:[#allocation2 + $0xf8] sm:$0xff]  ;;  %v994_v42 = vpop.f32.mrf.mxu1 }
 0x182   : > { %v1219_v40 = vld [vmem:[#allocation2 + $0xf2] sm:$0xff]  ;;  %v1220_v41 = vld [vmem:[#allocation2 + $0xfa] sm:$0xff]  ;;  %784 = vst [vmem:[#allocation2 + $0x109] sm:$0xff] %v697_v36  ;;  %v4715_v44 = vadd.f32 %v1328_v34, %v1127_v37  ;;  %v4717_v45 = vpack.c.bf16 %v817_v39, %v816_v38 }
 0x183   : > { %v1241_v46 = vpack.c.bf16 %v1220_v41, %v1219_v40 }
 0x184   : > { %1168 = vmatmul.bf16.gmra.mxu2 %v4717_v45 }
 0x185   : > { %1370 = vmatmul.bf16.gmra.mxu3 %v1241_v46  ;;  %v649_v48 = vpop.f32.mrf.mxu0 }
 0x186   : > { %v650_v51 = vadd.f32 %v4643_v50, %v649_v48 }
 0x187   : > { %v1129_v35 = vpop.f32.mrf.mxu2 }
 0x188   : > { %v1331_v52 = vpop.f32.mrf.mxu3  ;;  %v698_v53 = vmax.f32 %v650_v51, 0.0  ;;  %v1130_v54 = vadd.f32 %v1129_v35, %v992_v28 }
 0x189   : > { %v997_v55 = vpop.f32.mrf.mxu1  ;;  %v818_v2 = vld [vmem:[#allocation2 + $0x108] sm:$0xff] }
 0x18a   : > { %785 = vst [vmem:[#allocation2 + $0x111] sm:$0xff] %v698_v53  ;;  %v4721_v56 = vadd.f32 %v1331_v52, %v1130_v54  ;;  %v903_v58 = vpack.c.bf16 %v698_v53, %v697_v36 }
 0x18c   : > { %1036 = vmatmul.bf16.gmra.mxu1 %v903_v58 }
 0x18d   : > { %v652_v59 = vpop.f32.mrf.mxu0 }
 0x18e   : > { %v653_v60 = vadd.f32 %v4643_v50, %v652_v59 }
 0x18f   : > { %v1131_v62 = vpop.f32.mrf.mxu2 }
 0x190   : > { %v1333_v63 = vpop.f32.mrf.mxu3  ;;  %v699_v0 = vmax.f32 %v653_v60, 0.0  ;;  %v1132_v1 = vadd.f32 %v1131_v62, %v994_v42  ;;  %1569 = vmatmul.bf16.gmra.mxu0 %v4669_v49  ;;  %v3982_v42 = vld [vmem:[#allocation8 + $0x100] sm:$0xff] }
 0x191   : > { %v819_v5 = vld [vmem:[#allocation2 + $0x110] sm:$0xff]  ;;  %v999_v7 = vpop.f32.mrf.mxu1  ;;  %1787 = vmatpush.bf16.msrb.mxu1 %v3982_v42 }
 0x192   : > { %v1221_v4 = vld [vmem:[#allocation2 + $0x10a] sm:$0xff]  ;;  %v1222_v6 = vld [vmem:[#allocation2 + $0x112] sm:$0xff]  ;;  %786 = vst [vmem:[#allocation2 + $0x121] sm:$0xff] %v699_v0  ;;  %v4725_v10 = vadd.f32 %v1333_v63, %v1132_v1  ;;  %v4727_v11 = vpack.c.bf16 %v819_v5, %v818_v2 }
 0x193   : > { %v1242_v12 = vpack.c.bf16 %v1222_v6, %v1221_v4  ;;  %v3994_v62 = vld [vmem:[#allocation8 + $0x160] sm:$0xff] }
 0x194   : > { %1173 = vmatmul.bf16.gmra.mxu2 %v4727_v11  ;;  %v4002_v63 = vld [vmem:[#allocation8 + $0x1a0] sm:$0xff] }
 0x195   : > { %1375 = vmatmul.bf16.gmra.mxu3 %v1242_v12  ;;  %v654_v15 = vpop.f32.mrf.mxu0  ;;  %2017 = vmatpush.bf16.msrb.mxu2 %v3994_v62 }
 0x196   : > { %v655_v49 = vadd.f32 %v4643_v50, %v654_v15  ;;  %2252 = vmatpush.bf16.msrb.mxu3 %v4002_v63  ;;  %v3993_v15 = vld [vmem:[#allocation8 + $0x158] sm:$0xff] }
 0x197   : > { %v1134_v17 = vpop.f32.mrf.mxu2 }
 0x198   : > { %v1336_v20 = vpop.f32.mrf.mxu3  ;;  %v700_v21 = vmax.f32 %v655_v49, 0.0  ;;  %v1135_v22 = vadd.f32 %v1134_v17, %v997_v55  ;;  %v4001_v49 = vld [vmem:[#allocation8 + $0x198] sm:$0xff] }
 0x199   : > { %v1002_v23 = vpop.f32.mrf.mxu1  ;;  %v820_v33 = vld [vmem:[#allocation2 + $0x120] sm:$0xff]  ;;  %2018 = vmatpush.bf16.msrb.mxu2 %v3993_v15 }
 0x19a   : > { %787 = vst [vmem:[#allocation2 + $0x129] sm:$0xff] %v700_v21  ;;  %v4731_v19 = vadd.f32 %v1336_v20, %v1135_v22  ;;  %v904_v24 = vpack.c.bf16 %v700_v21, %v699_v0  ;;  %2253 = vmatpush.bf16.msrb.mxu3 %v4001_v49  ;;  %v3992_v22 = vld [vmem:[#allocation8 + $0x150] sm:$0xff] }
 0x19c   : > { %1041 = vmatmul.bf16.gmra.mxu1 %v904_v24 }
 0x19d   : > { %v657_v25 = vpop.f32.mrf.mxu0  ;;  %2019 = vmatpush.bf16.msrb.mxu2 %v3992_v22 }
 0x19e   : > { %v658_v26 = vadd.f32 %v4643_v50, %v657_v25 }
 0x19f   : > { %v1136_v28 = vpop.f32.mrf.mxu2 }
 0x1a0   : > { %v1338_v30 = vpop.f32.mrf.mxu3  ;;  %v701_v31 = vmax.f32 %v658_v26, 0.0  ;;  %v1137_v32 = vadd.f32 %v1136_v28, %v999_v7  ;;  %1574 = vmatmul.bf16.gmra.mxu0 %v4675_v3 }
 0x1a1   : > { %v821_v34 = vld [vmem:[#allocation2 + $0x128] sm:$0xff]  ;;  %v1004_v38 = vpop.f32.mrf.mxu1 }
 0x1a2   : > { %v1223_v36 = vld [vmem:[#allocation2 + $0x122] sm:$0xff]  ;;  %v1224_v37 = vld [vmem:[#allocation2 + $0x12a] sm:$0xff]  ;;  %788 = vst [vmem:[#allocation2 + $0x139] sm:$0xff] %v701_v31  ;;  %v4735_v39 = vadd.f32 %v1338_v30, %v1137_v32  ;;  %v4737_v40 = vpack.c.bf16 %v821_v34, %v820_v33  ;;  %v3999_v32 = vld [vmem:[#allocation8 + $0x188] sm:$0xff] }
 0x1a3   : > { %v1243_v41 = vpack.c.bf16 %v1224_v37, %v1223_v36 }
 0x1a4   : > { %1178 = vmatmul.bf16.gmra.mxu2 %v4737_v40 }
 0x1a5   : > { %1380 = vmatmul.bf16.gmra.mxu3 %v1243_v41  ;;  %v659_v46 = vpop.f32.mrf.mxu0  ;;  %v3998_v41 = vld [vmem:[#allocation8 + $0x180] sm:$0xff] }
 0x1a6   : > { %v660_v47 = vadd.f32 %v4643_v50, %v659_v46 }
 0x1a7   : > { %v1139_v3 = vpop.f32.mrf.mxu2 }
 0x1a8   : > { %v1341_v48 = vpop.f32.mrf.mxu3  ;;  %v702_v51 = vmax.f32 %v660_v47, 0.0  ;;  %v1140_v35 = vadd.f32 %v1139_v3, %v1002_v23  ;;  %v4000_v23 = vld [vmem:[#allocation8 + $0x190] sm:$0xff] }
 0x1a9   : > { %v1007_v52 = vpop.f32.mrf.mxu1  ;;  %v822_v2 = vld [vmem:[#allocation2 + $0x138] sm:$0xff]  ;;  %2254 = vmatpush.bf16.msrb.mxu3 %v4000_v23 }
 0x1aa   : > { %789 = vst [vmem:[#allocation2 + $0x141] sm:$0xff] %v702_v51  ;;  %v4741_v53 = vadd.f32 %v1341_v48, %v1140_v35  ;;  %v905_v54 = vpack.c.bf16 %v702_v51, %v701_v31  ;;  %v3991_v31 = vld [vmem:[#allocation8 + $0x148] sm:$0xff] }
 0x1ab   : > { %2020 = vmatpush.bf16.msrb.mxu2 %v3991_v31 }
 0x1ac   : > { %1046 = vmatmul.bf16.gmra.mxu1 %v905_v54 }
 0x1ad   : > { %v662_v55 = vpop.f32.mrf.mxu0  ;;  %2255 = vmatpush.bf16.msrb.mxu3 %v3999_v32 }
 0x1ae   : > { %v663_v58 = vadd.f32 %v4643_v50, %v662_v55 }
 0x1af   : > { %v1141_v59 = vpop.f32.mrf.mxu2 }
 0x1b0   : > { %v1343_v60 = vpop.f32.mrf.mxu3  ;;  %v703_v0 = vmax.f32 %v663_v58, 0.0  ;;  %v1142_v1 = vadd.f32 %v1141_v59, %v1004_v38  ;;  %1579 = vmatmul.bf16.gmra.mxu0 %v4683_v27  ;;  %v3990_v38 = vld [vmem:[#allocation8 + $0x140] sm:$0xff]  ;;  %v4013_v58 = vld [vmem:[#allocation8 + $0x1f8] sm:$0xff] }
 0x1b1   : > { %v823_v5 = vld [vmem:[#allocation2 + $0x140] sm:$0xff]  ;;  %v1009_v7 = vpop.f32.mrf.mxu1  ;;  %2021 = vmatpush.bf16.msrb.mxu2 %v3990_v38  ;;  %2256 = vmatpush.bf16.msrb.mxu3 %v3998_v41  ;;  %v4021_v59 = vld [vmem:[#allocation8 + $0x238] sm:$0xff] }
 0x1b2   : > { %v1225_v4 = vld [vmem:[#allocation2 + $0x13a] sm:$0xff]  ;;  %v1226_v6 = vld [vmem:[#allocation2 + $0x142] sm:$0xff]  ;;  %790 = vst [vmem:[#allocation2 + $0x151] sm:$0xff] %v703_v0  ;;  %v4745_v12 = vadd.f32 %v1343_v60, %v1142_v1  ;;  %v4747_v13 = vpack.c.bf16 %v823_v5, %v822_v2  ;;  %2483 = vmatpush.bf16.msra.mxu0 %v4013_v58  ;;  %2717 = vmatpush.bf16.msra.mxu1 %v4021_v59  ;;  %v2136_v58 = vld [vmem:[#allocation2 + $0x30] sm:$0xff] }
 0x1b3   : > { %v1244_v14 = vpack.c.bf16 %v1226_v6, %v1225_v4  ;;  %v1667_v38 = vld [vmem:[#allocation2 + $0x19] sm:$0xff] }
 0x1b4   : > { %1183 = vmatmul.bf16.gmra.mxu2 %v4747_v13 }
 0x1b5   : > { %1385 = vmatmul.bf16.gmra.mxu3 %v1244_v14  ;;  %v664_v17 = vpop.f32.mrf.mxu0 }
 0x1b6   : > { %v665_v27 = vadd.f32 %v4643_v50, %v664_v17 }
 0x1b7   : > { %v1144_v20 = vpop.f32.mrf.mxu2 }
 0x1b8   : > { %v1346_v21 = vpop.f32.mrf.mxu3  ;;  %v704_v24 = vmax.f32 %v665_v27, 0.0  ;;  %v1145_v25 = vadd.f32 %v1144_v20, %v1007_v52 }
 0x1b9   : > { %v1012_v26 = vpop.f32.mrf.mxu1  ;;  %v824_v47 = vld [vmem:[#allocation2 + $0x150] sm:$0xff] }
 0x1ba   : > { %791 = vst [vmem:[#allocation2 + $0x159] sm:$0xff] %v704_v24  ;;  %v4751_v28 = vadd.f32 %v1346_v21, %v1145_v25  ;;  %v906_v30 = vpack.c.bf16 %v704_v24, %v703_v0 }
 0x1bc   : > { %1051 = vmatmul.bf16.gmra.mxu1 %v906_v30 }
 0x1bd   : > { %v667_v33 = vpop.f32.mrf.mxu0 }
 0x1be   : > { %v668_v34 = vadd.f32 %v4643_v50, %v667_v33 }
 0x1bf   : > { %v1146_v36 = vpop.f32.mrf.mxu2 }
 0x1c0   : > { %v1348_v37 = vpop.f32.mrf.mxu3  ;;  %v705_v42 = vmax.f32 %v668_v34, 0.0  ;;  %v1147_v46 = vadd.f32 %v1146_v36, %v1009_v7  ;;  %1584 = vmatmul.bf16.gmra.mxu0 %v4689_v43 }
 0x1c1   : > { %v825_v3 = vld [vmem:[#allocation2 + $0x158] sm:$0xff]  ;;  %v1014_v35 = vpop.f32.mrf.mxu1 }
 0x1c2   : > { %v1227_v48 = vld [vmem:[#allocation2 + $0x152] sm:$0xff]  ;;  %v1228_v51 = vld [vmem:[#allocation2 + $0x15a] sm:$0xff]  ;;  %792 = vst [vmem:[#allocation2 + $0x169] sm:$0xff] %v705_v42  ;;  %v4755_v52 = vadd.f32 %v1348_v37, %v1147_v46  ;;  %v4757_v54 = vpack.c.bf16 %v825_v3, %v824_v47 }
 0x1c3   : > { %v1245_v55 = vpack.c.bf16 %v1228_v51, %v1227_v48  ;;  %v1901_v51 = vld [vmem:[#allocation2 + $0x1a] sm:$0xff] }
 0x1c4   : > { %1188 = vmatmul.bf16.gmra.mxu2 %v4757_v54 }
 0x1c5   : > { %1390 = vmatmul.bf16.gmra.mxu3 %v1245_v55  ;;  %v669_v60 = vpop.f32.mrf.mxu0 }
 0x1c6   : > { %v670_v43 = vadd.f32 %v4643_v50, %v669_v60 }
 0x1c7   : > { %v1149_v62 = vpop.f32.mrf.mxu2 }
 0x1c8   : > { %v1351_v63 = vpop.f32.mrf.mxu3  ;;  %v706_v0 = vmax.f32 %v670_v43, 0.0  ;;  %v1150_v1 = vadd.f32 %v1149_v62, %v1012_v26 }
 0x1c9   : > { %v1017_v2 = vpop.f32.mrf.mxu1  ;;  %v826_v27 = vld [vmem:[#allocation2 + $0x168] sm:$0xff] }
 0x1ca   : > { %793 = vst [vmem:[#allocation2 + $0x171] sm:$0xff] %v706_v0  ;;  %v4761_v5 = vadd.f32 %v1351_v63, %v1150_v1  ;;  %v907_v4 = vpack.c.bf16 %v706_v0, %v705_v42  ;;  %v4012_v63 = vld [vmem:[#allocation8 + $0x1f0] sm:$0xff] }
 0x1cb   : > { %v4020_v0 = vld [vmem:[#allocation8 + $0x230] sm:$0xff]  ;;  %2484 = vmatpush.bf16.msra.mxu0 %v4012_v63 }
 0x1cc   : > { %1056 = vmatmul.bf16.gmra.mxu1 %v907_v4  ;;  %v1670_v4 = vld [vmem:[#allocation2 + $0x39] sm:$0xff] }
 0x1cd   : > { %v672_v6 = vpop.f32.mrf.mxu0  ;;  %2718 = vmatpush.bf16.msra.mxu1 %v4020_v0 }
 0x1ce   : > { %v673_v7 = vadd.f32 %v4643_v50, %v672_v6 }
 0x1cf   : > { %v1151_v14 = vpop.f32.mrf.mxu2 }
 0x1d0   : > { %v1353_v15 = vpop.f32.mrf.mxu3  ;;  %v707_v49 = vmax.f32 %v673_v7, 0.0  ;;  %v1152_v17 = vadd.f32 %v1151_v14, %v1014_v35  ;;  %1589 = vmatmul.bf16.gmra.mxu0 %v4697_v61  ;;  %v1668_v61 = vld [vmem:[#allocation2 + $0x21] sm:$0xff]  ;;  %v2137_v35 = vld [vmem:[#allocation2 + $0x38] sm:$0xff] }
 0x1d1   : > { %v827_v20 = vld [vmem:[#allocation2 + $0x170] sm:$0xff]  ;;  %v1019_v23 = vpop.f32.mrf.mxu1  ;;  %v1699_v42 = vpack.c.bf16 %v1668_v61, %v1667_v38  ;;  %v2168_v62 = vpack.c.bf16 %v2137_v35, %v2136_v58 }
 0x1d2   : > { %v1229_v21 = vld [vmem:[#allocation2 + $0x16a] sm:$0xff]  ;;  %v1230_v22 = vld [vmem:[#allocation2 + $0x172] sm:$0xff]  ;;  %794 = vst [vmem:[#allocation2 + $0x181] sm:$0xff] %v707_v49  ;;  %v4765_v24 = vadd.f32 %v1353_v15, %v1152_v17  ;;  %v4767_v25 = vpack.c.bf16 %v827_v20, %v826_v27 }
 0x1d3   : > { %v1246_v26 = vpack.c.bf16 %v1230_v22, %v1229_v21  ;;  %v1903_v21 = vld [vmem:[#allocation2 + $0x32] sm:$0xff]  ;;  %v1904_v22 = vld [vmem:[#allocation2 + $0x3a] sm:$0xff] }
 0x1d4   : > { %1193 = vmatmul.bf16.gmra.mxu2 %v4767_v25  ;;  %v1672_v38 = vld [vmem:[#allocation2 + $0x51] sm:$0xff] }
 0x1d5   : > { %1395 = vmatmul.bf16.gmra.mxu3 %v1246_v26  ;;  %v674_v30 = vpop.f32.mrf.mxu0  ;;  %v1906_v58 = vld [vmem:[#allocation2 + $0x52] sm:$0xff] }
 0x1d6   : > { %v675_v31 = vadd.f32 %v4643_v50, %v674_v30  ;;  %v1902_v50 = vld [vmem:[#allocation2 + $0x22] sm:$0xff] }
 0x1d7   : > { %v1154_v32 = vpop.f32.mrf.mxu2  ;;  %v1933_v43 = vpack.c.bf16 %v1902_v50, %v1901_v51  ;;  %v2138_v30 = vld [vmem:[#allocation2 + $0x48] sm:$0xff] }
 0x1d8   : > { %v1356_v33 = vpop.f32.mrf.mxu3  ;;  %v708_v34 = vmax.f32 %v675_v31, 0.0  ;;  %v1155_v36 = vadd.f32 %v1154_v32, %v1017_v2 }
 0x1d9   : > { %v1022_v37 = vpop.f32.mrf.mxu1 }
 0x1da   : > { %795 = vst [vmem:[#allocation2 + $0x189] sm:$0xff] %v708_v34  ;;  %v4771_v41 = vadd.f32 %v1356_v33, %v1155_v36  ;;  %v1934_v33 = vpack.c.bf16 %v1904_v22, %v1903_v21  ;;  %v1673_v21 = vld [vmem:[#allocation2 + $0x61] sm:$0xff] }
 0x1dc   : > { %1788 = vmatmul.bf16.vlgmr.msrb.gmra.mxu1 %v1699_v42 }
 0x1dd   : > { %v1555_v46 = vpop.f32.mrf.mxu0 }
 0x1de   : > { %v4774_v47 = vadd.f32 %v1555_v46, %v4680_v18 }
 0x1df   : > { %v1156_v3 = vpop.f32.mrf.mxu2 }
 0x1e0   : > { %v1358_v48 = vpop.f32.mrf.mxu3  ;;  %v1157_v55 = vadd.f32 %v1156_v3, %v1019_v23  ;;  %1594 = vmatmul.bf16.gmra.mxu0 %v4707_v16  ;;  %v1669_v16 = vld [vmem:[#allocation2 + $0x31] sm:$0xff]  ;;  %v1671_v3 = vld [vmem:[#allocation2 + $0x49] sm:$0xff] }
 0x1e1   : > { %v1024_v59 = vpop.f32.mrf.mxu1  ;;  %v4783_v15 = vpack.c.bf16 %v1670_v4, %v1669_v16  ;;  %v2139_v23 = vld [vmem:[#allocation2 + $0x50] sm:$0xff]  ;;  %v4011_v4 = vld [vmem:[#allocation8 + $0x1e8] sm:$0xff] }
 0x1e2   : > { %v4777_v60 = vadd.f32 %v1358_v48, %v1157_v55  ;;  %v2169_v61 = vpack.c.bf16 %v2139_v23, %v2138_v30  ;;  %2485 = vmatpush.bf16.msra.mxu0 %v4011_v4 }
 0x1e4   : > { %2022 = vmatmul.bf16.vlgmr.msrb.gmra.mxu2 %v1933_v43 }
 0x1e5   : > { %2257 = vmatmul.bf16.vlgmr.msrb.gmra.mxu3 %v2168_v62  ;;  %v4779_v18 = vpop.f32.mrf.mxu0  ;;  %v2140_v62 = vld [vmem:[#allocation2 + $0x60] sm:$0xff] }
 0x1e7   : > { %v1159_v1 = vpop.f32.mrf.mxu2 }
 0x1e8   : > { %v1361_v2 = vpop.f32.mrf.mxu3  ;;  %v1160_v6 = vadd.f32 %v1159_v1, %v1022_v37 }
 0x1e9   : > { %v1027_v7 = vpop.f32.mrf.mxu1 }
 0x1ea   : > { %v4781_v14 = vadd.f32 %v1361_v2, %v1160_v6  ;;  %v4019_v6 = vld [vmem:[#allocation8 + $0x228] sm:$0xff] }
 0x1eb   : > { %2719 = vmatpush.bf16.msra.mxu1 %v4019_v6  ;;  %v1910_v6 = vld [vmem:[#allocation2 + $0x82] sm:$0xff] }
 0x1ec   : > { %1793 = vmatmul.bf16.gmra.mxu1 %v4783_v15 }
 0x1ed   : > { %v1560_v49 = vpop.f32.mrf.mxu0 }
 0x1ee   : > { %v4787_v17 = vadd.f32 %v1560_v49, %v4711_v29 }
 0x1ef   : > { %v1161_v27 = vpop.f32.mrf.mxu2 }
 0x1f0   : > { %v1363_v20 = vpop.f32.mrf.mxu3  ;;  %v1162_v26 = vadd.f32 %v1161_v27, %v1024_v59  ;;  %1599 = vmatmul.bf16.gmra.mxu0 %v4717_v45  ;;  %v4797_v45 = vpack.c.bf16 %v1672_v38, %v1671_v3  ;;  %v2141_v59 = vld [vmem:[#allocation2 + $0x68] sm:$0xff] }
 0x1f1   : > { %v1029_v31 = vpop.f32.mrf.mxu1  ;;  %v2170_v2 = vpack.c.bf16 %v2141_v59, %v2140_v62  ;;  %v1674_v27 = vld [vmem:[#allocation2 + $0x69] sm:$0xff] }
 0x1f2   : > { %v4790_v32 = vadd.f32 %v1363_v20, %v1162_v26  ;;  %v4811_v23 = vpack.c.bf16 %v1674_v27, %v1673_v21 }
 0x1f4   : > { %2027 = vmatmul.bf16.gmra.mxu2 %v1934_v33  ;;  %v1907_v33 = vld [vmem:[#allocation2 + $0x62] sm:$0xff] }
 0x1f5   : > { %2262 = vmatmul.bf16.gmra.mxu3 %v2169_v61  ;;  %v1562_v34 = vpop.f32.mrf.mxu0  ;;  %v1908_v61 = vld [vmem:[#allocation2 + $0x6a] sm:$0xff] }
 0x1f6   : > { %v4793_v29 = vadd.f32 %v1562_v34, %v4715_v44  ;;  %v1905_v44 = vld [vmem:[#allocation2 + $0x4a] sm:$0xff]  ;;  %v2143_v34 = vld [vmem:[#allocation2 + $0x80] sm:$0xff] }
 0x1f7   : > { %v1164_v36 = vpop.f32.mrf.mxu2  ;;  %v1935_v1 = vpack.c.bf16 %v1906_v58, %v1905_v44  ;;  %v1676_v44 = vld [vmem:[#allocation2 + $0x81] sm:$0xff] }
 0x1f8   : > { %v1366_v37 = vpop.f32.mrf.mxu3  ;;  %v1165_v42 = vadd.f32 %v1164_v36, %v1027_v7 }
 0x1f9   : > { %v1032_v46 = vpop.f32.mrf.mxu1 }
 0x1fa   : > { %v4795_v48 = vadd.f32 %v1366_v37, %v1165_v42  ;;  %v2142_v37 = vld [vmem:[#allocation2 + $0x78] sm:$0xff] }
 0x1fb   : > { %v2171_v3 = vpack.c.bf16 %v2143_v34, %v2142_v37  ;;  %v1678_v34 = vld [vmem:[#allocation2 + $0x99] sm:$0xff]  ;;  %v1677_v37 = vld [vmem:[#allocation2 + $0x91] sm:$0xff] }
 0x1fc   : > { %1798 = vmatmul.bf16.gmra.mxu1 %v4797_v45 }
 0x1fd   : > { %v1565_v51 = vpop.f32.mrf.mxu0 }
 0x1fe   : > { %v4801_v50 = vadd.f32 %v1565_v51, %v4721_v56 }
 0x1ff   : > { %v1166_v35 = vpop.f32.mrf.mxu2 }
 0x200   : > { %v1368_v55 = vpop.f32.mrf.mxu3  ;;  %v1167_v43 = vadd.f32 %v1166_v35, %v1029_v31  ;;  %1604 = vmatmul.bf16.gmra.mxu0 %v4727_v11 }
 0x201   : > { %v1034_v63 = vpop.f32.mrf.mxu1 }
 0x202   : > { %v4804_v0 = vadd.f32 %v1368_v55, %v1167_v43  ;;  %v1675_v43 = vld [vmem:[#allocation2 + $0x79] sm:$0xff] }
 0x204   : > { %2032 = vmatmul.bf16.gmra.mxu2 %v1935_v1 }
 0x205   : > { %2267 = vmatmul.bf16.gmra.mxu3 %v2170_v2  ;;  %v1567_v56 = vpop.f32.mrf.mxu0 }
 0x206   : > { %v4807_v7 = vadd.f32 %v1567_v56, %v4725_v10  ;;  %v2145_v56 = vld [vmem:[#allocation2 + $0x98] sm:$0xff] }
 0x207   : > { %v1169_v16 = vpop.f32.mrf.mxu2 }
 0x208   : > { %v1371_v49 = vpop.f32.mrf.mxu3  ;;  %v1170_v11 = vadd.f32 %v1169_v16, %v1032_v46  ;;  %v1936_v46 = vpack.c.bf16 %v1908_v61, %v1907_v33 }
 0x209   : > { %v1037_v20 = vpop.f32.mrf.mxu1 }
 0x20a   : > { %v4809_v22 = vadd.f32 %v1371_v49, %v1170_v11  ;;  %v2144_v49 = vld [vmem:[#allocation2 + $0x90] sm:$0xff] }
 0x20b   : > { %v2172_v21 = vpack.c.bf16 %v2145_v56, %v2144_v49  ;;  %v4008_v56 = vld [vmem:[#allocation8 + $0x1d0] sm:$0xff] }
 0x20c   : > { %1803 = vmatmul.bf16.gmra.mxu1 %v4811_v23 }
 0x20d   : > { %v1570_v26 = vpop.f32.mrf.mxu0 }
 0x20e   : > { %v4815_v30 = vadd.f32 %v1570_v26, %v4731_v19  ;;  %v4010_v26 = vld [vmem:[#allocation8 + $0x1e0] sm:$0xff] }
 0x20f   : > { %v1171_v31 = vpop.f32.mrf.mxu2  ;;  %2486 = vmatpush.bf16.msra.mxu0 %v4010_v26  ;;  %v1679_v26 = vld [vmem:[#allocation2 + $0xa9] sm:$0xff] }
 0x210   : > { %v1373_v10 = vpop.f32.mrf.mxu3  ;;  %v1172_v36 = vadd.f32 %v1171_v31, %v1034_v63  ;;  %1609 = vmatmul.bf16.gmra.mxu0 %v4737_v40  ;;  %v4825_v40 = vpack.c.bf16 %v1676_v44, %v1675_v43  ;;  %v4018_v31 = vld [vmem:[#allocation8 + $0x220] sm:$0xff]  ;;  %v1912_v44 = vld [vmem:[#allocation2 + $0x9a] sm:$0xff] }
 0x211   : > { %v1039_v38 = vpop.f32.mrf.mxu1  ;;  %2720 = vmatpush.bf16.msra.mxu1 %v4018_v31  ;;  %v4007_v31 = vld [vmem:[#allocation8 + $0x1c8] sm:$0xff] }
 0x212   : > { %v4818_v42 = vadd.f32 %v1373_v10, %v1172_v36 }
 0x214   : > { %2037 = vmatmul.bf16.gmra.mxu2 %v1936_v46  ;;  %v4839_v46 = vpack.c.bf16 %v1678_v34, %v1677_v37  ;;  %v4006_v34 = vld [vmem:[#allocation8 + $0x1c0] sm:$0xff] }
 0x215   : > { %2272 = vmatmul.bf16.gmra.mxu3 %v2171_v3  ;;  %v1572_v51 = vpop.f32.mrf.mxu0 }
 0x216   : > { %v4821_v19 = vadd.f32 %v1572_v51, %v4735_v39  ;;  %v1909_v39 = vld [vmem:[#allocation2 + $0x7a] sm:$0xff] }
 0x217   : > { %v1174_v35 = vpop.f32.mrf.mxu2 }
 0x218   : > { %v1376_v55 = vpop.f32.mrf.mxu3  ;;  %v1175_v58 = vadd.f32 %v1174_v35, %v1037_v20  ;;  %v1937_v20 = vpack.c.bf16 %v1910_v6, %v1909_v39 }
 0x219   : > { %v1042_v59 = vpop.f32.mrf.mxu1 }
 0x21a   : > { %v4823_v62 = vadd.f32 %v1376_v55, %v1175_v58  ;;  %v1911_v55 = vld [vmem:[#allocation2 + $0x92] sm:$0xff] }
 0x21b   : > { %v2147_v58 = vld [vmem:[#allocation2 + $0xb0] sm:$0xff]  ;;  %v1938_v39 = vpack.c.bf16 %v1912_v44, %v1911_v55  ;;  %v2148_v55 = vld [vmem:[#allocation2 + $0xc0] sm:$0xff] }
 0x21c   : > { %1808 = vmatmul.bf16.gmra.mxu1 %v4825_v40 }
 0x21d   : > { %v1575_v63 = vpop.f32.mrf.mxu0 }
 0x21e   : > { %v4829_v1 = vadd.f32 %v1575_v63, %v4741_v53 }
 0x21f   : > { %v1176_v2 = vpop.f32.mrf.mxu2 }
 0x220   : > { %v1378_v4 = vpop.f32.mrf.mxu3  ;;  %v1177_v16 = vadd.f32 %v1176_v2, %v1039_v38  ;;  %1614 = vmatmul.bf16.gmra.mxu0 %v4747_v13  ;;  %v4009_v2 = vld [vmem:[#allocation8 + $0x1d8] sm:$0xff] }
 0x221   : > { %v1044_v27 = vpop.f32.mrf.mxu1  ;;  %2487 = vmatpush.bf16.msra.mxu0 %v4009_v2  ;;  %v4017_v2 = vld [vmem:[#allocation8 + $0x218] sm:$0xff] }
 0x222   : > { %v4832_v11 = vadd.f32 %v1378_v4, %v1177_v16  ;;  %2721 = vmatpush.bf16.msra.mxu1 %v4017_v2  ;;  %v4029_v2 = vld [vmem:[#allocation9 + $0x38] sm:$0xff] }
 0x223   : > { %2990 = vmatpush.bf16.msra.mxu2 %v4029_v2 }
 0x224   : > { %2042 = vmatmul.bf16.gmra.mxu2 %v1937_v20 }
 0x225   : > { %2277 = vmatmul.bf16.gmra.mxu3 %v2172_v21  ;;  %v1577_v53 = vpop.f32.mrf.mxu0  ;;  %2488 = vmatpush.bf16.msra.mxu0 %v4008_v56  ;;  %v1682_v56 = vld [vmem:[#allocation2 + $0xc9] sm:$0xff] }
 0x226   : > { %v4835_v10 = vadd.f32 %v1577_v53, %v4745_v12 }
 0x227   : > { %v1179_v33 = vpop.f32.mrf.mxu2 }
 0x228   : > { %v1381_v61 = vpop.f32.mrf.mxu3  ;;  %v1180_v13 = vadd.f32 %v1179_v33, %v1042_v59  ;;  %v2146_v59 = vld [vmem:[#allocation2 + $0xa8] sm:$0xff] }
 0x229   : > { %v1047_v36 = vpop.f32.mrf.mxu1  ;;  %v2173_v6 = vpack.c.bf16 %v2147_v58, %v2146_v59  ;;  %2489 = vmatpush.bf16.msra.mxu0 %v4007_v31 }
 0x22a   : > { %v4837_v38 = vadd.f32 %v1381_v61, %v1180_v13 }
 0x22c   : > { %1813 = vmatmul.bf16.gmra.mxu1 %v4839_v46 }
 0x22d   : > { %v1580_v3 = vpop.f32.mrf.mxu0  ;;  %2490 = vmatpush.bf16.msra.mxu0 %v4006_v34 }
 0x22e   : > { %v4843_v51 = vadd.f32 %v1580_v3, %v4751_v28  ;;  %v1913_v3 = vld [vmem:[#allocation2 + $0xaa] sm:$0xff] }
 0x22f   : > { %v1181_v35 = vpop.f32.mrf.mxu2 }
 0x230   : > { %v1383_v12 = vpop.f32.mrf.mxu3  ;;  %v1182_v43 = vadd.f32 %v1181_v35, %v1044_v27  ;;  %1619 = vmatmul.bf16.gmra.mxu0 %v4757_v54  ;;  %v1680_v27 = vld [vmem:[#allocation2 + $0xb1] sm:$0xff] }
 0x231   : > { %v1049_v63 = vpop.f32.mrf.mxu1  ;;  %v4853_v33 = vpack.c.bf16 %v1680_v27, %v1679_v26  ;;  %v1914_v35 = vld [vmem:[#allocation2 + $0xb2] sm:$0xff]  ;;  %v1681_v27 = vld [vmem:[#allocation2 + $0xc1] sm:$0xff] }
 0x232   : > { %v4846_v4 = vadd.f32 %v1383_v12, %v1182_v43  ;;  %v1939_v43 = vpack.c.bf16 %v1914_v35, %v1913_v3  ;;  %v4867_v26 = vpack.c.bf16 %v1682_v56, %v1681_v27  ;;  %v2151_v3 = vld [vmem:[#allocation2 + $0xe0] sm:$0xff]  ;;  %v1122_v27 = vadd.f32 %v4702_v8, %v4695_v57 }
 0x233   : > { %v1684_v56 = vld [vmem:[#allocation2 + $0xe1] sm:$0xff] }
 0x234   : > { %2047 = vmatmul.bf16.gmra.mxu2 %v1938_v39 }
 0x235   : > { %2282 = vmatmul.bf16.gmra.mxu3 %v2173_v6  ;;  %v1582_v28 = vpop.f32.mrf.mxu0 }
 0x236   : > { %v4849_v16 = vadd.f32 %v1582_v28, %v4755_v52 }
 0x237   : > { %v1184_v49 = vpop.f32.mrf.mxu2 }
 0x238   : > { %v1386_v20 = vpop.f32.mrf.mxu3  ;;  %v1185_v54 = vadd.f32 %v1184_v49, %v1047_v36  ;;  %v2149_v36 = vld [vmem:[#allocation2 + $0xc8] sm:$0xff]  ;;  %v1463_v49 = vld [vmem:[#allocation2 + $0x180] sm:$0xff] }
 0x239   : > { %v1052_v21 = vpop.f32.mrf.mxu1  ;;  %v2174_v59 = vpack.c.bf16 %v2149_v36, %v2148_v55  ;;  %v2150_v36 = vld [vmem:[#allocation2 + $0xd8] sm:$0xff] }
 0x23a   : > { %v4851_v53 = vadd.f32 %v1386_v20, %v1185_v54 }
 0x23c   : > { %1818 = vmatmul.bf16.gmra.mxu1 %v4853_v33 }
 0x23d   : > { %v1585_v61 = vpop.f32.mrf.mxu0 }
 0x23e   : > { %v4857_v52 = vadd.f32 %v1585_v61, %v4761_v5 }
 0x23f   : > { %v1186_v13 = vpop.f32.mrf.mxu2 }
 0x240   : > { %v1388_v37 = vpop.f32.mrf.mxu3  ;;  %v1187_v12 = vadd.f32 %v1186_v13, %v1049_v63  ;;  %1624 = vmatmul.bf16.gmra.mxu0 %v4767_v25  ;;  %v1464_v25 = vld [vmem:[#allocation2 + $0x188] sm:$0xff] }
 0x241   : > { %v1054_v44 = vpop.f32.mrf.mxu1  ;;  %v4869_v31 = vpack.c.bf16 %v1464_v25, %v1463_v49  ;;  %v1683_v25 = vld [vmem:[#allocation2 + $0xd9] sm:$0xff] }
 0x242   : > { %v4860_v58 = vadd.f32 %v1388_v37, %v1187_v12  ;;  %v1915_v37 = vld [vmem:[#allocation2 + $0xc2] sm:$0xff] }
 0x244   : > { %2052 = vmatmul.bf16.gmra.mxu2 %v1939_v43 }
 0x245   : > { %2287 = vmatmul.bf16.gmra.mxu3 %v2174_v59  ;;  %v1587_v5 = vpop.f32.mrf.mxu0  ;;  %v2175_v59 = vpack.c.bf16 %v2151_v3, %v2150_v36  ;;  %v1918_v36 = vld [vmem:[#allocation2 + $0xe2] sm:$0xff] }
 0x246   : > { %v4863_v39 = vadd.f32 %v1587_v5, %v4765_v24 }
 0x247   : > { %v1189_v6 = vpop.f32.mrf.mxu2 }
 0x248   : > { %v1391_v28 = vpop.f32.mrf.mxu3  ;;  %v1190_v63 = vadd.f32 %v1189_v6, %v1052_v21  ;;  %v1916_v21 = vld [vmem:[#allocation2 + $0xca] sm:$0xff] }
 0x249   : > { %v1057_v20 = vpop.f32.mrf.mxu1  ;;  %v4878_v43 = vpack.c.bf16 %v1916_v21, %v1915_v37  ;;  %v1402_v37 = vadd.f32 %v4704_v9, %v1122_v27 }
 0x24a   : > { %v4865_v54 = vadd.f32 %v1391_v28, %v1190_v63 }
 0x24b   : > { %v1636_v57 = vadd.f32 %v4779_v18, %v1402_v37 }
 0x24c   : > { %1823 = vmatmul.bf16.gmra.mxu1 %v4867_v26 }
 0x24d   : > { %v1590_v61 = vpop.f32.mrf.mxu0 }
 0x24e   : > { %v4873_v24 = vadd.f32 %v1590_v61, %v4771_v41  ;;  %v4037_v41 = vld [vmem:[#allocation11 + $0x38] sm:$0xff] }
 0x24f   : > { %v1191_v34 = vpop.f32.mrf.mxu2  ;;  %3143 = vmatpush.bf16.msra.mxu3 %v4037_v41 }
 0x250   : > { %v1393_v13 = vpop.f32.mrf.mxu3  ;;  %v1192_v35 = vadd.f32 %v1191_v34, %v1054_v44  ;;  %1629 = vmatmul.bf16.gmra.mxu0 %v4869_v31 }
 0x251   : > { %v1059_v12 = vpop.f32.mrf.mxu1 }
 0x252   : > { %v4876_v55 = vadd.f32 %v1393_v13, %v1192_v35  ;;  %v4889_v13 = vpack.c.bf16 %v1684_v56, %v1683_v25  ;;  %v1917_v35 = vld [vmem:[#allocation2 + $0xda] sm:$0xff]  ;;  %v1685_v25 = vld [vmem:[#allocation2 + $0xf1] sm:$0xff] }
 0x254   : > { %2057 = vmatmul.bf16.gmra.mxu2 %v4878_v43 }
 0x255   : > { %2292 = vmatmul.bf16.gmra.mxu3 %v2175_v59  ;;  %v1592_v5 = vpop.f32.mrf.mxu0  ;;  %v2153_v59 = vld [vmem:[#allocation2 + $0xf8] sm:$0xff] }
 0x256   : > { %v4882_v6 = vadd.f32 %v1592_v5, %v4777_v60  ;;  %v4900_v5 = vpack.c.bf16 %v1918_v36, %v1917_v35  ;;  %v1919_v36 = vld [vmem:[#allocation2 + $0xf2] sm:$0xff] }
 0x257   : > { %v1194_v44 = vpop.f32.mrf.mxu2 }
 0x258   : > { %v1396_v28 = vpop.f32.mrf.mxu3  ;;  %v1195_v63 = vadd.f32 %v1194_v44, %v1057_v20 }
 0x259   : > { %v1789_v49 = vpop.f32.mrf.mxu1 }
 0x25a   : > { %v4886_v61 = vadd.f32 %v1396_v28, %v1195_v63  ;;  %v1869_v34 = vadd.f32 %v1789_v49, %v4774_v47  ;;  %v2152_v47 = vld [vmem:[#allocation2 + $0xf0] sm:$0xff] }
 0x25b   : > { %v2176_v9 = vpack.c.bf16 %v2153_v59, %v2152_v47  ;;  %v1920_v59 = vld [vmem:[#allocation2 + $0xfa] sm:$0xff] }
 0x25c   : > { %1828 = vmatmul.bf16.gmra.mxu1 %v4889_v13 }
 0x25d   : > { %v1595_v60 = vpop.f32.mrf.mxu0 }
 0x25e   : > { %v4894_v21 = vadd.f32 %v1595_v60, %v4781_v14  ;;  %v4016_v14 = vld [vmem:[#allocation8 + $0x210] sm:$0xff] }
 0x25f   : > { %v1196_v20 = vpop.f32.mrf.mxu2  ;;  %2722 = vmatpush.bf16.msra.mxu1 %v4016_v14 }
 0x260   : > { %v1398_v3 = vpop.f32.mrf.mxu3  ;;  %v1197_v8 = vadd.f32 %v1196_v20, %v1059_v12  ;;  %2491 = vmatmul.bf16.vlgmr.msra.gmra.mxu0 %v4783_v15  ;;  %v1686_v15 = vld [vmem:[#allocation2 + $0xf9] sm:$0xff] }
 0x261   : > { %v1791_v2 = vpop.f32.mrf.mxu1  ;;  %v4909_v37 = vpack.c.bf16 %v1686_v15, %v1685_v25  ;;  %v1688_v15 = vld [vmem:[#allocation2 + $0x111] sm:$0xff]  ;;  %v1687_v25 = vld [vmem:[#allocation2 + $0x109] sm:$0xff] }
 0x262   : > { %v4898_v41 = vadd.f32 %v1398_v3, %v1197_v8  ;;  %v1870_v44 = vadd.f32 %v1791_v2, %v1636_v57  ;;  %v2155_v57 = vld [vmem:[#allocation2 + $0x110] sm:$0xff]  ;;  %v2154_v8 = vld [vmem:[#allocation2 + $0x108] sm:$0xff] }
 0x264   : > { %2062 = vmatmul.bf16.gmra.mxu2 %v4900_v5 }
 0x265   : > { %2297 = vmatmul.bf16.gmra.mxu3 %v2176_v9  ;;  %v1597_v28 = vpop.f32.mrf.mxu0  ;;  %v2177_v9 = vpack.c.bf16 %v2155_v57, %v2154_v8  ;;  %v1921_v57 = vld [vmem:[#allocation2 + $0x10a] sm:$0xff] }
 0x266   : > { %v4904_v56 = vadd.f32 %v1597_v28, %v4790_v32  ;;  %v4028_v28 = vld [vmem:[#allocation9 + $0x30] sm:$0xff]  ;;  %v2157_v8 = vld [vmem:[#allocation2 + $0x128] sm:$0xff] }
 0x267   : > { %v2023_v18 = vpop.f32.mrf.mxu2  ;;  %2991 = vmatpush.bf16.msra.mxu2 %v4028_v28 }
 0x268   : > { %v2258_v12 = vpop.f32.mrf.mxu3  ;;  %v2103_v63 = vadd.f32 %v2023_v18, %v1869_v34 }
 0x269   : > { %v1794_v49 = vpop.f32.mrf.mxu1 }
 0x26a   : > { %v4906_v27 = vadd.f32 %v2258_v12, %v2103_v63  ;;  %v1871_v60 = vadd.f32 %v1794_v49, %v4787_v17  ;;  %v4918_v17 = vpack.c.bf16 %v1920_v59, %v1919_v36 }
 0x26c   : > { %1833 = vmatmul.bf16.gmra.mxu1 %v4909_v37 }
 0x26d   : > { %v1600_v20 = vpop.f32.mrf.mxu0 }
 0x26e   : > { %v4913_v3 = vadd.f32 %v1600_v20, %v4795_v48  ;;  %v4036_v48 = vld [vmem:[#allocation11 + $0x30] sm:$0xff] }
 0x26f   : > { %v2025_v32 = vpop.f32.mrf.mxu2  ;;  %3144 = vmatpush.bf16.msra.mxu3 %v4036_v48 }
 0x270   : > { %v2260_v35 = vpop.f32.mrf.mxu3  ;;  %v2104_v34 = vadd.f32 %v2025_v32, %v1870_v44  ;;  %2496 = vmatmul.bf16.gmra.mxu0 %v4797_v45  ;;  %v4928_v32 = vpack.c.bf16 %v1688_v15, %v1687_v25  ;;  %v1690_v15 = vld [vmem:[#allocation2 + $0x129] sm:$0xff]  ;;  %v1689_v25 = vld [vmem:[#allocation2 + $0x121] sm:$0xff] }
 0x271   : > { %v1796_v47 = vpop.f32.mrf.mxu1 }
 0x272   : > { %v4916_v2 = vadd.f32 %v2260_v35, %v2104_v34  ;;  %v1872_v14 = vadd.f32 %v1796_v47, %v4793_v29  ;;  %v1922_v34 = vld [vmem:[#allocation2 + $0x112] sm:$0xff]  ;;  %v2156_v47 = vld [vmem:[#allocation2 + $0x120] sm:$0xff] }
 0x273   : > { %v2178_v48 = vpack.c.bf16 %v2157_v8, %v2156_v47  ;;  %v1923_v8 = vld [vmem:[#allocation2 + $0x122] sm:$0xff] }
 0x274   : > { %2067 = vmatmul.bf16.gmra.mxu2 %v4918_v17  ;;  %v2159_v47 = vld [vmem:[#allocation2 + $0x140] sm:$0xff] }
 0x275   : > { %2302 = vmatmul.bf16.gmra.mxu3 %v2177_v9  ;;  %v1602_v18 = vpop.f32.mrf.mxu0 }
 0x276   : > { %v4923_v44 = vadd.f32 %v1602_v18, %v4804_v0 }
 0x277   : > { %v2028_v45 = vpop.f32.mrf.mxu2 }
 0x278   : > { %v2263_v12 = vpop.f32.mrf.mxu3  ;;  %v2105_v63 = vadd.f32 %v2028_v45, %v1871_v60 }
 0x279   : > { %v1799_v49 = vpop.f32.mrf.mxu1 }
 0x27a   : > { %v4925_v20 = vadd.f32 %v2263_v12, %v2105_v63  ;;  %v1873_v29 = vadd.f32 %v1799_v49, %v4801_v50  ;;  %v4937_v50 = vpack.c.bf16 %v1922_v34, %v1921_v57 }
 0x27c   : > { %1838 = vmatmul.bf16.gmra.mxu1 %v4928_v32 }
 0x27d   : > { %v1605_v35 = vpop.f32.mrf.mxu0 }
 0x27e   : > { %v4932_v36 = vadd.f32 %v1605_v35, %v4809_v22  ;;  %v4015_v22 = vld [vmem:[#allocation8 + $0x208] sm:$0xff] }
 0x27f   : > { %v2030_v0 = vpop.f32.mrf.mxu2  ;;  %2723 = vmatpush.bf16.msra.mxu1 %v4015_v22 }
 0x280   : > { %v2265_v59 = vpop.f32.mrf.mxu3  ;;  %v2106_v60 = vadd.f32 %v2030_v0, %v1872_v14  ;;  %2501 = vmatmul.bf16.gmra.mxu0 %v4811_v23 }
 0x281   : > { %v1801_v9 = vpop.f32.mrf.mxu1 }
 0x282   : > { %v4935_v28 = vadd.f32 %v2265_v59, %v2106_v60  ;;  %v1874_v18 = vadd.f32 %v1801_v9, %v4807_v7  ;;  %v4947_v7 = vpack.c.bf16 %v1690_v15, %v1689_v25  ;;  %v1924_v60 = vld [vmem:[#allocation2 + $0x12a] sm:$0xff]  ;;  %v2158_v9 = vld [vmem:[#allocation2 + $0x138] sm:$0xff] }
 0x284   : > { %2072 = vmatmul.bf16.gmra.mxu2 %v4937_v50 }
 0x285   : > { %2307 = vmatmul.bf16.gmra.mxu3 %v2178_v48  ;;  %v1607_v45 = vpop.f32.mrf.mxu0 }
 0x286   : > { %v4942_v12 = vadd.f32 %v1607_v45, %v4818_v42  ;;  %v2179_v45 = vpack.c.bf16 %v2159_v47, %v2158_v9  ;;  %v1925_v9 = vld [vmem:[#allocation2 + $0x13a] sm:$0xff] }
 0x287   : > { %v2033_v14 = vpop.f32.mrf.mxu2 }
 0x288   : > { %v2268_v23 = vpop.f32.mrf.mxu3  ;;  %v2107_v63 = vadd.f32 %v2033_v14, %v1873_v29 }
 0x289   : > { %v1804_v49 = vpop.f32.mrf.mxu1 }
 0x28a   : > { %v4944_v35 = vadd.f32 %v2268_v23, %v2107_v63  ;;  %v1875_v0 = vadd.f32 %v1804_v49, %v4815_v30  ;;  %v4956_v30 = vpack.c.bf16 %v1924_v60, %v1923_v8  ;;  %v4027_v23 = vld [vmem:[#allocation9 + $0x28] sm:$0xff]  ;;  %v1692_v49 = vld [vmem:[#allocation2 + $0x141] sm:$0xff] }
 0x28b   : > { %2992 = vmatpush.bf16.msra.mxu2 %v4027_v23  ;;  %v2160_v23 = vld [vmem:[#allocation2 + $0x150] sm:$0xff] }
 0x28c   : > { %1843 = vmatmul.bf16.gmra.mxu1 %v4947_v7 }
 0x28d   : > { %v1610_v59 = vpop.f32.mrf.mxu0 }
 0x28e   : > { %v4951_v57 = vadd.f32 %v1610_v59, %v4823_v62  ;;  %v4035_v62 = vld [vmem:[#allocation11 + $0x28] sm:$0xff] }
 0x28f   : > { %v2035_v42 = vpop.f32.mrf.mxu2  ;;  %3145 = vmatpush.bf16.msra.mxu3 %v4035_v62 }
 0x290   : > { %v2270_v34 = vpop.f32.mrf.mxu3  ;;  %v2108_v29 = vadd.f32 %v2035_v42, %v1874_v18  ;;  %2506 = vmatmul.bf16.gmra.mxu0 %v4825_v40  ;;  %v1691_v42 = vld [vmem:[#allocation2 + $0x139] sm:$0xff] }
 0x291   : > { %v1806_v48 = vpop.f32.mrf.mxu1  ;;  %v4966_v8 = vpack.c.bf16 %v1692_v49, %v1691_v42 }
 0x292   : > { %v4954_v22 = vadd.f32 %v2270_v34, %v2108_v29  ;;  %v1876_v14 = vadd.f32 %v1806_v48, %v4821_v19  ;;  %v1926_v48 = vld [vmem:[#allocation2 + $0x142] sm:$0xff] }
 0x294   : > { %2077 = vmatmul.bf16.gmra.mxu2 %v4956_v30 }
 0x295   : > { %2312 = vmatmul.bf16.gmra.mxu3 %v2179_v45  ;;  %v1612_v15 = vpop.f32.mrf.mxu0  ;;  %v2161_v45 = vld [vmem:[#allocation2 + $0x158] sm:$0xff] }
 0x296   : > { %v4961_v18 = vadd.f32 %v1612_v15, %v4832_v11 }
 0x297   : > { %v2038_v40 = vpop.f32.mrf.mxu2 }
 0x298   : > { %v2273_v63 = vpop.f32.mrf.mxu3  ;;  %v2109_v25 = vadd.f32 %v2038_v40, %v1875_v0  ;;  %v2180_v40 = vpack.c.bf16 %v2161_v45, %v2160_v23  ;;  %v1927_v23 = vld [vmem:[#allocation2 + $0x152] sm:$0xff] }
 0x299   : > { %v1809_v59 = vpop.f32.mrf.mxu1 }
 0x29a   : > { %v4963_v34 = vadd.f32 %v2273_v63, %v2109_v25  ;;  %v1877_v19 = vadd.f32 %v1809_v59, %v4829_v1  ;;  %v4975_v1 = vpack.c.bf16 %v1926_v48, %v1925_v9  ;;  %v1694_v59 = vld [vmem:[#allocation2 + $0x159] sm:$0xff] }
 0x29c   : > { %1848 = vmatmul.bf16.gmra.mxu1 %v4966_v8 }
 0x29d   : > { %v1615_v60 = vpop.f32.mrf.mxu0 }
 0x29e   : > { %v4970_v47 = vadd.f32 %v1615_v60, %v4837_v38  ;;  %v4014_v38 = vld [vmem:[#allocation8 + $0x200] sm:$0xff] }
 0x29f   : > { %v2040_v11 = vpop.f32.mrf.mxu2  ;;  %2724 = vmatpush.bf16.msra.mxu1 %v4014_v38 }
 0x2a0   : > { %v2275_v29 = vpop.f32.mrf.mxu3  ;;  %v2110_v0 = vadd.f32 %v2040_v11, %v1876_v14  ;;  %2511 = vmatmul.bf16.gmra.mxu0 %v4839_v46  ;;  %v1693_v11 = vld [vmem:[#allocation2 + $0x151] sm:$0xff] }
 0x2a1   : > { %v1811_v62 = vpop.f32.mrf.mxu1  ;;  %v4987_v9 = vpack.c.bf16 %v1694_v59, %v1693_v11  ;;  %v1696_v11 = vld [vmem:[#allocation2 + $0x171] sm:$0xff] }
 0x2a2   : > { %v4973_v15 = vadd.f32 %v2275_v29, %v2110_v0  ;;  %v4978_v63 = vadd.f32 %v1811_v62, %v4835_v10  ;;  %v2163_v62 = vld [vmem:[#allocation2 + $0x170] sm:$0xff] }
 0x2a4   : > { %2082 = vmatmul.bf16.gmra.mxu2 %v4975_v1 }
 0x2a5   : > { %2317 = vmatmul.bf16.gmra.mxu3 %v2180_v40  ;;  %v1617_v49 = vpop.f32.mrf.mxu0  ;;  %v2162_v40 = vld [vmem:[#allocation2 + $0x168] sm:$0xff] }
 0x2a6   : > { %v4982_v25 = vadd.f32 %v1617_v49, %v4846_v4  ;;  %v2181_v49 = vpack.c.bf16 %v2163_v62, %v2162_v40 }
 0x2a7   : > { %v2043_v46 = vpop.f32.mrf.mxu2 }
 0x2a8   : > { %v2278_v14 = vpop.f32.mrf.mxu3  ;;  %v2111_v42 = vadd.f32 %v2043_v46, %v1877_v19  ;;  %v1928_v19 = vld [vmem:[#allocation2 + $0x15a] sm:$0xff] }
 0x2a9   : > { %v1814_v60 = vpop.f32.mrf.mxu1 }
 0x2aa   : > { %v4984_v29 = vadd.f32 %v2278_v14, %v2111_v42  ;;  %v1879_v10 = vadd.f32 %v1814_v60, %v4843_v51  ;;  %v4998_v51 = vpack.c.bf16 %v1928_v19, %v1927_v23  ;;  %v4026_v14 = vld [vmem:[#allocation9 + $0x20] sm:$0xff] }
 0x2ab   : > { %2993 = vmatpush.bf16.msra.mxu2 %v4026_v14  ;;  %v1695_v19 = vld [vmem:[#allocation2 + $0x169] sm:$0xff] }
 0x2ac   : > { %1853 = vmatmul.bf16.gmra.mxu1 %v4987_v9  ;;  %v5010_v40 = vpack.c.bf16 %v1696_v11, %v1695_v19  ;;  %v1698_v19 = vld [vmem:[#allocation2 + $0x189] sm:$0xff] }
 0x2ad   : > { %v1620_v48 = vpop.f32.mrf.mxu0 }
 0x2ae   : > { %v4991_v45 = vadd.f32 %v1620_v48, %v4851_v53  ;;  %v4034_v53 = vld [vmem:[#allocation11 + $0x20] sm:$0xff] }
 0x2af   : > { %v4993_v4 = vpop.f32.mrf.mxu2  ;;  %3146 = vmatpush.bf16.msra.mxu3 %v4034_v53  ;;  %v1929_v53 = vld [vmem:[#allocation2 + $0x16a] sm:$0xff] }
 0x2b0   : > { %v4995_v0 = vpop.f32.mrf.mxu3  ;;  %2516 = vmatmul.bf16.gmra.mxu0 %v4853_v33 }
 0x2b1   : > { %v1816_v38 = vpop.f32.mrf.mxu1 }
 0x2b2   : > { %v5001_v46 = vadd.f32 %v1816_v38, %v4849_v16 }
 0x2b4   : > { %2087 = vmatmul.bf16.gmra.mxu2 %v4998_v51 }
 0x2b5   : > { %2322 = vmatmul.bf16.gmra.mxu3 %v2181_v49  ;;  %v1622_v59 = vpop.f32.mrf.mxu0 }
 0x2b6   : > { %v5005_v42 = vadd.f32 %v1622_v59, %v4860_v58 }
 0x2b7   : > { %v2048_v33 = vpop.f32.mrf.mxu2 }
 0x2b8   : > { %v2283_v60 = vpop.f32.mrf.mxu3  ;;  %v2113_v48 = vadd.f32 %v2048_v33, %v1879_v10  ;;  %v1930_v10 = vld [vmem:[#allocation2 + $0x172] sm:$0xff] }
 0x2b9   : > { %v1819_v23 = vpop.f32.mrf.mxu1  ;;  %v5021_v33 = vpack.c.bf16 %v1930_v10, %v1929_v53 }
 0x2ba   : > { %v5007_v62 = vadd.f32 %v2283_v60, %v2113_v48  ;;  %v1881_v16 = vadd.f32 %v1819_v23, %v4857_v52  ;;  %v1697_v23 = vld [vmem:[#allocation2 + $0x181] sm:$0xff] }
 0x2bc   : > { %1858 = vmatmul.bf16.gmra.mxu1 %v5010_v40 }
 0x2bd   : > { %v1625_v38 = vpop.f32.mrf.mxu0 }
 0x2be   : > { %v5014_v49 = vadd.f32 %v1625_v38, %v4865_v54 }
 0x2bf   : > { %v5016_v58 = vpop.f32.mrf.mxu2 }
 0x2c0   : > { %v5018_v14 = vpop.f32.mrf.mxu3  ;;  %2521 = vmatmul.bf16.gmra.mxu0 %v4867_v26 }
 0x2c1   : > { %5445 = vst [vmem:[#allocation17_spill] sm:$0xff] %v5018_v14  ;;  %v1821_v59 = vpop.f32.mrf.mxu1 }
 0x2c2   : > { %v5024_v52 = vadd.f32 %v1821_v59, %v4863_v39  ;;  %v5034_v39 = vpack.c.bf16 %v1698_v19, %v1697_v23  ;;  %v4025_v19 = vld [vmem:[#allocation9 + $0x18] sm:$0xff] }
 0x2c3   : > { %2994 = vmatpush.bf16.msra.mxu2 %v4025_v19 }
 0x2c4   : > { %5446 = vst [vmem:[#allocation18_spill] sm:$0xff] %v5024_v52  ;;  %2092 = vmatmul.bf16.gmra.mxu2 %v5021_v33  ;;  %v1932_v52 = vld [vmem:[#allocation2 + $0x18a] sm:$0xff] }
 0x2c5   : > { %2327 = vmatmul.bf16.gmra.mxu3 %v4869_v31  ;;  %v1627_v54 = vpop.f32.mrf.mxu0 }
 0x2c6   : > { %v5029_v60 = vadd.f32 %v1627_v54, %v4876_v55  ;;  %v1931_v54 = vld [vmem:[#allocation2 + $0x182] sm:$0xff] }
 0x2c7   : > { %v2053_v11 = vpop.f32.mrf.mxu2 }
 0x2c8   : > { %v2288_v48 = vpop.f32.mrf.mxu3  ;;  %v2115_v38 = vadd.f32 %v2053_v11, %v1881_v16  ;;  %v4134_v16 = vld [vmem:[#allocation2] sm:$0xff] }
 0x2c9   : > { %v1824_v26 = vpop.f32.mrf.mxu1  ;;  %v2183_v11 = vpack.c.bf16 %v4134_v16, %v4134_v16  ;;  %v2604_v16 = vld [vmem:[#allocation2 + $0x32] sm:$0xff] }
 0x2ca   : > { %v5031_v14 = vadd.f32 %v2288_v48, %v2115_v38  ;;  %v1883_v53 = vadd.f32 %v1824_v26, %v4873_v24  ;;  %v5045_v24 = vpack.c.bf16 %v1932_v52, %v1931_v54  ;;  %v4033_v38 = vld [vmem:[#allocation11 + $0x18] sm:$0xff] }
 0x2cb   : > { %3147 = vmatpush.bf16.msra.mxu3 %v4033_v38 }
 0x2cc   : > { %5447 = vst [vmem:[#allocation19_spill] sm:$0xff] %v5031_v14  ;;  %1863 = vmatmul.bf16.gmra.mxu1 %v5034_v39 }
 0x2cd   : > { %v1630_v10 = vpop.f32.mrf.mxu0 }
 0x2ce   : > { %v5038_v31 = vadd.f32 %v1630_v10, %v4886_v61 }
 0x2cf   : > { %v5040_v55 = vpop.f32.mrf.mxu2 }
 0x2d0   : > { %v5042_v59 = vpop.f32.mrf.mxu3  ;;  %2526 = vmatmul.bf16.gmra.mxu0 %v4889_v13 }
 0x2d1   : > { %5448 = vst [vmem:[#allocation20_spill] sm:$0xff] %v5042_v59  ;;  %v1826_v48 = vpop.f32.mrf.mxu1  ;;  %v2605_v59 = vld [vmem:[#allocation2 + $0x3a] sm:$0xff] }
 0x2d2   : > { %v5048_v23 = vadd.f32 %v1826_v48, %v4882_v6  ;;  %v2636_v48 = vpack.c.bf16 %v2605_v59, %v2604_v16  ;;  %v2606_v59 = vld [vmem:[#allocation2 + $0x4a] sm:$0xff] }
 0x2d4   : > { %5449 = vst [vmem:[#allocation21_spill] sm:$0xff] %v5048_v23  ;;  %2097 = vmatmul.bf16.gmra.mxu2 %v5045_v24 }
 0x2d5   : > { %2332 = vmatmul.bf16.gmra.mxu3 %v2183_v11  ;;  %v1632_v61 = vpop.f32.mrf.mxu0 }
 0x2d6   : > { %v5052_v26 = vadd.f32 %v1632_v61, %v4898_v41 }
 0x2d7   : > { %v2058_v13 = vpop.f32.mrf.mxu2 }
 0x2d8   : > { %v2293_v10 = vpop.f32.mrf.mxu3  ;;  %v2117_v52 = vadd.f32 %v2058_v13, %v1883_v53 }
 0x2d9   : > { %v1829_v54 = vpop.f32.mrf.mxu1 }
 0x2da   : > { %v5054_v14 = vadd.f32 %v2293_v10, %v2117_v52  ;;  %v1885_v6 = vadd.f32 %v1829_v54, %v4894_v21  ;;  %v2607_v10 = vld [vmem:[#allocation2 + $0x52] sm:$0xff] }
 0x2db   : > { %v2637_v54 = vpack.c.bf16 %v2607_v10, %v2606_v59 }
 0x2dc   : > { %2725 = vmatmul.bf16.vlgmr.msra.gmra.mxu1 %v2636_v48 }
 0x2dd   : > { %v2492_v23 = vpop.f32.mrf.mxu0 }
 0x2de   : > { %v5058_v11 = vadd.f32 %v2492_v23, %v4906_v27 }
 0x2df   : > { %v5060_v19 = vpop.f32.mrf.mxu2 }
 0x2e0   : > { %v5062_v41 = vpop.f32.mrf.mxu3  ;;  %2531 = vmatmul.bf16.gmra.mxu0 %v4909_v37 }
 0x2e1   : > { %v1831_v38 = vpop.f32.mrf.mxu1 }
 0x2e2   : > { %v5066_v53 = vadd.f32 %v1831_v38, %v4904_v56 }
 0x2e4   : > { %5450 = vst [vmem:[#allocation22_spill] sm:$0xff] %v5066_v53 }
 0x2e5   : > { %v5068_v61 = vpop.f32.mrf.mxu0 }
 0x2e7   : > { %v2063_v13 = vpop.f32.mrf.mxu2 }
 0x2e8   : > { %v2298_v21 = vpop.f32.mrf.mxu3  ;;  %v2119_v16 = vadd.f32 %v2063_v13, %v1885_v6  ;;  %v4024_v13 = vld [vmem:[#allocation9 + $0x10] sm:$0xff] }
 0x2e9   : > { %v1834_v52 = vpop.f32.mrf.mxu1  ;;  %2995 = vmatpush.bf16.msra.mxu2 %v4024_v13 }
 0x2ea   : > { %v5070_v27 = vadd.f32 %v2298_v21, %v2119_v16  ;;  %v1887_v23 = vadd.f32 %v1834_v52, %v4913_v3  ;;  %v4032_v21 = vld [vmem:[#allocation11 + $0x10] sm:$0xff]  ;;  %v2609_v16 = vld [vmem:[#allocation2 + $0x6a] sm:$0xff] }
 0x2eb   : > { %3148 = vmatpush.bf16.msra.mxu3 %v4032_v21 }
 0x2ec   : > { %2730 = vmatmul.bf16.gmra.mxu1 %v2637_v54 }
 0x2ed   : > { %v2497_v48 = vpop.f32.mrf.mxu0 }
 0x2ee   : > { %v5074_v37 = vadd.f32 %v2497_v48, %v4925_v20  ;;  %v2608_v20 = vld [vmem:[#allocation2 + $0x62] sm:$0xff] }
 0x2ef   : > { %v5076_v56 = vpop.f32.mrf.mxu2 }
 0x2f0   : > { %v5078_v38 = vpop.f32.mrf.mxu3  ;;  %2536 = vmatmul.bf16.gmra.mxu0 %v4928_v32 }
 0x2f1   : > { %5451 = vst [vmem:[#allocation23_spill] sm:$0xff] %v5078_v38  ;;  %v1836_v53 = vpop.f32.mrf.mxu1  ;;  %v2638_v38 = vpack.c.bf16 %v2609_v16, %v2608_v20  ;;  %v2610_v20 = vld [vmem:[#allocation2 + $0x7a] sm:$0xff] }
 0x2f2   : > { %v5082_v6 = vadd.f32 %v1836_v53, %v4923_v44 }
 0x2f4   : > { %5452 = vst [vmem:[#allocation24_spill] sm:$0xff] %v5082_v6 }
 0x2f5   : > { %v5084_v3 = vpop.f32.mrf.mxu0 }
 0x2f7   : > { %v2068_v59 = vpop.f32.mrf.mxu2 }
 0x2f8   : > { %v2303_v10 = vpop.f32.mrf.mxu3  ;;  %v2121_v52 = vadd.f32 %v2068_v59, %v1887_v23 }
 0x2f9   : > { %v1839_v54 = vpop.f32.mrf.mxu1 }
 0x2fa   : > { %v5086_v48 = vadd.f32 %v2303_v10, %v2121_v52  ;;  %v1889_v32 = vadd.f32 %v1839_v54, %v4932_v36 }
 0x2fc   : > { %2735 = vmatmul.bf16.gmra.mxu1 %v2638_v38  ;;  %v2611_v38 = vld [vmem:[#allocation2 + $0x82] sm:$0xff] }
 0x2fd   : > { %v2502_v44 = vpop.f32.mrf.mxu0 }
 0x2fe   : > { %v5090_v53 = vadd.f32 %v2502_v44, %v4944_v35  ;;  %v2639_v44 = vpack.c.bf16 %v2611_v38, %v2610_v20  ;;  %v2612_v38 = vld [vmem:[#allocation2 + $0x92] sm:$0xff] }
 0x2ff   : > { %v5092_v13 = vpop.f32.mrf.mxu2 }
 0x300   : > { %v5094_v21 = vpop.f32.mrf.mxu3  ;;  %2541 = vmatmul.bf16.gmra.mxu0 %v4947_v7 }
 0x301   : > { %5453 = vst [vmem:[#allocation25_spill] sm:$0xff] %v5094_v21  ;;  %v1841_v6 = vpop.f32.mrf.mxu1 }
 0x302   : > { %v5098_v23 = vadd.f32 %v1841_v6, %v4942_v12 }
 0x304   : > { %5454 = vst [vmem:[#allocation26_spill] sm:$0xff] %v5098_v23 }
 0x305   : > { %v5100_v59 = vpop.f32.mrf.mxu0 }
 0x307   : > { %v2073_v10 = vpop.f32.mrf.mxu2 }
 0x308   : > { %v2308_v36 = vpop.f32.mrf.mxu3  ;;  %v2123_v16 = vadd.f32 %v2073_v10, %v1889_v32  ;;  %v4023_v10 = vld [vmem:[#allocation9 + $0x8] sm:$0xff] }
 0x309   : > { %v1844_v52 = vpop.f32.mrf.mxu1  ;;  %2996 = vmatpush.bf16.msra.mxu2 %v4023_v10 }
 0x30a   : > { %v5102_v35 = vadd.f32 %v2308_v36, %v2123_v16  ;;  %v1891_v54 = vadd.f32 %v1844_v52, %v4951_v57  ;;  %v4031_v36 = vld [vmem:[#allocation11 + $0x8] sm:$0xff] }
 0x30b   : > { %3149 = vmatpush.bf16.msra.mxu3 %v4031_v36  ;;  %v2613_v16 = vld [vmem:[#allocation2 + $0x9a] sm:$0xff] }
 0x30c   : > { %2740 = vmatmul.bf16.gmra.mxu1 %v2639_v44 }
 0x30d   : > { %v2507_v21 = vpop.f32.mrf.mxu0 }
 0x30e   : > { %v5106_v7 = vadd.f32 %v2507_v21, %v4963_v34 }
 0x30f   : > { %v5108_v12 = vpop.f32.mrf.mxu2 }
 0x310   : > { %v5110_v6 = vpop.f32.mrf.mxu3  ;;  %2546 = vmatmul.bf16.gmra.mxu0 %v4966_v8 }
 0x311   : > { %5455 = vst [vmem:[#allocation27_spill] sm:$0xff] %v5110_v6  ;;  %v1846_v23 = vpop.f32.mrf.mxu1  ;;  %v2640_v6 = vpack.c.bf16 %v2613_v16, %v2612_v38 }
 0x312   : > { %v5114_v32 = vadd.f32 %v1846_v23, %v4961_v18 }
 0x314   : > { %5456 = vst [vmem:[#allocation28_spill] sm:$0xff] %v5114_v32 }
 0x317   : > { %v2078_v57 = vpop.f32.mrf.mxu2 }
 0x318   : > { %v2313_v20 = vpop.f32.mrf.mxu3  ;;  %v2125_v34 = vadd.f32 %v2078_v57, %v1891_v54  ;;  %v2614_v54 = vld [vmem:[#allocation2 + $0xaa] sm:$0xff]  ;;  %v2615_v57 = vld [vmem:[#allocation2 + $0xb2] sm:$0xff] }
 0x319   : > { %v1849_v21 = vpop.f32.mrf.mxu1  ;;  %v2641_v38 = vpack.c.bf16 %v2615_v57, %v2614_v54 }
 0x31a   : > { %v5116_v52 = vadd.f32 %v2313_v20, %v2125_v34  ;;  %v1893_v44 = vadd.f32 %v1849_v21, %v4970_v47 }
 0x31c   : > { %2745 = vmatmul.bf16.gmra.mxu1 %v2640_v6 }
 0x31f   : > { %v5119_v8 = vpop.f32.mrf.mxu2 }
 0x320   : > { %v5121_v18 = vpop.f32.mrf.mxu3  ;;  %2551 = vmatmul.bf16.gmra.mxu0 %v4987_v9 }
 0x321   : > { %v1851_v23 = vpop.f32.mrf.mxu1 }
 0x322   : > { %v5125_v10 = vadd.f32 %v1851_v23, %v4982_v25  ;;  %v4022_v23 = vld [vmem:[#allocation9] sm:$0xff] }
 0x323   : > { %2997 = vmatpush.bf16.msra.mxu2 %v4022_v23 }
 0x327   : > { %v2083_v36 = vpop.f32.mrf.mxu2 }
 0x328   : > { %v2318_v32 = vpop.f32.mrf.mxu3  ;;  %v2127_v20 = vadd.f32 %v2083_v36, %v1893_v44  ;;  %v4030_v44 = vld [vmem:[#allocation11] sm:$0xff] }
 0x329   : > { %v1854_v34 = vpop.f32.mrf.mxu1  ;;  %3150 = vmatpush.bf16.msra.mxu3 %v4030_v44 }
 0x32a   : > { %v5127_v47 = vadd.f32 %v2318_v32, %v2127_v20  ;;  %v1895_v6 = vadd.f32 %v1854_v34, %v4991_v45  ;;  %v4135_v45 = vld [vmem:[%s4565_s17] sm:$0xff] }
 0x32c   : > { %2750 = vmatmul.bf16.gmra.mxu1 %v2641_v38  ;;  %3151 = vmatmul.bf16.vlgmr.msra.gmra.mxu3 %v4135_v45 }
 0x32f   : > { %v5130_v16 = vpop.f32.mrf.mxu2 }
 0x330   : > { %v5132_v9 = vpop.f32.mrf.mxu3  ;;  %2556 = vmatmul.bf16.gmra.mxu0 %v5010_v40 }
 0x331   : > { %v1856_v25 = vpop.f32.mrf.mxu1 }
 0x332   : > { %v5136_v21 = vadd.f32 %v1856_v25, %v5005_v42 }
 0x337   : > { %v2088_v32 = vpop.f32.mrf.mxu2 }
 0x338   : > { %v2323_v36 = vpop.f32.mrf.mxu3  ;;  %v2129_v54 = vadd.f32 %v2088_v32, %v1895_v6  ;;  %v4136_v6 = vld [vmem:[%s4565_s17 + $0x8] sm:$0xff] }
 0x339   : > { %v1859_v57 = vpop.f32.mrf.mxu1 }
 0x33a   : > { %v5139_v20 = vadd.f32 %v2323_v36, %v2129_v54  ;;  %v1897_v34 = vadd.f32 %v1859_v57, %v5014_v49  ;;  %v2400_v36 = vld [vmem:[#allocation2 + $0x199] sm:$0xff]  ;;  %v2401_v49 = vld [vmem:[#allocation2 + $0x1a1] sm:$0xff] }
 0x33b   : > { %v2417_v57 = vpack.c.bf16 %v2401_v49, %v2400_v36  ;;  %v5171_v36 = vld [vmem:[%s5426_s4] ss:$0 sm:$0xff] }
 0x33c   : > { %2755 = vmatmul.bf16.gmra.mxu1 %v4878_v43  ;;  %3156 = vmatmul.bf16.gmra.mxu3 %v4136_v6 }
 0x33f   : > { %v5143_v40 = vpop.f32.mrf.mxu2 }
 0x340   : > { %v5145_v42 = vpop.f32.mrf.mxu3  ;;  %2561 = vmatmul.bf16.gmra.mxu0 %v5034_v39 }
 0x341   : > { %5457 = vst [vmem:[#allocation29_spill] sm:$0xff] %v5145_v42  ;;  %v1861_v38 = vpop.f32.mrf.mxu1  ;;  %v4137_v42 = vld [vmem:[%s4565_s17 + $0x10] sm:$0xff] }
 0x342   : > { %v5149_v25 = vadd.f32 %v1861_v38, %v5029_v60  ;;  %v2509_v38 = vpop.f32.mrf.mxu0 }
 0x344   : > { %5458 = vst [vmem:[#allocation30_spill] sm:$0xff] %v5149_v25 }
 0x347   : > { %v2093_v23 = vpop.f32.mrf.mxu2 }
 0x348   : > { %v2328_v44 = vpop.f32.mrf.mxu3  ;;  %v2131_v32 = vadd.f32 %v2093_v23, %v1897_v34 }
 0x349   : > { %v1864_v45 = vpop.f32.mrf.mxu1 }
 0x34a   : > { %v5152_v43 = vadd.f32 %v2328_v44, %v2131_v32  ;;  %v1899_v54 = vadd.f32 %v1864_v45, %v5038_v31 }
 0x34c   : > { %2760 = vmatmul.bf16.gmra.mxu1 %v4900_v5  ;;  %3161 = vmatmul.bf16.gmra.mxu3 %v4137_v42 }
 0x34f   : > { %v5156_v39 = vpop.f32.mrf.mxu2 }
 0x350   : > { %v5158_v60 = vpop.f32.mrf.mxu3  ;;  %2566 = vmatmul.bf16.gmra.mxu0 %v2417_v57 }
 0x351   : > { %v1866_v25 = vpop.f32.mrf.mxu1 }
 0x352   : > { %v5161_v34 = vadd.f32 %v1866_v25, %v5052_v26  ;;  %v2573_v26 = vadd.f32 %v5068_v61, %v4916_v2  ;;  %v2575_v2 = vadd.f32 %v5084_v3, %v4935_v28 }
 0x357   : > { %v2098_v23 = vpop.f32.mrf.mxu2 }
 0x358   : > { %v2333_v6 = vpop.f32.mrf.mxu3  ;;  %v2133_v44 = vadd.f32 %v2098_v23, %v1899_v54  ;;  %v2512_v23 = vpop.f32.mrf.mxu0 }
 0x359   : > { %v2726_v31 = vpop.f32.mrf.mxu1 }
 0x35a   : > { %v5164_v32 = vadd.f32 %v2333_v6, %v2133_v44  ;;  %v2806_v5 = vadd.f32 %v2726_v31, %v5058_v11 }
 0x35c   : > { %2765 = vmatmul.bf16.gmra.mxu1 %v4918_v17  ;;  %v2842_v49 = vadd.f32 %v5171_v36, %v2806_v5  ;;  %v4138_v17 = vld [vmem:[%s4565_s17 + $0x18] sm:$0xff] }
 0x35d   : > { %3166 = vmatmul.bf16.gmra.mxu3 %v4138_v17 }
 0x35e   : > { %v2874_v54 = vmax.f32 %v2842_v49, 0.0 }
 0x360   : > { %v2514_v61 = vpop.f32.mrf.mxu0 }
 0x361   : > { %v2728_v25 = vpop.f32.mrf.mxu1 }
 0x362   : > { %v2807_v42 = vadd.f32 %v2728_v25, %v2573_v26 }
 0x364   : > { %v2843_v45 = vadd.f32 %v5171_v36, %v2807_v42 }
 0x366   : > { %v2875_v57 = vmax.f32 %v2843_v45, 0.0  ;;  %v4139_v45 = vld [vmem:[%s4565_s17 + $0x20] sm:$0xff] }
 0x368   : > { %v2906_v11 = vpack.c.bf16 %v2875_v57, %v2874_v54 }
 0x369   : > { %v2731_v6 = vpop.f32.mrf.mxu1 }
 0x36a   : > { %2998 = vmatmul.bf16.vlgmr.msra.gmra.mxu2 %v2906_v11  ;;  %v2808_v44 = vadd.f32 %v2731_v6, %v5074_v37  ;;  %v2577_v37 = vadd.f32 %v5100_v59, %v4954_v22 }
 0x36c   : > { %2770 = vmatmul.bf16.gmra.mxu1 %v4937_v50  ;;  %v2844_v5 = vadd.f32 %v5171_v36, %v2808_v44  ;;  %v2517_v50 = vpop.f32.mrf.mxu0 }
 0x36d   : > { %3171 = vmatmul.bf16.gmra.mxu3 %v4139_v45 }
 0x36e   : > { %v2876_v49 = vmax.f32 %v2844_v5, 0.0  ;;  %v4140_v5 = vld [vmem:[%s4565_s17 + $0x28] sm:$0xff] }
 0x371   : > { %v2733_v31 = vpop.f32.mrf.mxu1 }
 0x372   : > { %v2809_v26 = vadd.f32 %v2733_v31, %v2575_v2 }
 0x374   : > { %v2845_v25 = vadd.f32 %v5171_v36, %v2809_v26  ;;  %v2519_v44 = vpop.f32.mrf.mxu0 }
 0x376   : > { %v2877_v42 = vmax.f32 %v2845_v25, 0.0 }
 0x378   : > { %v2907_v54 = vpack.c.bf16 %v2877_v42, %v2876_v49 }
 0x379   : > { %v2736_v57 = vpop.f32.mrf.mxu1 }
 0x37a   : > { %3003 = vmatmul.bf16.gmra.mxu2 %v2907_v54  ;;  %v2810_v28 = vadd.f32 %v2736_v57, %v5090_v53  ;;  %v2579_v53 = vadd.f32 %v2509_v38, %v4973_v15  ;;  %v2580_v15 = vadd.f32 %v2512_v23, %v4984_v29  ;;  %v2114_v29 = vadd.f32 %v5016_v58, %v5001_v46  ;;  %v5459_v23 = vld [vmem:[#allocation17_spill] sm:$0xff] }
 0x37b   : > { %v4143_v46 = vld [vmem:[%s4565_s17 + $0x40] sm:$0xff] }
 0x37c   : > { %2775 = vmatmul.bf16.gmra.mxu1 %v4956_v30  ;;  %v2846_v17 = vadd.f32 %v5171_v36, %v2810_v28  ;;  %v2522_v22 = vpop.f32.mrf.mxu0  ;;  %v4141_v28 = vld [vmem:[%s4565_s17 + $0x30] sm:$0xff] }
 0x37d   : > { %3176 = vmatmul.bf16.gmra.mxu3 %v4140_v5 }
 0x37e   : > { %v2878_v2 = vmax.f32 %v2846_v17, 0.0 }
 0x381   : > { %v2738_v3 = vpop.f32.mrf.mxu1 }
 0x382   : > { %v2811_v11 = vadd.f32 %v2738_v3, %v2577_v37 }
 0x384   : > { %v2847_v6 = vadd.f32 %v5171_v36, %v2811_v11  ;;  %v2524_v3 = vpop.f32.mrf.mxu0 }
 0x386   : > { %v2879_v31 = vmax.f32 %v2847_v6, 0.0 }
 0x388   : > { %v2908_v26 = vpack.c.bf16 %v2879_v31, %v2878_v2 }
 0x389   : > { %v2741_v25 = vpop.f32.mrf.mxu1 }
 0x38a   : > { %3008 = vmatmul.bf16.gmra.mxu2 %v2908_v26  ;;  %v2812_v30 = vadd.f32 %v2741_v25, %v5106_v7 }
 0x38c   : > { %2780 = vmatmul.bf16.gmra.mxu1 %v4975_v1  ;;  %v2848_v49 = vadd.f32 %v5171_v36, %v2812_v30  ;;  %v2112_v1 = vadd.f32 %v4993_v4, %v4978_v63  ;;  %v2527_v5 = vpop.f32.mrf.mxu0 }
 0x38d   : > { %3181 = vmatmul.bf16.gmra.mxu3 %v4141_v28 }
 0x38e   : > { %v2880_v54 = vmax.f32 %v2848_v49, 0.0  ;;  %v2347_v7 = vadd.f32 %v4995_v0, %v2112_v1  ;;  %v2582_v0 = vadd.f32 %v2517_v50, %v5007_v62  ;;  %v5460_v50 = vld [vmem:[#allocation18_spill] sm:$0xff]  ;;  %v5461_v1 = vld [vmem:[#allocation19_spill] sm:$0xff] }
 0x390   : > { %v2581_v11 = vadd.f32 %v2514_v61, %v2347_v7  ;;  %v2349_v61 = vadd.f32 %v5459_v23, %v2114_v29 }
 0x391   : > { %v2743_v59 = vpop.f32.mrf.mxu1 }
 0x392   : > { %v2813_v42 = vadd.f32 %v2743_v59, %v2579_v53  ;;  %v4142_v53 = vld [vmem:[%s4565_s17 + $0x38] sm:$0xff]  ;;  %v2583_v49 = vadd.f32 %v2519_v44, %v2349_v61  ;;  %v2584_v44 = vadd.f32 %v2522_v22, %v5461_v1  ;;  %v4144_v22 = vld [vmem:[%s4565_s17 + $0x48] sm:$0xff] }
 0x394   : > { %v2849_v45 = vadd.f32 %v5171_v36, %v2813_v42 }
 0x396   : > { %v2881_v57 = vmax.f32 %v2849_v45, 0.0 }
 0x398   : > { %v2909_v37 = vpack.c.bf16 %v2881_v57, %v2880_v54 }
 0x399   : > { %v2746_v17 = vpop.f32.mrf.mxu1 }
 0x39a   : > { %3013 = vmatmul.bf16.gmra.mxu2 %v2909_v37  ;;  %v2814_v38 = vadd.f32 %v2746_v17, %v2580_v15  ;;  %v5462_v15 = vld [vmem:[#allocation20_spill] sm:$0xff] }
 0x39c   : > { %2785 = vmatmul.bf16.gmra.mxu1 %v4998_v51  ;;  %v2850_v2 = vadd.f32 %v5171_v36, %v2814_v38  ;;  %v2529_v51 = vpop.f32.mrf.mxu0 }
 0x39d   : > { %3186 = vmatmul.bf16.gmra.mxu3 %v4142_v53  ;;  %v2635_v53 = vld [vmem:[#allocation2 + $0x1a2] sm:$0xff] }
 0x39e   : > { %v2882_v25 = vmax.f32 %v2850_v2, 0.0 }
 0x3a1   : > { %v2748_v6 = vpop.f32.mrf.mxu1 }
 0x3a2   : > { %v2815_v31 = vadd.f32 %v2748_v6, %v2581_v11  ;;  %v5219_v6 = vpop.f32.mrf.mxu3 }
 0x3a4   : > { %v2851_v26 = vadd.f32 %v5171_v36, %v2815_v31  ;;  %v2532_v17 = vpop.f32.mrf.mxu0 }
 0x3a6   : > { %v2883_v30 = vmax.f32 %v2851_v26, 0.0 }
 0x3a8   : > { %v2910_v63 = vpack.c.bf16 %v2883_v30, %v2882_v25 }
 0x3a9   : > { %v2751_v4 = vpop.f32.mrf.mxu1 }
 0x3aa   : > { %3018 = vmatmul.bf16.gmra.mxu2 %v2910_v63  ;;  %v2816_v59 = vadd.f32 %v2751_v4, %v2582_v0 }
 0x3ac   : > { %2790 = vmatmul.bf16.gmra.mxu1 %v5021_v33  ;;  %v2852_v45 = vadd.f32 %v5171_v36, %v2816_v59  ;;  %v2116_v33 = vadd.f32 %v5040_v55, %v5460_v50  ;;  %v2534_v2 = vpop.f32.mrf.mxu0  ;;  %v2634_v55 = vld [vmem:[#allocation2 + $0x19a] sm:$0xff] }
 0x3ad   : > { %3191 = vmatmul.bf16.gmra.mxu3 %v4143_v46  ;;  %v2651_v29 = vpack.c.bf16 %v2635_v53, %v2634_v55 }
 0x3ae   : > { %v2884_v28 = vmax.f32 %v2852_v45, 0.0  ;;  %v2351_v7 = vadd.f32 %v5462_v15, %v2116_v33  ;;  %v4145_v33 = vld [vmem:[%s4565_s17 + $0x50] sm:$0xff] }
 0x3af   : > { %v3152_v0 = vpop.f32.mrf.mxu3  ;;  %v5465_v15 = vld [vmem:[#allocation23_spill] sm:$0xff] }
 0x3b0   : > { %v2585_v11 = vadd.f32 %v2524_v3, %v2351_v7  ;;  %v5463_v3 = vld [vmem:[#allocation21_spill] sm:$0xff] }
 0x3b1   : > { %v2753_v42 = vpop.f32.mrf.mxu1  ;;  %v2118_v61 = vadd.f32 %v5060_v19, %v5463_v3 }
 0x3b2   : > { %v2817_v54 = vadd.f32 %v2753_v42, %v2583_v49  ;;  %v2586_v49 = vadd.f32 %v2527_v5, %v5054_v14  ;;  %v5464_v14 = vld [vmem:[#allocation22_spill] sm:$0xff] }
 0x3b3   : > { %v2353_v42 = vadd.f32 %v5062_v41, %v2118_v61  ;;  %v2120_v5 = vadd.f32 %v5076_v56, %v5464_v14 }
 0x3b4   : > { %v2853_v57 = vadd.f32 %v5171_v36, %v2817_v54  ;;  %v2537_v59 = vpop.f32.mrf.mxu0 }
 0x3b5   : > { %v2587_v54 = vadd.f32 %v2529_v51, %v2353_v42  ;;  %v2588_v51 = vadd.f32 %v2532_v17, %v5070_v27  ;;  %v2355_v7 = vadd.f32 %v5465_v15, %v2120_v5  ;;  %v2590_v61 = vadd.f32 %v2537_v59, %v5086_v48  ;;  %v5467_v42 = vld [vmem:[#allocation25_spill] sm:$0xff] }
 0x3b6   : > { %v2885_v37 = vmax.f32 %v2853_v57, 0.0 }
 0x3b7   : > { %v3154_v46 = vpop.f32.mrf.mxu3 }
 0x3b8   : > { %v2911_v58 = vpack.c.bf16 %v2885_v37, %v2884_v28 }
 0x3b9   : > { %v2756_v62 = vpop.f32.mrf.mxu1 }
 0x3ba   : > { %3023 = vmatmul.bf16.gmra.mxu2 %v2911_v58  ;;  %v2818_v38 = vadd.f32 %v2756_v62, %v2584_v44 }
 0x3bc   : > { %2795 = vmatmul.bf16.gmra.mxu1 %v5045_v24  ;;  %v2854_v26 = vadd.f32 %v5171_v36, %v2818_v38  ;;  %v2539_v62 = vpop.f32.mrf.mxu0 }
 0x3bd   : > { %3196 = vmatmul.bf16.gmra.mxu3 %v4144_v22  ;;  %v4146_v22 = vld [vmem:[%s4565_s17 + $0x58] sm:$0xff] }
 0x3be   : > { %v2886_v63 = vmax.f32 %v2854_v26, 0.0 }
 0x3bf   : > { %v3157_v41 = vpop.f32.mrf.mxu3 }
 0x3c1   : > { %v2758_v31 = vpop.f32.mrf.mxu1 }
 0x3c2   : > { %v2819_v25 = vadd.f32 %v2758_v31, %v2585_v11  ;;  %v2589_v31 = vadd.f32 %v2534_v2, %v2355_v7  ;;  %v5468_v7 = vld [vmem:[#allocation26_spill] sm:$0xff] }
 0x3c4   : > { %v2855_v30 = vadd.f32 %v5171_v36, %v2819_v25  ;;  %v2542_v11 = vpop.f32.mrf.mxu0 }
 0x3c6   : > { %v2887_v4 = vmax.f32 %v2855_v30, 0.0 }
 0x3c7   : > { %v5236_v55 = vpop.f32.mrf.mxu3 }
 0x3c8   : > { %v2912_v24 = vpack.c.bf16 %v2887_v4, %v2886_v63  ;;  %v5239_v63 = vpop.f32.mrf.mxu2 }
 0x3c9   : > { %v2761_v23 = vpop.f32.mrf.mxu1 }
 0x3ca   : > { %3028 = vmatmul.bf16.gmra.mxu2 %v2912_v24  ;;  %v2820_v45 = vadd.f32 %v2761_v23, %v2586_v49  ;;  %v5247_v23 = vld [vmem:[%s5428_s6] ss:$0 sm:$0xff] }
 0x3cc   : > { %2800 = vmatmul.bf16.gmra.mxu1 %v2651_v29  ;;  %v2856_v28 = vadd.f32 %v5171_v36, %v2820_v45  ;;  %v2544_v17 = vpop.f32.mrf.mxu0  ;;  %v5466_v29 = vld [vmem:[#allocation24_spill] sm:$0xff] }
 0x3cd   : > { %3201 = vmatmul.bf16.gmra.mxu3 %v4145_v33  ;;  %v2122_v2 = vadd.f32 %v5092_v13, %v5466_v29 }
 0x3ce   : > { %v2888_v50 = vmax.f32 %v2856_v28, 0.0 }
 0x3cf   : > { %v5249_v3 = vpop.f32.mrf.mxu3  ;;  %v2357_v45 = vadd.f32 %v5467_v42, %v2122_v2 }
 0x3d1   : > { %v2763_v57 = vpop.f32.mrf.mxu1  ;;  %v2591_v28 = vadd.f32 %v2539_v62, %v2357_v45  ;;  %v4147_v62 = vld [vmem:[%s4565_s17 + $0x60] sm:$0xff] }
 0x3d2   : > { %v2821_v37 = vadd.f32 %v2763_v57, %v2587_v54 }
 0x3d4   : > { %v2857_v58 = vadd.f32 %v5171_v36, %v2821_v37 }
 0x3d6   : > { %v2889_v19 = vmax.f32 %v2857_v58, 0.0 }
 0x3d7   : > { %v5256_v33 = vpop.f32.mrf.mxu3 }
 0x3d8   : > { %v2913_v1 = vpack.c.bf16 %v2889_v19, %v2888_v50 }
 0x3d9   : > { %v2766_v44 = vpop.f32.mrf.mxu1 }
 0x3da   : > { %3033 = vmatmul.bf16.gmra.mxu2 %v2913_v1  ;;  %v2822_v38 = vadd.f32 %v2766_v44, %v2588_v51  ;;  %v2547_v1 = vpop.f32.mrf.mxu0 }
 0x3dc   : > { %v2858_v25 = vadd.f32 %v5171_v36, %v2822_v38  ;;  %v2124_v38 = vadd.f32 %v5108_v12, %v5468_v7 }
 0x3dd   : > { %3206 = vmatmul.bf16.gmra.mxu3 %v4146_v22 }
 0x3de   : > { %v2890_v56 = vmax.f32 %v2858_v25, 0.0  ;;  %v2592_v25 = vadd.f32 %v2542_v11, %v5102_v35 }
 0x3e1   : > { %v2768_v26 = vpop.f32.mrf.mxu1 }
 0x3e2   : > { %v2823_v30 = vadd.f32 %v2768_v26, %v2589_v31  ;;  %v5266_v26 = vpop.f32.mrf.mxu3 }
 0x3e4   : > { %v2859_v53 = vadd.f32 %v5171_v36, %v2823_v30  ;;  %v2549_v30 = vpop.f32.mrf.mxu0 }
 0x3e6   : > { %v2891_v4 = vmax.f32 %v2859_v53, 0.0 }
 0x3e8   : > { %v2914_v27 = vpack.c.bf16 %v2891_v4, %v2890_v56  ;;  %v5469_v56 = vld [vmem:[#allocation27_spill] sm:$0xff] }
 0x3e9   : > { %v2771_v24 = vpop.f32.mrf.mxu1  ;;  %v2359_v4 = vadd.f32 %v5469_v56, %v2124_v38 }
 0x3ea   : > { %3038 = vmatmul.bf16.gmra.mxu2 %v2914_v27  ;;  %v2824_v54 = vadd.f32 %v2771_v24, %v2590_v61 }
 0x3eb   : > { %v2593_v27 = vadd.f32 %v2544_v17, %v2359_v4  ;;  %v2128_v4 = vadd.f32 %v5130_v16, %v5125_v10 }
 0x3ec   : > { %v2860_v58 = vadd.f32 %v5171_v36, %v2824_v54 }
 0x3ed   : > { %v2999_v49 = vpop.f32.mrf.mxu2  ;;  %3211 = vmatmul.bf16.gmra.mxu3 %v4147_v62 }
 0x3ee   : > { %v3000_v57 = vadd.f32 %v5247_v23, %v2999_v49  ;;  %v2892_v44 = vmax.f32 %v2860_v58, 0.0  ;;  %v5273_v49 = vpop.f32.mrf.mxu3 }
 0x3f0   : > { %v3232_v13 = vadd.f32 %v3152_v0, %v3000_v57  ;;  %v2552_v57 = vpop.f32.mrf.mxu0 }
 0x3f1   : > { %v2773_v37 = vpop.f32.mrf.mxu1 }
 0x3f2   : > { %v3264_v50 = vmax.f32 %v3232_v13, 0.0  ;;  %v2825_v19 = vadd.f32 %v2773_v37, %v2591_v28  ;;  %v4148_v28 = vld [vmem:[%s4565_s17 + $0x68] sm:$0xff]  ;;  %v5470_v37 = vld [vmem:[#allocation28_spill] sm:$0xff] }
 0x3f3   : > { %v2126_v58 = vadd.f32 %v5119_v8, %v5470_v37 }
 0x3f4   : > { %3296 = vst [vmem:[%s5258_s21] sm:$0xff] %v3264_v50  ;;  %v2861_v48 = vadd.f32 %v5171_v36, %v2825_v19 }
 0x3f5   : > { %v3001_v59 = vpop.f32.mrf.mxu2 }
 0x3f6   : > { %v2893_v14 = vmax.f32 %v2861_v48, 0.0  ;;  %v3002_v0 = vadd.f32 %v5247_v23, %v3001_v59  ;;  %v5282_v19 = vpop.f32.mrf.mxu3  ;;  %v2594_v48 = vadd.f32 %v2547_v1, %v5116_v52 }
 0x3f8   : > { %v3233_v5 = vadd.f32 %v3154_v46, %v3002_v0  ;;  %v2915_v51 = vpack.c.bf16 %v2893_v14, %v2892_v44  ;;  %v2361_v44 = vadd.f32 %v5121_v18, %v2126_v58  ;;  %v2130_v58 = vadd.f32 %v5143_v40, %v5136_v21 }
 0x3f9   : > { %v2776_v15 = vpop.f32.mrf.mxu1 }
 0x3fa   : > { %v3265_v31 = vmax.f32 %v3233_v5, 0.0  ;;  %3043 = vmatmul.bf16.gmra.mxu2 %v2915_v51  ;;  %v2826_v22 = vadd.f32 %v2776_v15, %v2592_v25  ;;  %v2595_v0 = vadd.f32 %v2549_v30, %v2361_v44  ;;  %v2554_v5 = vpop.f32.mrf.mxu0  ;;  %v4149_v30 = vld [vmem:[%s4565_s17 + $0x70] sm:$0xff] }
 0x3fc   : > { %3297 = vst [vmem:[%s5258_s21 + $0x8] sm:$0xff] %v3265_v31  ;;  %v2862_v12 = vadd.f32 %v5171_v36, %v2826_v22 }
 0x3fd   : > { %v3004_v53 = vpop.f32.mrf.mxu2  ;;  %3216 = vmatmul.bf16.gmra.mxu3 %v4148_v28 }
 0x3fe   : > { %v3005_v46 = vadd.f32 %v5247_v23, %v3004_v53  ;;  %v2894_v42 = vmax.f32 %v2862_v12, 0.0  ;;  %v5290_v38 = vpop.f32.mrf.mxu3  ;;  %v2363_v12 = vadd.f32 %v5132_v9, %v2128_v4 }
 0x400   : > { %v3234_v24 = vadd.f32 %v3157_v41, %v3005_v46 }
 0x401   : > { %v2778_v29 = vpop.f32.mrf.mxu1 }
 0x402   : > { %v3266_v2 = vmax.f32 %v3234_v24, 0.0  ;;  %v2827_v61 = vadd.f32 %v2778_v29, %v2593_v27  ;;  %v2557_v27 = vpop.f32.mrf.mxu0  ;;  %v2596_v24 = vadd.f32 %v2552_v57, %v5127_v47 }
 0x404   : > { %3298 = vst [vmem:[%s5258_s21 + $0x10] sm:$0xff] %v3266_v2  ;;  %v2863_v35 = vadd.f32 %v5171_v36, %v2827_v61  ;;  %v2597_v61 = vadd.f32 %v2554_v5, %v2363_v12 }
 0x405   : > { %v3006_v11 = vpop.f32.mrf.mxu2 }
 0x406   : > { %v2895_v45 = vmax.f32 %v2863_v35, 0.0  ;;  %v3007_v54 = vadd.f32 %v5247_v23, %v3006_v11  ;;  %v5299_v46 = vpop.f32.mrf.mxu3 }
 0x408   : > { %v3235_v41 = vadd.f32 %v5236_v55, %v3007_v54  ;;  %v2916_v17 = vpack.c.bf16 %v2895_v45, %v2894_v42 }
 0x409   : > { %v2781_v13 = vpop.f32.mrf.mxu1 }
 0x40a   : > { %v3267_v50 = vmax.f32 %v3235_v41, 0.0  ;;  %3048 = vmatmul.bf16.gmra.mxu2 %v2916_v17  ;;  %v2828_v14 = vadd.f32 %v2781_v13, %v2594_v48  ;;  %v2559_v54 = vpop.f32.mrf.mxu0  ;;  %v4150_v17 = vld [vmem:[%s4565_s17 + $0x78] sm:$0xff]  ;;  %s3343_s17 = sshll.u32 %s3340_s1, 4  ;;  %s3344_s17 = int_to_ptr.hbm [resolvable:$true] %s3343_s17 }
 0x40b   : > { %s4315_s9 = sshra.s32 %s3344_s17, 4  ;;  %s4316_s9 = int_to_ptr.hbm [resolvable:$true] %s4315_s9 }
 0x40c   : > { %3299 = vst [vmem:[%s5258_s21 + $0x18] sm:$0xff] %v3267_v50  ;;  %v2864_v51 = vadd.f32 %v5171_v36, %v2828_v14  ;;  %v5471_v14 = vld [vmem:[#allocation29_spill] sm:$0xff]  ;;  %s4317_s16 = scalar_lea.hbm %s4316_s9, 256  ;;  %p4322_p11 = scmp.lt.s32.totalorder %s4316_s9, %s5430_s8 }
 0x40d   : > { %v3009_v59 = vpop.f32.mrf.mxu2  ;;  %3221 = vmatmul.bf16.gmra.mxu3 %v4149_v30  ;;  %p4318_p1 = scmp.ne.s32.totalorder %s4316_s9, %s4317_s16  ;;  %p4323_p2 = scmp.lt.s32.totalorder %s4321_s13, %s4317_s16 }
 0x40e   : > { %v3010_v55 = vadd.f32 %v5247_v23, %v3009_v59  ;;  %v2896_v1 = vmax.f32 %v2864_v51, 0.0  ;;  %v5307_v45 = vpop.f32.mrf.mxu3  ;;  %v2598_v59 = vadd.f32 %v2557_v27, %v5139_v20 }
 0x40f   : > { %p4319_p4 = pnand %p4318_p1, %p4528_p3  ;;  %p4324_p9 = por %p4323_p2, %p4322_p11 }
 0x410   : > { %v3236_v62 = vadd.f32 %v5249_v3, %v3010_v55  ;;  %v2365_v55 = vadd.f32 %v5471_v14, %v2130_v58 }
 0x411   : > { %v2783_v8 = vpop.f32.mrf.mxu1  ;;  %p4320_p8 = pneg %p4319_p4 }
 0x412   : > { %v3268_v15 = vmax.f32 %v3236_v62, 0.0  ;;  %v2829_v7 = vadd.f32 %v2783_v8, %v2595_v0  ;;  %v2599_v5 = vadd.f32 %v2559_v54, %v2365_v55 }
 0x413   : > { %p4325_p10 = pnand %p4324_p9, %p4320_p8 }
 0x414   : > { %3300 = vst [vmem:[%s5258_s21 + $0x20] sm:$0xff] %v3268_v15  ;;  %v2865_v52 = vadd.f32 %v5171_v36, %v2829_v7 }
 0x415   : > { %v3011_v18 = vpop.f32.mrf.mxu2 }
 0x416   : > { %v2897_v31 = vmax.f32 %v2865_v52, 0.0  ;;  %v3012_v25 = vadd.f32 %v5247_v23, %v3011_v18  ;;  %v5316_v48 = vpop.f32.mrf.mxu3 }
 0x418   : > { %v3237_v3 = vadd.f32 %v5256_v33, %v3012_v25  ;;  %v2917_v53 = vpack.c.bf16 %v2897_v31, %v2896_v1 }
 0x419   : > { %v2786_v56 = vpop.f32.mrf.mxu1 }
 0x41a   : > { %v3269_v22 = vmax.f32 %v3237_v3, 0.0  ;;  %3053 = vmatmul.bf16.gmra.mxu2 %v2917_v53  ;;  %v2830_v2 = vadd.f32 %v2786_v56, %v2596_v24  ;;  %v5472_v53 = vld [vmem:[#allocation30_spill] sm:$0xff] }
 0x41b   : > { %v2132_v56 = vadd.f32 %v5156_v39, %v5472_v53 }
 0x41c   : > { %3301 = vst [vmem:[%s5258_s21 + $0x28] sm:$0xff] %v3269_v22  ;;  %v2866_v16 = vadd.f32 %v5171_v36, %v2830_v2 }
 0x41d   : > { %v3014_v29 = vpop.f32.mrf.mxu2  ;;  %3226 = vmatmul.bf16.gmra.mxu3 %v4150_v17 }
 0x41e   : > { %v3015_v33 = vadd.f32 %v5247_v23, %v3014_v29  ;;  %v2898_v57 = vmax.f32 %v2866_v16, 0.0  ;;  %v3184_v7 = vpop.f32.mrf.mxu3  ;;  %v2367_v29 = vadd.f32 %v5158_v60, %v2132_v56 }
 0x420   : > { %v3238_v35 = vadd.f32 %v5266_v26, %v3015_v33 }
 0x421   : > { %v2788_v10 = vpop.f32.mrf.mxu1 }
 0x422   : > { %v3270_v11 = vmax.f32 %v3238_v35, 0.0  ;;  %v2831_v42 = vadd.f32 %v2788_v10, %v2597_v61 }
 0x424   : > { %3302 = vst [vmem:[%s5258_s21 + $0x30] sm:$0xff] %v3270_v11  ;;  %v2867_v47 = vadd.f32 %v5171_v36, %v2831_v42 }
 0x425   : > { %v3016_v9 = vpop.f32.mrf.mxu2 }
 0x426   : > { %v2899_v28 = vmax.f32 %v2867_v47, 0.0  ;;  %v3017_v41 = vadd.f32 %v5247_v23, %v3016_v9  ;;  %v3187_v24 = vpop.f32.mrf.mxu3 }
 0x428   : > { %v3239_v26 = vadd.f32 %v5273_v49, %v3017_v41  ;;  %v2918_v13 = vpack.c.bf16 %v2899_v28, %v2898_v57  ;;  %v2562_v49 = vpop.f32.mrf.mxu0  ;;  %v2134_v28 = vadd.f32 %v5239_v63, %v5161_v34 }
 0x429   : > { %v2791_v37 = vpop.f32.mrf.mxu1  ;;  %v2600_v22 = vadd.f32 %v2562_v49, %v5152_v43 }
 0x42a   : > { %v3271_v50 = vmax.f32 %v3239_v26, 0.0  ;;  %3058 = vmatmul.bf16.gmra.mxu2 %v2918_v13  ;;  %v2832_v0 = vadd.f32 %v2791_v37, %v2598_v59  ;;  %v2369_v37 = vadd.f32 %v5219_v6, %v2134_v28 }
 0x42c   : > { %3303 = vst [vmem:[%s5258_s21 + $0x38] sm:$0xff] %v3271_v50  ;;  %v2868_v21 = vadd.f32 %v5171_v36, %v2832_v0 }
 0x42d   : > { %v3019_v44 = vpop.f32.mrf.mxu2 }
 0x42e   : > { %v3020_v62 = vadd.f32 %v5247_v23, %v3019_v44  ;;  %v2900_v18 = vmax.f32 %v2868_v21, 0.0  ;;  %v3189_v54 = vpop.f32.mrf.mxu3 }
 0x430   : > { %v3240_v8 = vadd.f32 %v5282_v19, %v3020_v62  ;;  %v2564_v3 = vpop.f32.mrf.mxu0 }
 0x431   : > { %v2793_v51 = vpop.f32.mrf.mxu1 }
 0x432   : > { %v3272_v40 = vmax.f32 %v3240_v8, 0.0  ;;  %v2833_v15 = vadd.f32 %v2793_v51, %v2599_v5 }
 0x434   : > { %3304 = vst [vmem:[%s5258_s21 + $0x40] sm:$0xff] %v3272_v40  ;;  %v2869_v20 = vadd.f32 %v5171_v36, %v2833_v15 }
 0x435   : > { %v3021_v52 = vpop.f32.mrf.mxu2 }
 0x436   : > { %v2901_v1 = vmax.f32 %v2869_v20, 0.0  ;;  %v3022_v31 = vadd.f32 %v5247_v23, %v3021_v52  ;;  %v3192_v14 = vpop.f32.mrf.mxu3 }
 0x438   : > { %v3241_v25 = vadd.f32 %v5290_v38, %v3022_v31  ;;  %v2919_v30 = vpack.c.bf16 %v2901_v1, %v2900_v18  ;;  %v2601_v38 = vadd.f32 %v2564_v3, %v2367_v29  ;;  %v2567_v16 = vpop.f32.mrf.mxu0 }
 0x439   : > { %v2796_v19 = vpop.f32.mrf.mxu1  ;;  %v2602_v17 = vadd.f32 %v2567_v16, %v5164_v32 }
 0x43a   : > { %v3273_v4 = vmax.f32 %v3241_v25, 0.0  ;;  %3063 = vmatmul.bf16.gmra.mxu2 %v2919_v30  ;;  %v2834_v12 = vadd.f32 %v2796_v19, %v2600_v22 }
 0x43c   : > { %3305 = vst [vmem:[%s5258_s21 + $0x48] sm:$0xff] %v3273_v4  ;;  %v2870_v35 = vadd.f32 %v5171_v36, %v2834_v12 }
 0x43d   : > { %v3024_v27 = vpop.f32.mrf.mxu2 }
 0x43e   : > { %v3025_v2 = vadd.f32 %v5247_v23, %v3024_v27  ;;  %v2902_v42 = vmax.f32 %v2870_v35, 0.0  ;;  %v3194_v51 = vpop.f32.mrf.mxu3 }
 0x440   : > { %v3242_v33 = vadd.f32 %v5299_v46, %v3025_v2  ;;  %v2569_v26 = vpop.f32.mrf.mxu0 }
 0x441   : > { %v2798_v61 = vpop.f32.mrf.mxu1  ;;  %v2603_v59 = vadd.f32 %v2569_v26, %v2369_v37 }
 0x442   : > { %v3274_v39 = vmax.f32 %v3242_v33, 0.0  ;;  %v2835_v10 = vadd.f32 %v2798_v61, %v2601_v38 }
 0x444   : > { %3306 = vst [vmem:[%s5258_s21 + $0x50] sm:$0xff] %v3274_v39  ;;  %v2871_v43 = vadd.f32 %v5171_v36, %v2835_v10 }
 0x445   : > { %v3026_v11 = vpop.f32.mrf.mxu2 }
 0x446   : > { %v2903_v47 = vmax.f32 %v2871_v43, 0.0  ;;  %v3027_v60 = vadd.f32 %v5247_v23, %v3026_v11  ;;  %v3197_v52 = vpop.f32.mrf.mxu3 }
 0x448   : > { %v3243_v9 = vadd.f32 %v5307_v45, %v3027_v60  ;;  %v2920_v57 = vpack.c.bf16 %v2903_v47, %v2902_v42 }
 0x449   : > { %v2801_v46 = vpop.f32.mrf.mxu1 }
 0x44a   : > { %v3275_v41 = vmax.f32 %v3243_v9, 0.0  ;;  %3068 = vmatmul.bf16.gmra.mxu2 %v2920_v57  ;;  %v2836_v58 = vadd.f32 %v2801_v46, %v2602_v17 }
 0x44c   : > { %3307 = vst [vmem:[%s5258_s21 + $0x58] sm:$0xff] %v3275_v41  ;;  %v2872_v34 = vadd.f32 %v5171_v36, %v2836_v58 }
 0x44d   : > { %v3029_v13 = vpop.f32.mrf.mxu2 }
 0x44e   : > { %v3030_v50 = vadd.f32 %v5247_v23, %v3029_v13  ;;  %v2904_v62 = vmax.f32 %v2872_v34, 0.0  ;;  %v3199_v30 = vpop.f32.mrf.mxu3 }
 0x450   : > { %v3244_v45 = vadd.f32 %v5316_v48, %v3030_v50 }
 0x451   : > { %v2803_v44 = vpop.f32.mrf.mxu1 }
 0x452   : > { %v3276_v63 = vmax.f32 %v3244_v45, 0.0  ;;  %v2837_v55 = vadd.f32 %v2803_v44, %v2603_v59 }
 0x454   : > { %3308 = vst [vmem:[%s5258_s21 + $0x60] sm:$0xff] %v3276_v63  ;;  %v2873_v32 = vadd.f32 %v5171_v36, %v2837_v55 }
 0x455   : > { %v3031_v0 = vpop.f32.mrf.mxu2 }
 0x456   : > { %v2905_v6 = vmax.f32 %v2873_v32, 0.0  ;;  %v3032_v49 = vadd.f32 %v5247_v23, %v3031_v0  ;;  %v3202_v22 = vpop.f32.mrf.mxu3 }
 0x458   : > { %v3245_v5 = vadd.f32 %v3184_v7, %v3032_v49  ;;  %v2921_v8 = vpack.c.bf16 %v2905_v6, %v2904_v62 }
 0x45a   : > { %v3277_v48 = vmax.f32 %v3245_v5, 0.0  ;;  %3073 = vmatmul.bf16.gmra.mxu2 %v2921_v8 }
 0x45c   : > { %3309 = vst [vmem:[%s5258_s21 + $0x68] sm:$0xff] %v3277_v48 }
 0x45d   : > { %v3034_v21 = vpop.f32.mrf.mxu2 }
 0x45e   : > { %v3035_v40 = vadd.f32 %v5247_v23, %v3034_v21  ;;  %v3204_v38 = vpop.f32.mrf.mxu3 }
 0x460   : > { %v3246_v15 = vadd.f32 %v3187_v24, %v3035_v40 }
 0x462   : > { %v3278_v20 = vmax.f32 %v3246_v15, 0.0 }
 0x464   : > { %3310 = vst [vmem:[%s5258_s21 + $0x70] sm:$0xff] %v3278_v20 }
 0x465   : > { %v3036_v36 = vpop.f32.mrf.mxu2 }
 0x466   : > { %v3037_v18 = vadd.f32 %v5247_v23, %v3036_v36  ;;  %v3207_v16 = vpop.f32.mrf.mxu3 }
 0x468   : > { %v3247_v1 = vadd.f32 %v3189_v54, %v3037_v18 }
 0x46a   : > { %v3279_v7 = vmax.f32 %v3247_v1, 0.0 }
 0x46c   : > { %3311 = vst [vmem:[%s5258_s21 + $0x78] sm:$0xff] %v3279_v7 }
 0x46d   : > { %v3039_v31 = vpop.f32.mrf.mxu2 }
 0x46e   : > { %v3040_v25 = vadd.f32 %v5247_v23, %v3039_v31  ;;  %v3209_v54 = vpop.f32.mrf.mxu3 }
 0x470   : > { %v3248_v3 = vadd.f32 %v3192_v14, %v3040_v25 }
 0x472   : > { %v3280_v19 = vmax.f32 %v3248_v3, 0.0 }
 0x474   : > { %3312 = vst [vmem:[%s5258_s21 + $0x80] sm:$0xff] %v3280_v19 }
 0x475   : > { %v3041_v53 = vpop.f32.mrf.mxu2 }
 0x476   : > { %v3042_v56 = vadd.f32 %v5247_v23, %v3041_v53  ;;  %v3212_v17 = vpop.f32.mrf.mxu3 }
 0x478   : > { %v3249_v4 = vadd.f32 %v3194_v51, %v3042_v56 }
 0x47a   : > { %v3281_v27 = vmax.f32 %v3249_v4, 0.0 }
 0x47c   : > { %3313 = vst [vmem:[%s5258_s21 + $0x88] sm:$0xff] %v3281_v27 }
 0x47d   : > { %v3044_v24 = vpop.f32.mrf.mxu2 }
 0x47e   : > { %v3045_v29 = vadd.f32 %v5247_v23, %v3044_v24  ;;  %v3214_v59 = vpop.f32.mrf.mxu3 }
 0x480   : > { %v3250_v12 = vadd.f32 %v3197_v52, %v3045_v29 }
 0x482   : > { %v3282_v2 = vmax.f32 %v3250_v12, 0.0 }
 0x484   : > { %3314 = vst [vmem:[%s5258_s21 + $0x90] sm:$0xff] %v3282_v2 }
 0x485   : > { %v3046_v33 = vpop.f32.mrf.mxu2 }
 0x486   : > { %v3047_v61 = vadd.f32 %v5247_v23, %v3046_v33  ;;  %v3217_v55 = vpop.f32.mrf.mxu3 }
 0x488   : > { %v3251_v35 = vadd.f32 %v3199_v30, %v3047_v61 }
 0x48a   : > { %v3283_v39 = vmax.f32 %v3251_v35, 0.0 }
 0x48c   : > { %3315 = vst [vmem:[%s5258_s21 + $0x98] sm:$0xff] %v3283_v39 }
 0x48d   : > { %v3049_v10 = vpop.f32.mrf.mxu2 }
 0x48e   : > { %v3050_v43 = vadd.f32 %v5247_v23, %v3049_v10  ;;  %v3219_v5 = vpop.f32.mrf.mxu3 }
 0x490   : > { %v3252_v11 = vadd.f32 %v3202_v22, %v3050_v43 }
 0x492   : > { %v3284_v42 = vmax.f32 %v3252_v11, 0.0 }
 0x494   : > { %3316 = vst [vmem:[%s5258_s21 + $0xa0] sm:$0xff] %v3284_v42 }
 0x495   : > { %v3051_v47 = vpop.f32.mrf.mxu2 }
 0x496   : > { %v3052_v60 = vadd.f32 %v5247_v23, %v3051_v47  ;;  %v3222_v15 = vpop.f32.mrf.mxu3 }
 0x498   : > { %v3253_v9 = vadd.f32 %v3204_v38, %v3052_v60 }
 0x49a   : > { %v3285_v57 = vmax.f32 %v3253_v9, 0.0 }
 0x49c   : > { %3317 = vst [vmem:[%s5258_s21 + $0xa8] sm:$0xff] %v3285_v57 }
 0x49d   : > { %v3054_v46 = vpop.f32.mrf.mxu2 }
 0x49e   : > { %v3055_v28 = vadd.f32 %v5247_v23, %v3054_v46  ;;  %v3224_v7 = vpop.f32.mrf.mxu3 }
 0x4a0   : > { %v3254_v41 = vadd.f32 %v3207_v16, %v3055_v28 }
 0x4a2   : > { %v3286_v26 = vmax.f32 %v3254_v41, 0.0 }
 0x4a4   : > { %3318 = vst [vmem:[%s5258_s21 + $0xb0] sm:$0xff] %v3286_v26 }
 0x4a5   : > { %v3056_v13 = vpop.f32.mrf.mxu2 }
 0x4a6   : > { %v3057_v37 = vadd.f32 %v5247_v23, %v3056_v13  ;;  %v3227_v19 = vpop.f32.mrf.mxu3 }
 0x4a8   : > { %v3255_v58 = vadd.f32 %v3209_v54, %v3057_v37 }
 0x4aa   : > { %v3287_v50 = vmax.f32 %v3255_v58, 0.0 }
 0x4ac   : > { %3319 = vst [vmem:[%s5258_s21 + $0xb8] sm:$0xff] %v3287_v50 }
 0x4ad   : > { %v3059_v45 = vpop.f32.mrf.mxu2 }
 0x4ae   : > { %v3060_v44 = vadd.f32 %v5247_v23, %v3059_v45  ;;  %v3229_v29 = vpop.f32.mrf.mxu3 }
 0x4b0   : > { %v3256_v14 = vadd.f32 %v3212_v17, %v3060_v44 }
 0x4b2   : > { %v3288_v34 = vmax.f32 %v3256_v14, 0.0 }
 0x4b4   : > { %3320 = vst [vmem:[%s5258_s21 + $0xc0] sm:$0xff] %v3288_v34 }
 0x4b5   : > { %v3061_v63 = vpop.f32.mrf.mxu2 }
 0x4b6   : > { %v3062_v32 = vadd.f32 %v5247_v23, %v3061_v63 }
 0x4b8   : > { %v3257_v0 = vadd.f32 %v3214_v59, %v3062_v32 }
 0x4ba   : > { %v3289_v62 = vmax.f32 %v3257_v0, 0.0 }
 0x4bc   : > { %3321 = vst [vmem:[%s5258_s21 + $0xc8] sm:$0xff] %v3289_v62 }
 0x4bd   : > { %v3064_v6 = vpop.f32.mrf.mxu2 }
 0x4be   : > { %v3065_v49 = vadd.f32 %v5247_v23, %v3064_v6 }
 0x4c0   : > { %v3258_v8 = vadd.f32 %v3217_v55, %v3065_v49 }
 0x4c2   : > { %v3290_v48 = vmax.f32 %v3258_v8, 0.0 }
 0x4c4   : > { %3322 = vst [vmem:[%s5258_s21 + $0xd0] sm:$0xff] %v3290_v48 }
 0x4c5   : > { %v3066_v51 = vpop.f32.mrf.mxu2 }
 0x4c6   : > { %v3067_v21 = vadd.f32 %v5247_v23, %v3066_v51 }
 0x4c8   : > { %v3259_v40 = vadd.f32 %v3219_v5, %v3067_v21 }
 0x4ca   : > { %v3291_v20 = vmax.f32 %v3259_v40, 0.0 }
 0x4cc   : > { %3323 = vst [vmem:[%s5258_s21 + $0xd8] sm:$0xff] %v3291_v20 }
 0x4cd   : > { %v3069_v36 = vpop.f32.mrf.mxu2 }
 0x4ce   : > { %v3070_v52 = vadd.f32 %v5247_v23, %v3069_v36 }
 0x4d0   : > { %v3260_v18 = vadd.f32 %v3222_v15, %v3070_v52 }
 0x4d2   : > { %v3292_v1 = vmax.f32 %v3260_v18, 0.0 }
 0x4d4   : > { %3324 = vst [vmem:[%s5258_s21 + $0xe0] sm:$0xff] %v3292_v1 }
 0x4d5   : > { %v3071_v31 = vpop.f32.mrf.mxu2 }
 0x4d6   : > { %v3072_v25 = vadd.f32 %v5247_v23, %v3071_v31 }
 0x4d8   : > { %v3261_v30 = vadd.f32 %v3224_v7, %v3072_v25 }
 0x4da   : > { %v3293_v3 = vmax.f32 %v3261_v30, 0.0 }
 0x4dc   : > { %3325 = vst [vmem:[%s5258_s21 + $0xe8] sm:$0xff] %v3293_v3 }
 0x4dd   : > { %v3074_v53 = vpop.f32.mrf.mxu2 }
 0x4de   : > { %v3075_v56 = vadd.f32 %v5247_v23, %v3074_v53 }
 0x4e0   : > { %v3262_v4 = vadd.f32 %v3227_v19, %v3075_v56 }
 0x4e2   : > { %v3294_v22 = vmax.f32 %v3262_v4, 0.0 }
 0x4e4   : > { %3326 = vst [vmem:[%s5258_s21 + $0xf0] sm:$0xff] %v3294_v22 }
 0x4e5   : > { %v3076_v27 = vpop.f32.mrf.mxu2 }
 0x4e6   : > { %v3077_v24 = vadd.f32 %v5247_v23, %v3076_v27 }
 0x4e8   : > { %v3263_v12 = vadd.f32 %v3229_v29, %v3077_v24 }
 0x4ea   : > { %v3295_v2 = vmax.f32 %v3263_v12, 0.0 }
 0x4ec   : > { %3327 = vst [vmem:[%s5258_s21 + $0xf8] sm:$0xff] %v3295_v2 }
 0x4ed   : > { %4328 = shalt.err (!%p4325_p10)
}
 0x4ee   : > { %s4385_s18 = smov 128   ;;  %s4386_s21 = smov 8  }
 0x4ef   : > { %4057 = dma.vmem_to_hbm [thread:$0]  (%p4528_p3), %s3342_s3, 4096, %s3344_s17, %s3329_s11, %s4385_s18, %s4385_s18, %s4386_s21  }
 0x4f0 PF: > { %s3358_s25 = sand.u32 1, %s4363_s27   ;;  %p5473_p12 = scmp.ge.s32.totalorder %s4375_s30, 2 }
 0x4f1   : > { %s3359_s19 = scalar_lea.sflag [#allocation5], %s3358_s25 }
 0x4f2   : > { %p4077_p13 = pnand %p5473_p12, %p4467_p6 }
 0x4f4   : > { %p4078_p0 = pneg %p4077_p13 }
 0x4f6   : > { %4358 = dma.done.wait (%p4078_p0), %s3359_s19, 4096  }
 0x4f7   : > { %4360 = vsyncadd (%p4078_p0), %s3359_s19, 4294963200  ;;  %p23_p5 = scmp.ge.s32.totalorder %s4518_s26, 4   ;;  %s5474_s27 = smov %s4367_s28 }
 0x4f8   : > { %s5475_s28 = smov %s4371_s29  ;;  %s5476_s29 = smov %s4534_s15 }
 0x4f9   : > { %s5477_s30 = smov %s4518_s26  ;;  %25 = sbr.rel (!%p23_p5) target bundleno = 10 (0xa), region = 123 }
 0x4fe   :  { %3365 = vsyncpa [#allocation4], 1 }
 0x4ff   :  { %3367 = vsyncpa [#allocation4 + $0x1], 1 }
 0x500   :  { %3368 = vsyncpa [#allocation7], 1 }
 0x501   :  { %3369 = vsyncpa [#allocation10], 1 }
 0x502   :  { %3370 = vsyncpa [#allocation5], 1 }
 0x503   :  { %3372 = vsyncpa [#allocation5 + $0x1], 1 }

</bundles_post_ra>
